<compile_context>
chip_gen: v5e
topology: v5e:2x2
jax: 0.10.0
libtpu: 0.0.40
codegen_flags: <defaults>
</compile_context>

<pallas_src>
import jax
import jax.numpy as jnp
from jax import lax
from jax.experimental import pallas as pl
from jax.experimental.pallas import tpu as pltpu

HEADS = 4
DIM_HEAD = 16                 # must equal H*W (see note above)
HIDDEN = HEADS * DIM_HEAD     # 64
SCALE = 1.0 / (DIM_HEAD ** 0.5)
EPS = 1e-5                    # GroupNorm default eps
TB = 8                        # batch elements per 128-lane group (TB*DIM_HEAD = 128)


def _num_tensorcores():
    """Best-effort count of TensorCores a single kernel program can span."""
    try:
        kind = jax.devices()[0].device_kind.lower()
    except Exception:
        return 1
    # v7x has 2 TCs per chip; v4/v5p expose a 2-TC megacore.  v5e/v6e: 1 TC.
    if any(tag in kind for tag in ("v7", "7x", "v4", "v5p")):
        return 2
    return 1


def linear_attention_kernel(x_ref, wqkv_ref, wout_ref, par_ref, et_ref, rep_ref,
                            o_ref, qkv_scr):
    # x_ref:   (G, C, 128)   G batch-groups of TB elements folded on lanes (t, n)
    # wqkv:    (3*HIDDEN, C) 1x1 conv, no bias
    # wout:    (C, HIDDEN)   output 1x1 conv weight
    # par:     (C, 3+HEADS)  [b_out | gamma | beta | per-head sum_j w_out]
    # et:      (128, 128)    f32 "same batch element" block-diagonal lane mask
    # rep:     (16, 128)     bf16 rep[j, t*16+j'] = (j == j')
    # o_ref:   (G, C, 128)   lanes = (batch-in-group, output spatial i)
    # qkv_scr: (3*HIDDEN, 128) f32 VMEM scratch
    ngrp, c_dim, lanes = x_ref.shape
    seg = DIM_HEAD                      # 16 (== N == H*W, enforced by the module)
    tb = lanes // seg

    et = et_ref[...]                    # (128, 128) f32
    rep_bf = rep_ref[...]               # (16, 128) bf16
    w_out = wout_ref[...]               # (C, HIDDEN) f32
    par = par_ref[...]                  # (C, 3+HEADS) f32
    b_out, gamma, beta = par[:, 0:1], par[:, 1:2], par[:, 2:3]

    for g in range(ngrp):
        # qkv 1x1 conv == channel matmul over 128 lanes; parked in VMEM scratch
        # so it does not pin 24 vregs across the unrolled head loop.
        qkv_scr[...] = jnp.dot(wqkv_ref[...], x_ref[g],
                               preferred_element_type=jnp.float32)

        acc = jnp.zeros((c_dim, lanes), jnp.float32)   # sum_h w_h @ out_h
        corr = jnp.zeros((c_dim, lanes), jnp.float32)  # sum_h wsum_h * amax_h
        for h in range(HEADS):
            q = qkv_scr[h * seg:(h + 1) * seg, :]                       # (16,128)
            k = qkv_scr[HIDDEN + h * seg:HIDDEN + (h + 1) * seg, :]
            v = qkv_scr[2 * HIDDEN + h * seg:2 * HIDDEN + (h + 1) * seg, :]

            # softmax over dim_head (rows), per lane; attention scale folded in.
            q = q - jnp.max(q, axis=0, keepdims=True)
            eq = jnp.exp(q)
            q = eq * (SCALE * pl.reciprocal(jnp.sum(eq, axis=0, keepdims=True),
                                            approx=True))

            # softmax over spatial within each 16-lane batch segment, per row.
            # Per-row global max is a uniform shift inside every segment.
            k = k - jnp.max(k, axis=1, keepdims=True)
            ek = jnp.exp(k)
            seg_sum = jnp.dot(ek, et, preferred_element_type=jnp.float32)
            k = ek * pl.reciprocal(seg_sum, approx=True)

            q_bf = q.astype(jnp.bfloat16)
            k_bf = k.astype(jnp.bfloat16)

            # at[(t,j),(t',n)] = sum_d q[d,(t,j)] k[d,(t',n)]
            at = lax.dot_general(q_bf, k_bf, (((0,), (0,)), ((), ())),
                                 preferred_element_type=jnp.float32)
            atm_bf = (at * et).astype(jnp.bfloat16)      # block-diagonal mask

            # at2[j,(t,n)] = at[(t,j),(t,n)]  (diagonal-block extraction, lane dense)
            at2_bf = jnp.dot(rep_bf, atm_bf,
                             preferred_element_type=jnp.float32).astype(jnp.bfloat16)

            # vbt[(t,i),(t',n)] = v[i,(t',n)] * (t == t')
            vbt_bf = (jnp.concatenate([v] * tb, axis=0) * et).astype(jnp.bfloat16)

            # out_h[j,(t,i)] = sum_n at_t[j,n] v[i,(t,n)] = out[t,h,i,j]
            out_h = lax.dot_general(at2_bf, vbt_bf, (((1,), (1,)), ((), ())),
                                    preferred_element_type=jnp.float32)  # (16,128)

            # Head contribution to the output 1x1 conv; kept adjacent to its
            # producing dot so v7x can fold the accumulate into the MRB.
            w_h = w_out[:, h * seg:(h + 1) * seg]                        # (C,16)
            acc = acc + jnp.dot(w_h, out_h, preferred_element_type=jnp.float32)

            # 'out - out.amax(-1)' folded exactly through the linear output conv.
            mx_h = jnp.max(out_h, axis=0, keepdims=True)                 # (1,128)
            corr = corr + par[:, 3 + h:4 + h] * mx_h

        proj = acc - corr + b_out                                        # (C,128)

        # GroupNorm(1, C): per batch element over all (C, spatial) entries.
        csum = jnp.sum(proj, axis=0, keepdims=True)
        csum2 = jnp.sum(proj * proj, axis=0, keepdims=True)
        stats = jnp.concatenate([csum, csum2], axis=0)                   # (2,128)
        gstats = jnp.dot(stats, et, preferred_element_type=jnp.float32)
        inv_cnt = 1.0 / (c_dim * seg)
        mean = gstats[0:1, :] * inv_cnt
        var = gstats[1:2, :] * inv_cnt - mean * mean
        inv_std = lax.rsqrt(var + EPS)
        o_ref[g] = (proj - mean) * inv_std * gamma + beta


def linear_attention(x, w_qkv, w_out, b_out, gamma, beta):
    B, C, H, W = x.shape
    n = H * W
    assert n == DIM_HEAD, "rearrange in the reference module requires dim_head == H*W"
    assert B % TB == 0, "batch must be a multiple of TB"
    lanes = TB * n
    nblk = B // TB

    # NCHW -> (nblk, C, TB*N): batch folded onto lanes (layout plumbing only).
    xf = x.reshape(nblk, TB, C, n).transpose(0, 2, 1, 3).reshape(nblk, C, lanes)

    # Constant masks (loop-invariant, fetched once by the kernel).
    lane = jnp.arange(lanes)
    segid = lane // DIM_HEAD
    et = (segid[:, None] == segid[None, :]).astype(jnp.float32)
    rep = (jnp.arange(DIM_HEAD)[:, None] == (lane % DIM_HEAD)[None, :]
           ).astype(jnp.bfloat16)

    # Merge all tiny per-channel params into one input: [b_out|gamma|beta|wsum].
    wsum = w_out.reshape(C, HEADS, DIM_HEAD).sum(axis=-1)                # (C,HEADS)
    params = jnp.concatenate(
        [b_out[:, None], gamma[:, None], beta[:, None], wsum], axis=1)   # (C,3+H)

    # Grid: one step per TensorCore the program can span.
    ncores = _num_tensorcores()
    grid_steps = ncores if nblk % ncores == 0 else 1
    grp = nblk // grid_steps

    out = pl.pallas_call(
        linear_attention_kernel,
        out_shape=jax.ShapeDtypeStruct((nblk, C, lanes), jnp.float32),
        grid_spec=pltpu.PrefetchScalarGridSpec(
            num_scalar_prefetch=0,
            grid=(grid_steps,),
            in_specs=[
                pl.BlockSpec((grp, C, lanes), lambda b: (b, 0, 0)),
                pl.BlockSpec((3 * HIDDEN, C), lambda b: (0, 0)),
                pl.BlockSpec((C, HIDDEN), lambda b: (0, 0)),
                pl.BlockSpec((C, 3 + HEADS), lambda b: (0, 0)),
                pl.BlockSpec((lanes, lanes), lambda b: (0, 0)),
                pl.BlockSpec((DIM_HEAD, lanes), lambda b: (0, 0)),
            ],
            out_specs=pl.BlockSpec((grp, C, lanes), lambda b: (b, 0, 0)),
            scratch_shapes=[pltpu.VMEM((3 * HIDDEN, lanes), jnp.float32)],
        ),
        compiler_params=pltpu.CompilerParams(
            dimension_semantics=("parallel",)),
    )(xf, w_qkv, w_out, params, et, rep)

    # (nblk, C, TB*DIM_HEAD) -> NCHW
    return (out.reshape(nblk, C, TB, DIM_HEAD)
               .transpose(0, 2, 1, 3)
               .reshape(B, C, H, W))


def linear_attention_ref(x, w_qkv, w_out, b_out, gamma, beta):
    """Pure-JAX reference mirroring the PyTorch code exactly."""
    B, C, H, W = x.shape
    n = H * W
    xf = x.reshape(B, C, n)
    qkv = jnp.einsum('oc,bcn->bon', w_qkv, xf)
    q, k, v = jnp.split(qkv, 3, axis=1)
    q = q.reshape(B, HEADS, DIM_HEAD, n)
    k = k.reshape(B, HEADS, DIM_HEAD, n)
    v = v.reshape(B, HEADS, DIM_HEAD, n)
    q = jax.nn.softmax(q, axis=-2) * SCALE
    k = jax.nn.softmax(k, axis=-1)
    ctx = jnp.einsum('bhij,bhdj->bhid', k, v)
    out = jnp.einsum('bhdi,bhdj->bhij', ctx, q)
    out = out - jnp.max(out, axis=-1, keepdims=True)
    # rearrange(out, 'b h (x y) d -> b (h d) x y', x=H, y=W)
    d = out.shape[-1]
    out = out.reshape(B, HEADS, H, W, d).transpose(0, 1, 4, 2, 3)
    out = out.reshape(B, HEADS * d, n)
    proj = jnp.einsum('oc,bcn->bon', w_out, out) + b_out[None, :, None]
    mean = proj.mean(axis=(1, 2), keepdims=True)
    var = ((proj - mean) ** 2).mean(axis=(1, 2), keepdims=True)
    normed = (proj - mean) / jnp.sqrt(var + EPS)
    y = normed * gamma[None, :, None] + beta[None, :, None]
    return y.reshape(B, C, H, W)


if __name__ == "__main__":
    B, C, H, W = 16, 4, 4, 4          # dim_in = 4, H*W = 16 == DIM_HEAD
    key = jax.random.PRNGKey(0)
    k1, k2, k3, k4, k5, k6 = jax.random.split(key, 6)

    x = jax.random.normal(k1, (B, C, H, W), jnp.float32)
    # deterministic synthetic parameters (conv weights are (out, in) for 1x1 conv)
    w_qkv = 0.2 * jax.random.normal(k2, (3 * HIDDEN, C), jnp.float32)
    w_out = 0.1 * jax.random.normal(k3, (C, HIDDEN), jnp.float32)
    b_out = 0.1 * jax.random.normal(k4, (C,), jnp.float32)
    gamma = 1.0 + 0.1 * jax.random.normal(k5, (C,), jnp.float32)
    beta = 0.1 * jax.random.normal(k6, (C,), jnp.float32)

    out = linear_attention(x, w_qkv, w_out, b_out, gamma, beta)
    out = jax.block_until_ready(out)

    ref = linear_attention_ref(x, w_qkv, w_out, b_out, gamma, beta)
    assert out.shape == (B, C, H, W)
    err = float(jnp.max(jnp.abs(out - ref)))
    # bf16 MXU operands + approx reciprocals loosen the pure-f32 tolerance.
    assert err < 5e-2, f"max abs error {err}"
    print("KERNEL_OK")
</pallas_src>

<mosaic_0001>
module attributes {stable_mosaic.version = 11 : i64} {
  func.func @linear_attention_kernel(%arg0: i32, %arg1: memref<2x4x128xf32, #tpu.memory_space<vmem>>, %arg2: memref<192x4xf32, #tpu.memory_space<vmem>>, %arg3: memref<4x64xf32, #tpu.memory_space<vmem>>, %arg4: memref<4x7xf32, #tpu.memory_space<vmem>>, %arg5: memref<128x128xf32, #tpu.memory_space<vmem>>, %arg6: memref<16x128xbf16, #tpu.memory_space<vmem>>, %arg7: memref<2x4x128xf32, #tpu.memory_space<vmem>>, %arg8: memref<192x128xf32, #tpu.memory_space<vmem>>) attributes {dimension_semantics = [#tpu.dimension_semantics<parallel>], iteration_bounds = array<i64: 1>, scalar_prefetch = 0 : i64, scratch_operands = 1 : i64, tpu.core_type = #tpu.core_type<tc>, window_params = [{transform_indices = @transform_0, window_bounds = array<i64: 2, 4, 128>}, {pipeline_mode = #tpu.pipeline_mode<synchronous>, transform_indices = @transform_1, window_bounds = array<i64: 192, 4>}, {pipeline_mode = #tpu.pipeline_mode<synchronous>, transform_indices = @transform_2, window_bounds = array<i64: 4, 64>}, {pipeline_mode = #tpu.pipeline_mode<synchronous>, transform_indices = @transform_3, window_bounds = array<i64: 4, 7>}, {pipeline_mode = #tpu.pipeline_mode<synchronous>, transform_indices = @transform_4, window_bounds = array<i64: 128, 128>}, {pipeline_mode = #tpu.pipeline_mode<synchronous>, transform_indices = @transform_5, window_bounds = array<i64: 16, 128>}, {transform_indices = @transform_6, window_bounds = array<i64: 2, 4, 128>}]} {
    %c0 = arith.constant 0 : index
    %c0_0 = arith.constant 0 : index
    %0 = vector.load %arg5[%c0, %c0_0] : memref<128x128xf32, #tpu.memory_space<vmem>>, vector<128x128xf32>
    %c0_1 = arith.constant 0 : index
    %c0_2 = arith.constant 0 : index
    %1 = vector.load %arg6[%c0_1, %c0_2] : memref<16x128xbf16, #tpu.memory_space<vmem>>, vector<16x128xbf16>
    %c0_3 = arith.constant 0 : index
    %c0_4 = arith.constant 0 : index
    %2 = vector.load %arg3[%c0_3, %c0_4] : memref<4x64xf32, #tpu.memory_space<vmem>>, vector<4x64xf32>
    %c0_5 = arith.constant 0 : index
    %c0_6 = arith.constant 0 : index
    %3 = vector.load %arg4[%c0_5, %c0_6] : memref<4x7xf32, #tpu.memory_space<vmem>>, vector<4x7xf32>
    %4 = vector.extract_strided_slice %3 {offsets = [0, 0], sizes = [4, 1], strides = [1, 1]} : vector<4x7xf32> to vector<4x1xf32>
    %5 = vector.extract_strided_slice %3 {offsets = [0, 1], sizes = [4, 1], strides = [1, 1]} : vector<4x7xf32> to vector<4x1xf32>
    %6 = vector.extract_strided_slice %3 {offsets = [0, 2], sizes = [4, 1], strides = [1, 1]} : vector<4x7xf32> to vector<4x1xf32>
    %c0_7 = arith.constant 0 : index
    %c0_8 = arith.constant 0 : index
    %7 = vector.load %arg2[%c0_7, %c0_8] : memref<192x4xf32, #tpu.memory_space<vmem>>, vector<192x4xf32>
    %c0_9 = arith.constant 0 : index
    %c0_10 = arith.constant 0 : index
    %c0_11 = arith.constant 0 : index
    %8 = vector.load %arg1[%c0_9, %c0_10, %c0_11] : memref<2x4x128xf32, #tpu.memory_space<vmem>>, vector<1x4x128xf32>
    %9 = vector.shape_cast %8 : vector<1x4x128xf32> to vector<4x128xf32>
    %cst = arith.constant dense<0.000000e+00> : vector<192x128xf32>
    %10 = tpu.matmul %7, %9, %cst {dimension_numbers = #tpu.dot_dimension_numbers<[1], [0], [0], [1], [0, 0, 1, 1], [], []>} : vector<192x4xf32>, vector<4x128xf32>, vector<192x128xf32> -> vector<192x128xf32>
    %c0_12 = arith.constant 0 : index
    %c0_13 = arith.constant 0 : index
    %11 = vector.load %arg8[%c0_12, %c0_13] : memref<192x128xf32, #tpu.memory_space<vmem>>, vector<192x128xf32>
    tpu.vector_store %arg8[%c0_12, %c0_13], %10 {strides = array<i32>} : memref<192x128xf32, #tpu.memory_space<vmem>>, vector<192x128xf32>,
    %cst_14 = arith.constant 0.000000e+00 : f32
    %12 = vector.broadcast %cst_14 : f32 to vector<4x128xf32>
    %cst_15 = arith.constant 0.000000e+00 : f32
    %13 = vector.broadcast %cst_15 : f32 to vector<4x128xf32>
    %c0_16 = arith.constant 0 : index
    %c0_17 = arith.constant 0 : index
    %14 = vector.load %arg8[%c0_16, %c0_17] : memref<192x128xf32, #tpu.memory_space<vmem>>, vector<16x128xf32>
    %c64 = arith.constant 64 : index
    %c0_18 = arith.constant 0 : index
    %15 = vector.load %arg8[%c64, %c0_18] : memref<192x128xf32, #tpu.memory_space<vmem>>, vector<16x128xf32>
    %c128 = arith.constant 128 : index
    %c0_19 = arith.constant 0 : index
    %16 = vector.load %arg8[%c128, %c0_19] : memref<192x128xf32, #tpu.memory_space<vmem>>, vector<16x128xf32>
    %cst_20 = arith.constant dense<0xFF800000> : vector<128xf32>
    %17 = vector.multi_reduction <maximumf>, %14, %cst_20 [0] : vector<16x128xf32> to vector<128xf32>
    %18 = vector.shape_cast %17 : vector<128xf32> to vector<1x128xf32>
    %19 = vector.broadcast %18 : vector<1x128xf32> to vector<16x128xf32>
    %20 = arith.subf %14, %19 : vector<16x128xf32>
    %21 = math.exp %20 : vector<16x128xf32>
    %cst_21 = arith.constant dense<0.000000e+00> : vector<128xf32>
    %22 = vector.multi_reduction <add>, %21, %cst_21 [0] : vector<16x128xf32> to vector<128xf32>
    %23 = vector.shape_cast %22 : vector<128xf32> to vector<1x128xf32>
    %24 = tpu.reciprocal %23 {approx = true} : vector<1x128xf32> -> vector<1x128xf32>
    %cst_22 = arith.constant 2.500000e-01 : f32
    %25 = vector.broadcast %cst_22 : f32 to vector<1x128xf32>
    %26 = arith.mulf %25, %24 : vector<1x128xf32>
    %27 = vector.broadcast %26 : vector<1x128xf32> to vector<16x128xf32>
    %28 = arith.mulf %21, %27 : vector<16x128xf32>
    %cst_23 = arith.constant dense<0xFF800000> : vector<16xf32>
    %29 = vector.multi_reduction <maximumf>, %15, %cst_23 [1] : vector<16x128xf32> to vector<16xf32>
    %30 = vector.shape_cast %29 : vector<16xf32> to vector<16x1xf32>
    %31 = vector.broadcast %30 : vector<16x1xf32> to vector<16x128xf32>
    %32 = arith.subf %15, %31 : vector<16x128xf32>
    %33 = math.exp %32 : vector<16x128xf32>
    %cst_24 = arith.constant dense<0.000000e+00> : vector<16x128xf32>
    %34 = tpu.matmul %33, %0, %cst_24 {dimension_numbers = #tpu.dot_dimension_numbers<[1], [0], [0], [1], [0, 0, 1, 1], [], []>} : vector<16x128xf32>, vector<128x128xf32>, vector<16x128xf32> -> vector<16x128xf32>
    %35 = tpu.reciprocal %34 {approx = true} : vector<16x128xf32> -> vector<16x128xf32>
    %36 = arith.mulf %33, %35 : vector<16x128xf32>
    %37 = arith.truncf %28 : vector<16x128xf32> to vector<16x128xbf16>
    %38 = arith.truncf %36 : vector<16x128xf32> to vector<16x128xbf16>
    %cst_25 = arith.constant dense<0.000000e+00> : vector<128x128xf32>
    %39 = tpu.matmul %37, %38, %cst_25 {dimension_numbers = #tpu.dot_dimension_numbers<[0], [0], [1], [1], [0, 1, 1, 1], [], []>} : vector<16x128xbf16>, vector<16x128xbf16>, vector<128x128xf32> -> vector<128x128xf32>
    %40 = arith.mulf %39, %0 : vector<128x128xf32>
    %41 = arith.truncf %40 : vector<128x128xf32> to vector<128x128xbf16>
    %cst_26 = arith.constant dense<0.000000e+00> : vector<16x128xf32>
    %42 = tpu.matmul %1, %41, %cst_26 {dimension_numbers = #tpu.dot_dimension_numbers<[1], [0], [0], [1], [0, 0, 1, 1], [], []>} : vector<16x128xbf16>, vector<128x128xbf16>, vector<16x128xf32> -> vector<16x128xf32>
    %43 = arith.truncf %42 : vector<16x128xf32> to vector<16x128xbf16>
    %44 = tpu.concatenate %16, %16, %16, %16, %16, %16, %16, %16 in 0 : vector<16x128xf32>, vector<16x128xf32>, vector<16x128xf32>, vector<16x128xf32>, vector<16x128xf32>, vector<16x128xf32>, vector<16x128xf32>, vector<16x128xf32> -> vector<128x128xf32>
    %45 = arith.mulf %44, %0 : vector<128x128xf32>
    %46 = arith.truncf %45 : vector<128x128xf32> to vector<128x128xbf16>
    %cst_27 = arith.constant dense<0.000000e+00> : vector<16x128xf32>
    %47 = tpu.matmul %43, %46, %cst_27 {dimension_numbers = #tpu.dot_dimension_numbers<[1], [1], [0], [0], [0, 0, 1, 0], [], []>} : vector<16x128xbf16>, vector<128x128xbf16>, vector<16x128xf32> -> vector<16x128xf32>
    %48 = vector.extract_strided_slice %2 {offsets = [0, 0], sizes = [4, 16], strides = [1, 1]} : vector<4x64xf32> to vector<4x16xf32>
    %cst_28 = arith.constant dense<0.000000e+00> : vector<4x128xf32>
    %49 = tpu.matmul %48, %47, %cst_28 {dimension_numbers = #tpu.dot_dimension_numbers<[1], [0], [0], [1], [0, 0, 1, 1], [], []>} : vector<4x16xf32>, vector<16x128xf32>, vector<4x128xf32> -> vector<4x128xf32>
    %50 = arith.addf %12, %49 : vector<4x128xf32>
    %cst_29 = arith.constant dense<0xFF800000> : vector<128xf32>
    %51 = vector.multi_reduction <maximumf>, %47, %cst_29 [0] : vector<16x128xf32> to vector<128xf32>
    %52 = vector.shape_cast %51 : vector<128xf32> to vector<1x128xf32>
    %53 = vector.extract_strided_slice %3 {offsets = [0, 3], sizes = [4, 1], strides = [1, 1]} : vector<4x7xf32> to vector<4x1xf32>
    %54 = vector.broadcast %53 : vector<4x1xf32> to vector<4x128xf32>
    %55 = vector.broadcast %52 : vector<1x128xf32> to vector<4x128xf32>
    %56 = arith.mulf %54, %55 : vector<4x128xf32>
    %57 = arith.addf %13, %56 : vector<4x128xf32>
    %c16 = arith.constant 16 : index
    %c0_30 = arith.constant 0 : index
    %58 = vector.load %arg8[%c16, %c0_30] : memref<192x128xf32, #tpu.memory_space<vmem>>, vector<16x128xf32>
    %c80 = arith.constant 80 : index
    %c0_31 = arith.constant 0 : index
    %59 = vector.load %arg8[%c80, %c0_31] : memref<192x128xf32, #tpu.memory_space<vmem>>, vector<16x128xf32>
    %c144 = arith.constant 144 : index
    %c0_32 = arith.constant 0 : index
    %60 = vector.load %arg8[%c144, %c0_32] : memref<192x128xf32, #tpu.memory_space<vmem>>, vector<16x128xf32>
    %cst_33 = arith.constant dense<0xFF800000> : vector<128xf32>
    %61 = vector.multi_reduction <maximumf>, %58, %cst_33 [0] : vector<16x128xf32> to vector<128xf32>
    %62 = vector.shape_cast %61 : vector<128xf32> to vector<1x128xf32>
    %63 = vector.broadcast %62 : vector<1x128xf32> to vector<16x128xf32>
    %64 = arith.subf %58, %63 : vector<16x128xf32>
    %65 = math.exp %64 : vector<16x128xf32>
    %cst_34 = arith.constant dense<0.000000e+00> : vector<128xf32>
    %66 = vector.multi_reduction <add>, %65, %cst_34 [0] : vector<16x128xf32> to vector<128xf32>
    %67 = vector.shape_cast %66 : vector<128xf32> to vector<1x128xf32>
    %68 = tpu.reciprocal %67 {approx = true} : vector<1x128xf32> -> vector<1x128xf32>
    %cst_35 = arith.constant 2.500000e-01 : f32
    %69 = vector.broadcast %cst_35 : f32 to vector<1x128xf32>
    %70 = arith.mulf %69, %68 : vector<1x128xf32>
    %71 = vector.broadcast %70 : vector<1x128xf32> to vector<16x128xf32>
    %72 = arith.mulf %65, %71 : vector<16x128xf32>
    %cst_36 = arith.constant dense<0xFF800000> : vector<16xf32>
    %73 = vector.multi_reduction <maximumf>, %59, %cst_36 [1] : vector<16x128xf32> to vector<16xf32>
    %74 = vector.shape_cast %73 : vector<16xf32> to vector<16x1xf32>
    %75 = vector.broadcast %74 : vector<16x1xf32> to vector<16x128xf32>
    %76 = arith.subf %59, %75 : vector<16x128xf32>
    %77 = math.exp %76 : vector<16x128xf32>
    %cst_37 = arith.constant dense<0.000000e+00> : vector<16x128xf32>
    %78 = tpu.matmul %77, %0, %cst_37 {dimension_numbers = #tpu.dot_dimension_numbers<[1], [0], [0], [1], [0, 0, 1, 1], [], []>} : vector<16x128xf32>, vector<128x128xf32>, vector<16x128xf32> -> vector<16x128xf32>
    %79 = tpu.reciprocal %78 {approx = true} : vector<16x128xf32> -> vector<16x128xf32>
    %80 = arith.mulf %77, %79 : vector<16x128xf32>
    %81 = arith.truncf %72 : vector<16x128xf32> to vector<16x128xbf16>
    %82 = arith.truncf %80 : vector<16x128xf32> to vector<16x128xbf16>
    %cst_38 = arith.constant dense<0.000000e+00> : vector<128x128xf32>
    %83 = tpu.matmul %81, %82, %cst_38 {dimension_numbers = #tpu.dot_dimension_numbers<[0], [0], [1], [1], [0, 1, 1, 1], [], []>} : vector<16x128xbf16>, vector<16x128xbf16>, vector<128x128xf32> -> vector<128x128xf32>
    %84 = arith.mulf %83, %0 : vector<128x128xf32>
    %85 = arith.truncf %84 : vector<128x128xf32> to vector<128x128xbf16>
    %cst_39 = arith.constant dense<0.000000e+00> : vector<16x128xf32>
    %86 = tpu.matmul %1, %85, %cst_39 {dimension_numbers = #tpu.dot_dimension_numbers<[1], [0], [0], [1], [0, 0, 1, 1], [], []>} : vector<16x128xbf16>, vector<128x128xbf16>, vector<16x128xf32> -> vector<16x128xf32>
    %87 = arith.truncf %86 : vector<16x128xf32> to vector<16x128xbf16>
    %88 = tpu.concatenate %60, %60, %60, %60, %60, %60, %60, %60 in 0 : vector<16x128xf32>, vector<16x128xf32>, vector<16x128xf32>, vector<16x128xf32>, vector<16x128xf32>, vector<16x128xf32>, vector<16x128xf32>, vector<16x128xf32> -> vector<128x128xf32>
    %89 = arith.mulf %88, %0 : vector<128x128xf32>
    %90 = arith.truncf %89 : vector<128x128xf32> to vector<128x128xbf16>
    %cst_40 = arith.constant dense<0.000000e+00> : vector<16x128xf32>
    %91 = tpu.matmul %87, %90, %cst_40 {dimension_numbers = #tpu.dot_dimension_numbers<[1], [1], [0], [0], [0, 0, 1, 0], [], []>} : vector<16x128xbf16>, vector<128x128xbf16>, vector<16x128xf32> -> vector<16x128xf32>
    %92 = vector.extract_strided_slice %2 {offsets = [0, 16], sizes = [4, 16], strides = [1, 1]} : vector<4x64xf32> to vector<4x16xf32>
    %cst_41 = arith.constant dense<0.000000e+00> : vector<4x128xf32>
    %93 = tpu.matmul %92, %91, %cst_41 {dimension_numbers = #tpu.dot_dimension_numbers<[1], [0], [0], [1], [0, 0, 1, 1], [], []>} : vector<4x16xf32>, vector<16x128xf32>, vector<4x128xf32> -> vector<4x128xf32>
    %94 = arith.addf %50, %93 : vector<4x128xf32>
    %cst_42 = arith.constant dense<0xFF800000> : vector<128xf32>
    %95 = vector.multi_reduction <maximumf>, %91, %cst_42 [0] : vector<16x128xf32> to vector<128xf32>
    %96 = vector.shape_cast %95 : vector<128xf32> to vector<1x128xf32>
    %97 = vector.extract_strided_slice %3 {offsets = [0, 4], sizes = [4, 1], strides = [1, 1]} : vector<4x7xf32> to vector<4x1xf32>
    %98 = vector.broadcast %97 : vector<4x1xf32> to vector<4x128xf32>
    %99 = vector.broadcast %96 : vector<1x128xf32> to vector<4x128xf32>
    %100 = arith.mulf %98, %99 : vector<4x128xf32>
    %101 = arith.addf %57, %100 : vector<4x128xf32>
    %c32 = arith.constant 32 : index
    %c0_43 = arith.constant 0 : index
    %102 = vector.load %arg8[%c32, %c0_43] : memref<192x128xf32, #tpu.memory_space<vmem>>, vector<16x128xf32>
    %c96 = arith.constant 96 : index
    %c0_44 = arith.constant 0 : index
    %103 = vector.load %arg8[%c96, %c0_44] : memref<192x128xf32, #tpu.memory_space<vmem>>, vector<16x128xf32>
    %c160 = arith.constant 160 : index
    %c0_45 = arith.constant 0 : index
    %104 = vector.load %arg8[%c160, %c0_45] : memref<192x128xf32, #tpu.memory_space<vmem>>, vector<16x128xf32>
    %cst_46 = arith.constant dense<0xFF800000> : vector<128xf32>
    %105 = vector.multi_reduction <maximumf>, %102, %cst_46 [0] : vector<16x128xf32> to vector<128xf32>
    %106 = vector.shape_cast %105 : vector<128xf32> to vector<1x128xf32>
    %107 = vector.broadcast %106 : vector<1x128xf32> to vector<16x128xf32>
    %108 = arith.subf %102, %107 : vector<16x128xf32>
    %109 = math.exp %108 : vector<16x128xf32>
    %cst_47 = arith.constant dense<0.000000e+00> : vector<128xf32>
    %110 = vector.multi_reduction <add>, %109, %cst_47 [0] : vector<16x128xf32> to vector<128xf32>
    %111 = vector.shape_cast %110 : vector<128xf32> to vector<1x128xf32>
    %112 = tpu.reciprocal %111 {approx = true} : vector<1x128xf32> -> vector<1x128xf32>
    %cst_48 = arith.constant 2.500000e-01 : f32
    %113 = vector.broadcast %cst_48 : f32 to vector<1x128xf32>
    %114 = arith.mulf %113, %112 : vector<1x128xf32>
    %115 = vector.broadcast %114 : vector<1x128xf32> to vector<16x128xf32>
    %116 = arith.mulf %109, %115 : vector<16x128xf32>
    %cst_49 = arith.constant dense<0xFF800000> : vector<16xf32>
    %117 = vector.multi_reduction <maximumf>, %103, %cst_49 [1] : vector<16x128xf32> to vector<16xf32>
    %118 = vector.shape_cast %117 : vector<16xf32> to vector<16x1xf32>
    %119 = vector.broadcast %118 : vector<16x1xf32> to vector<16x128xf32>
    %120 = arith.subf %103, %119 : vector<16x128xf32>
    %121 = math.exp %120 : vector<16x128xf32>
    %cst_50 = arith.constant dense<0.000000e+00> : vector<16x128xf32>
    %122 = tpu.matmul %121, %0, %cst_50 {dimension_numbers = #tpu.dot_dimension_numbers<[1], [0], [0], [1], [0, 0, 1, 1], [], []>} : vector<16x128xf32>, vector<128x128xf32>, vector<16x128xf32> -> vector<16x128xf32>
    %123 = tpu.reciprocal %122 {approx = true} : vector<16x128xf32> -> vector<16x128xf32>
    %124 = arith.mulf %121, %123 : vector<16x128xf32>
    %125 = arith.truncf %116 : vector<16x128xf32> to vector<16x128xbf16>
    %126 = arith.truncf %124 : vector<16x128xf32> to vector<16x128xbf16>
    %cst_51 = arith.constant dense<0.000000e+00> : vector<128x128xf32>
    %127 = tpu.matmul %125, %126, %cst_51 {dimension_numbers = #tpu.dot_dimension_numbers<[0], [0], [1], [1], [0, 1, 1, 1], [], []>} : vector<16x128xbf16>, vector<16x128xbf16>, vector<128x128xf32> -> vector<128x128xf32>
    %128 = arith.mulf %127, %0 : vector<128x128xf32>
    %129 = arith.truncf %128 : vector<128x128xf32> to vector<128x128xbf16>
    %cst_52 = arith.constant dense<0.000000e+00> : vector<16x128xf32>
    %130 = tpu.matmul %1, %129, %cst_52 {dimension_numbers = #tpu.dot_dimension_numbers<[1], [0], [0], [1], [0, 0, 1, 1], [], []>} : vector<16x128xbf16>, vector<128x128xbf16>, vector<16x128xf32> -> vector<16x128xf32>
    %131 = arith.truncf %130 : vector<16x128xf32> to vector<16x128xbf16>
    %132 = tpu.concatenate %104, %104, %104, %104, %104, %104, %104, %104 in 0 : vector<16x128xf32>, vector<16x128xf32>, vector<16x128xf32>, vector<16x128xf32>, vector<16x128xf32>, vector<16x128xf32>, vector<16x128xf32>, vector<16x128xf32> -> vector<128x128xf32>
    %133 = arith.mulf %132, %0 : vector<128x128xf32>
    %134 = arith.truncf %133 : vector<128x128xf32> to vector<128x128xbf16>
    %cst_53 = arith.constant dense<0.000000e+00> : vector<16x128xf32>
    %135 = tpu.matmul %131, %134, %cst_53 {dimension_numbers = #tpu.dot_dimension_numbers<[1], [1], [0], [0], [0, 0, 1, 0], [], []>} : vector<16x128xbf16>, vector<128x128xbf16>, vector<16x128xf32> -> vector<16x128xf32>
    %136 = vector.extract_strided_slice %2 {offsets = [0, 32], sizes = [4, 16], strides = [1, 1]} : vector<4x64xf32> to vector<4x16xf32>
    %cst_54 = arith.constant dense<0.000000e+00> : vector<4x128xf32>
    %137 = tpu.matmul %136, %135, %cst_54 {dimension_numbers = #tpu.dot_dimension_numbers<[1], [0], [0], [1], [0, 0, 1, 1], [], []>} : vector<4x16xf32>, vector<16x128xf32>, vector<4x128xf32> -> vector<4x128xf32>
    %138 = arith.addf %94, %137 : vector<4x128xf32>
    %cst_55 = arith.constant dense<0xFF800000> : vector<128xf32>
    %139 = vector.multi_reduction <maximumf>, %135, %cst_55 [0] : vector<16x128xf32> to vector<128xf32>
    %140 = vector.shape_cast %139 : vector<128xf32> to vector<1x128xf32>
    %141 = vector.extract_strided_slice %3 {offsets = [0, 5], sizes = [4, 1], strides = [1, 1]} : vector<4x7xf32> to vector<4x1xf32>
    %142 = vector.broadcast %141 : vector<4x1xf32> to vector<4x128xf32>
    %143 = vector.broadcast %140 : vector<1x128xf32> to vector<4x128xf32>
    %144 = arith.mulf %142, %143 : vector<4x128xf32>
    %145 = arith.addf %101, %144 : vector<4x128xf32>
    %c48 = arith.constant 48 : index
    %c0_56 = arith.constant 0 : index
    %146 = vector.load %arg8[%c48, %c0_56] : memref<192x128xf32, #tpu.memory_space<vmem>>, vector<16x128xf32>
    %c112 = arith.constant 112 : index
    %c0_57 = arith.constant 0 : index
    %147 = vector.load %arg8[%c112, %c0_57] : memref<192x128xf32, #tpu.memory_space<vmem>>, vector<16x128xf32>
    %c176 = arith.constant 176 : index
    %c0_58 = arith.constant 0 : index
    %148 = vector.load %arg8[%c176, %c0_58] : memref<192x128xf32, #tpu.memory_space<vmem>>, vector<16x128xf32>
    %cst_59 = arith.constant dense<0xFF800000> : vector<128xf32>
    %149 = vector.multi_reduction <maximumf>, %146, %cst_59 [0] : vector<16x128xf32> to vector<128xf32>
    %150 = vector.shape_cast %149 : vector<128xf32> to vector<1x128xf32>
    %151 = vector.broadcast %150 : vector<1x128xf32> to vector<16x128xf32>
    %152 = arith.subf %146, %151 : vector<16x128xf32>
    %153 = math.exp %152 : vector<16x128xf32>
    %cst_60 = arith.constant dense<0.000000e+00> : vector<128xf32>
    %154 = vector.multi_reduction <add>, %153, %cst_60 [0] : vector<16x128xf32> to vector<128xf32>
    %155 = vector.shape_cast %154 : vector<128xf32> to vector<1x128xf32>
    %156 = tpu.reciprocal %155 {approx = true} : vector<1x128xf32> -> vector<1x128xf32>
    %cst_61 = arith.constant 2.500000e-01 : f32
    %157 = vector.broadcast %cst_61 : f32 to vector<1x128xf32>
    %158 = arith.mulf %157, %156 : vector<1x128xf32>
    %159 = vector.broadcast %158 : vector<1x128xf32> to vector<16x128xf32>
    %160 = arith.mulf %153, %159 : vector<16x128xf32>
    %cst_62 = arith.constant dense<0xFF800000> : vector<16xf32>
    %161 = vector.multi_reduction <maximumf>, %147, %cst_62 [1] : vector<16x128xf32> to vector<16xf32>
    %162 = vector.shape_cast %161 : vector<16xf32> to vector<16x1xf32>
    %163 = vector.broadcast %162 : vector<16x1xf32> to vector<16x128xf32>
    %164 = arith.subf %147, %163 : vector<16x128xf32>
    %165 = math.exp %164 : vector<16x128xf32>
    %cst_63 = arith.constant dense<0.000000e+00> : vector<16x128xf32>
    %166 = tpu.matmul %165, %0, %cst_63 {dimension_numbers = #tpu.dot_dimension_numbers<[1], [0], [0], [1], [0, 0, 1, 1], [], []>} : vector<16x128xf32>, vector<128x128xf32>, vector<16x128xf32> -> vector<16x128xf32>
    %167 = tpu.reciprocal %166 {approx = true} : vector<16x128xf32> -> vector<16x128xf32>
    %168 = arith.mulf %165, %167 : vector<16x128xf32>
    %169 = arith.truncf %160 : vector<16x128xf32> to vector<16x128xbf16>
    %170 = arith.truncf %168 : vector<16x128xf32> to vector<16x128xbf16>
    %cst_64 = arith.constant dense<0.000000e+00> : vector<128x128xf32>
    %171 = tpu.matmul %169, %170, %cst_64 {dimension_numbers = #tpu.dot_dimension_numbers<[0], [0], [1], [1], [0, 1, 1, 1], [], []>} : vector<16x128xbf16>, vector<16x128xbf16>, vector<128x128xf32> -> vector<128x128xf32>
    %172 = arith.mulf %171, %0 : vector<128x128xf32>
    %173 = arith.truncf %172 : vector<128x128xf32> to vector<128x128xbf16>
    %cst_65 = arith.constant dense<0.000000e+00> : vector<16x128xf32>
    %174 = tpu.matmul %1, %173, %cst_65 {dimension_numbers = #tpu.dot_dimension_numbers<[1], [0], [0], [1], [0, 0, 1, 1], [], []>} : vector<16x128xbf16>, vector<128x128xbf16>, vector<16x128xf32> -> vector<16x128xf32>
    %175 = arith.truncf %174 : vector<16x128xf32> to vector<16x128xbf16>
    %176 = tpu.concatenate %148, %148, %148, %148, %148, %148, %148, %148 in 0 : vector<16x128xf32>, vector<16x128xf32>, vector<16x128xf32>, vector<16x128xf32>, vector<16x128xf32>, vector<16x128xf32>, vector<16x128xf32>, vector<16x128xf32> -> vector<128x128xf32>
    %177 = arith.mulf %176, %0 : vector<128x128xf32>
    %178 = arith.truncf %177 : vector<128x128xf32> to vector<128x128xbf16>
    %cst_66 = arith.constant dense<0.000000e+00> : vector<16x128xf32>
    %179 = tpu.matmul %175, %178, %cst_66 {dimension_numbers = #tpu.dot_dimension_numbers<[1], [1], [0], [0], [0, 0, 1, 0], [], []>} : vector<16x128xbf16>, vector<128x128xbf16>, vector<16x128xf32> -> vector<16x128xf32>
    %180 = vector.extract_strided_slice %2 {offsets = [0, 48], sizes = [4, 16], strides = [1, 1]} : vector<4x64xf32> to vector<4x16xf32>
    %cst_67 = arith.constant dense<0.000000e+00> : vector<4x128xf32>
    %181 = tpu.matmul %180, %179, %cst_67 {dimension_numbers = #tpu.dot_dimension_numbers<[1], [0], [0], [1], [0, 0, 1, 1], [], []>} : vector<4x16xf32>, vector<16x128xf32>, vector<4x128xf32> -> vector<4x128xf32>
    %182 = arith.addf %138, %181 : vector<4x128xf32>
    %cst_68 = arith.constant dense<0xFF800000> : vector<128xf32>
    %183 = vector.multi_reduction <maximumf>, %179, %cst_68 [0] : vector<16x128xf32> to vector<128xf32>
    %184 = vector.shape_cast %183 : vector<128xf32> to vector<1x128xf32>
    %185 = vector.extract_strided_slice %3 {offsets = [0, 6], sizes = [4, 1], strides = [1, 1]} : vector<4x7xf32> to vector<4x1xf32>
    %186 = vector.broadcast %185 : vector<4x1xf32> to vector<4x128xf32>
    %187 = vector.broadcast %184 : vector<1x128xf32> to vector<4x128xf32>
    %188 = arith.mulf %186, %187 : vector<4x128xf32>
    %189 = arith.addf %145, %188 : vector<4x128xf32>
    %190 = arith.subf %182, %189 : vector<4x128xf32>
    %191 = vector.broadcast %4 : vector<4x1xf32> to vector<4x128xf32>
    %192 = arith.addf %190, %191 : vector<4x128xf32>
    %cst_69 = arith.constant dense<0.000000e+00> : vector<128xf32>
    %193 = vector.multi_reduction <add>, %192, %cst_69 [0] : vector<4x128xf32> to vector<128xf32>
    %194 = vector.shape_cast %193 : vector<128xf32> to vector<1x128xf32>
    %195 = arith.mulf %192, %192 : vector<4x128xf32>
    %cst_70 = arith.constant dense<0.000000e+00> : vector<128xf32>
    %196 = vector.multi_reduction <add>, %195, %cst_70 [0] : vector<4x128xf32> to vector<128xf32>
    %197 = vector.shape_cast %196 : vector<128xf32> to vector<1x128xf32>
    %198 = tpu.concatenate %194, %197 in 0 : vector<1x128xf32>, vector<1x128xf32> -> vector<2x128xf32>
    %cst_71 = arith.constant dense<0.000000e+00> : vector<2x128xf32>
    %199 = tpu.matmul %198, %0, %cst_71 {dimension_numbers = #tpu.dot_dimension_numbers<[1], [0], [0], [1], [0, 0, 1, 1], [], []>} : vector<2x128xf32>, vector<128x128xf32>, vector<2x128xf32> -> vector<2x128xf32>
    %200 = vector.extract_strided_slice %199 {offsets = [0, 0], sizes = [1, 128], strides = [1, 1]} : vector<2x128xf32> to vector<1x128xf32>
    %cst_72 = arith.constant 1.562500e-02 : f32
    %201 = vector.broadcast %cst_72 : f32 to vector<1x128xf32>
    %202 = arith.mulf %200, %201 : vector<1x128xf32>
    %203 = vector.extract_strided_slice %199 {offsets = [1, 0], sizes = [1, 128], strides = [1, 1]} : vector<2x128xf32> to vector<1x128xf32>
    %cst_73 = arith.constant 1.562500e-02 : f32
    %204 = vector.broadcast %cst_73 : f32 to vector<1x128xf32>
    %205 = arith.mulf %203, %204 : vector<1x128xf32>
    %206 = arith.mulf %202, %202 : vector<1x128xf32>
    %207 = arith.subf %205, %206 : vector<1x128xf32>
    %cst_74 = arith.constant 9.99999974E-6 : f32
    %208 = vector.broadcast %cst_74 : f32 to vector<1x128xf32>
    %209 = arith.addf %207, %208 : vector<1x128xf32>
    %210 = math.rsqrt %209 : vector<1x128xf32>
    %211 = vector.broadcast %202 : vector<1x128xf32> to vector<4x128xf32>
    %212 = arith.subf %192, %211 : vector<4x128xf32>
    %213 = vector.broadcast %210 : vector<1x128xf32> to vector<4x128xf32>
    %214 = arith.mulf %212, %213 : vector<4x128xf32>
    %215 = vector.broadcast %5 : vector<4x1xf32> to vector<4x128xf32>
    %216 = arith.mulf %214, %215 : vector<4x128xf32>
    %217 = vector.broadcast %6 : vector<4x1xf32> to vector<4x128xf32>
    %218 = arith.addf %216, %217 : vector<4x128xf32>
    %c0_75 = arith.constant 0 : index
    %c0_76 = arith.constant 0 : index
    %c0_77 = arith.constant 0 : index
    %219 = vector.load %arg7[%c0_75, %c0_76, %c0_77] : memref<2x4x128xf32, #tpu.memory_space<vmem>>, vector<1x4x128xf32>
    %220 = vector.shape_cast %219 : vector<1x4x128xf32> to vector<4x128xf32>
    %221 = vector.shape_cast %218 : vector<4x128xf32> to vector<1x4x128xf32>
    tpu.vector_store %arg7[%c0_75, %c0_76, %c0_77], %221 {strides = array<i32>} : memref<2x4x128xf32, #tpu.memory_space<vmem>>, vector<1x4x128xf32>,
    %c0_78 = arith.constant 0 : index
    %c0_79 = arith.constant 0 : index
    %222 = vector.load %arg2[%c0_78, %c0_79] : memref<192x4xf32, #tpu.memory_space<vmem>>, vector<192x4xf32>
    %c1 = arith.constant 1 : index
    %c0_80 = arith.constant 0 : index
    %c0_81 = arith.constant 0 : index
    %223 = vector.load %arg1[%c1, %c0_80, %c0_81] : memref<2x4x128xf32, #tpu.memory_space<vmem>>, vector<1x4x128xf32>
    %224 = vector.shape_cast %223 : vector<1x4x128xf32> to vector<4x128xf32>
    %cst_82 = arith.constant dense<0.000000e+00> : vector<192x128xf32>
    %225 = tpu.matmul %222, %224, %cst_82 {dimension_numbers = #tpu.dot_dimension_numbers<[1], [0], [0], [1], [0, 0, 1, 1], [], []>} : vector<192x4xf32>, vector<4x128xf32>, vector<192x128xf32> -> vector<192x128xf32>
    %c0_83 = arith.constant 0 : index
    %c0_84 = arith.constant 0 : index
    %226 = vector.load %arg8[%c0_83, %c0_84] : memref<192x128xf32, #tpu.memory_space<vmem>>, vector<192x128xf32>
    tpu.vector_store %arg8[%c0_83, %c0_84], %225 {strides = array<i32>} : memref<192x128xf32, #tpu.memory_space<vmem>>, vector<192x128xf32>,
    %cst_85 = arith.constant 0.000000e+00 : f32
    %227 = vector.broadcast %cst_85 : f32 to vector<4x128xf32>
    %cst_86 = arith.constant 0.000000e+00 : f32
    %228 = vector.broadcast %cst_86 : f32 to vector<4x128xf32>
    %c0_87 = arith.constant 0 : index
    %c0_88 = arith.constant 0 : index
    %229 = vector.load %arg8[%c0_87, %c0_88] : memref<192x128xf32, #tpu.memory_space<vmem>>, vector<16x128xf32>
    %c64_89 = arith.constant 64 : index
    %c0_90 = arith.constant 0 : index
    %230 = vector.load %arg8[%c64_89, %c0_90] : memref<192x128xf32, #tpu.memory_space<vmem>>, vector<16x128xf32>
    %c128_91 = arith.constant 128 : index
    %c0_92 = arith.constant 0 : index
    %231 = vector.load %arg8[%c128_91, %c0_92] : memref<192x128xf32, #tpu.memory_space<vmem>>, vector<16x128xf32>
    %cst_93 = arith.constant dense<0xFF800000> : vector<128xf32>
    %232 = vector.multi_reduction <maximumf>, %229, %cst_93 [0] : vector<16x128xf32> to vector<128xf32>
    %233 = vector.shape_cast %232 : vector<128xf32> to vector<1x128xf32>
    %234 = vector.broadcast %233 : vector<1x128xf32> to vector<16x128xf32>
    %235 = arith.subf %229, %234 : vector<16x128xf32>
    %236 = math.exp %235 : vector<16x128xf32>
    %cst_94 = arith.constant dense<0.000000e+00> : vector<128xf32>
    %237 = vector.multi_reduction <add>, %236, %cst_94 [0] : vector<16x128xf32> to vector<128xf32>
    %238 = vector.shape_cast %237 : vector<128xf32> to vector<1x128xf32>
    %239 = tpu.reciprocal %238 {approx = true} : vector<1x128xf32> -> vector<1x128xf32>
    %cst_95 = arith.constant 2.500000e-01 : f32
    %240 = vector.broadcast %cst_95 : f32 to vector<1x128xf32>
    %241 = arith.mulf %240, %239 : vector<1x128xf32>
    %242 = vector.broadcast %241 : vector<1x128xf32> to vector<16x128xf32>
    %243 = arith.mulf %236, %242 : vector<16x128xf32>
    %cst_96 = arith.constant dense<0xFF800000> : vector<16xf32>
    %244 = vector.multi_reduction <maximumf>, %230, %cst_96 [1] : vector<16x128xf32> to vector<16xf32>
    %245 = vector.shape_cast %244 : vector<16xf32> to vector<16x1xf32>
    %246 = vector.broadcast %245 : vector<16x1xf32> to vector<16x128xf32>
    %247 = arith.subf %230, %246 : vector<16x128xf32>
    %248 = math.exp %247 : vector<16x128xf32>
    %cst_97 = arith.constant dense<0.000000e+00> : vector<16x128xf32>
    %249 = tpu.matmul %248, %0, %cst_97 {dimension_numbers = #tpu.dot_dimension_numbers<[1], [0], [0], [1], [0, 0, 1, 1], [], []>} : vector<16x128xf32>, vector<128x128xf32>, vector<16x128xf32> -> vector<16x128xf32>
    %250 = tpu.reciprocal %249 {approx = true} : vector<16x128xf32> -> vector<16x128xf32>
    %251 = arith.mulf %248, %250 : vector<16x128xf32>
    %252 = arith.truncf %243 : vector<16x128xf32> to vector<16x128xbf16>
    %253 = arith.truncf %251 : vector<16x128xf32> to vector<16x128xbf16>
    %cst_98 = arith.constant dense<0.000000e+00> : vector<128x128xf32>
    %254 = tpu.matmul %252, %253, %cst_98 {dimension_numbers = #tpu.dot_dimension_numbers<[0], [0], [1], [1], [0, 1, 1, 1], [], []>} : vector<16x128xbf16>, vector<16x128xbf16>, vector<128x128xf32> -> vector<128x128xf32>
    %255 = arith.mulf %254, %0 : vector<128x128xf32>
    %256 = arith.truncf %255 : vector<128x128xf32> to vector<128x128xbf16>
    %cst_99 = arith.constant dense<0.000000e+00> : vector<16x128xf32>
    %257 = tpu.matmul %1, %256, %cst_99 {dimension_numbers = #tpu.dot_dimension_numbers<[1], [0], [0], [1], [0, 0, 1, 1], [], []>} : vector<16x128xbf16>, vector<128x128xbf16>, vector<16x128xf32> -> vector<16x128xf32>
    %258 = arith.truncf %257 : vector<16x128xf32> to vector<16x128xbf16>
    %259 = tpu.concatenate %231, %231, %231, %231, %231, %231, %231, %231 in 0 : vector<16x128xf32>, vector<16x128xf32>, vector<16x128xf32>, vector<16x128xf32>, vector<16x128xf32>, vector<16x128xf32>, vector<16x128xf32>, vector<16x128xf32> -> vector<128x128xf32>
    %260 = arith.mulf %259, %0 : vector<128x128xf32>
    %261 = arith.truncf %260 : vector<128x128xf32> to vector<128x128xbf16>
    %cst_100 = arith.constant dense<0.000000e+00> : vector<16x128xf32>
    %262 = tpu.matmul %258, %261, %cst_100 {dimension_numbers = #tpu.dot_dimension_numbers<[1], [1], [0], [0], [0, 0, 1, 0], [], []>} : vector<16x128xbf16>, vector<128x128xbf16>, vector<16x128xf32> -> vector<16x128xf32>
    %263 = vector.extract_strided_slice %2 {offsets = [0, 0], sizes = [4, 16], strides = [1, 1]} : vector<4x64xf32> to vector<4x16xf32>
    %cst_101 = arith.constant dense<0.000000e+00> : vector<4x128xf32>
    %264 = tpu.matmul %263, %262, %cst_101 {dimension_numbers = #tpu.dot_dimension_numbers<[1], [0], [0], [1], [0, 0, 1, 1], [], []>} : vector<4x16xf32>, vector<16x128xf32>, vector<4x128xf32> -> vector<4x128xf32>
    %265 = arith.addf %227, %264 : vector<4x128xf32>
    %cst_102 = arith.constant dense<0xFF800000> : vector<128xf32>
    %266 = vector.multi_reduction <maximumf>, %262, %cst_102 [0] : vector<16x128xf32> to vector<128xf32>
    %267 = vector.shape_cast %266 : vector<128xf32> to vector<1x128xf32>
    %268 = vector.extract_strided_slice %3 {offsets = [0, 3], sizes = [4, 1], strides = [1, 1]} : vector<4x7xf32> to vector<4x1xf32>
    %269 = vector.broadcast %268 : vector<4x1xf32> to vector<4x128xf32>
    %270 = vector.broadcast %267 : vector<1x128xf32> to vector<4x128xf32>
    %271 = arith.mulf %269, %270 : vector<4x128xf32>
    %272 = arith.addf %228, %271 : vector<4x128xf32>
    %c16_103 = arith.constant 16 : index
    %c0_104 = arith.constant 0 : index
    %273 = vector.load %arg8[%c16_103, %c0_104] : memref<192x128xf32, #tpu.memory_space<vmem>>, vector<16x128xf32>
    %c80_105 = arith.constant 80 : index
    %c0_106 = arith.constant 0 : index
    %274 = vector.load %arg8[%c80_105, %c0_106] : memref<192x128xf32, #tpu.memory_space<vmem>>, vector<16x128xf32>
    %c144_107 = arith.constant 144 : index
    %c0_108 = arith.constant 0 : index
    %275 = vector.load %arg8[%c144_107, %c0_108] : memref<192x128xf32, #tpu.memory_space<vmem>>, vector<16x128xf32>
    %cst_109 = arith.constant dense<0xFF800000> : vector<128xf32>
    %276 = vector.multi_reduction <maximumf>, %273, %cst_109 [0] : vector<16x128xf32> to vector<128xf32>
    %277 = vector.shape_cast %276 : vector<128xf32> to vector<1x128xf32>
    %278 = vector.broadcast %277 : vector<1x128xf32> to vector<16x128xf32>
    %279 = arith.subf %273, %278 : vector<16x128xf32>
    %280 = math.exp %279 : vector<16x128xf32>
    %cst_110 = arith.constant dense<0.000000e+00> : vector<128xf32>
    %281 = vector.multi_reduction <add>, %280, %cst_110 [0] : vector<16x128xf32> to vector<128xf32>
    %282 = vector.shape_cast %281 : vector<128xf32> to vector<1x128xf32>
    %283 = tpu.reciprocal %282 {approx = true} : vector<1x128xf32> -> vector<1x128xf32>
    %cst_111 = arith.constant 2.500000e-01 : f32
    %284 = vector.broadcast %cst_111 : f32 to vector<1x128xf32>
    %285 = arith.mulf %284, %283 : vector<1x128xf32>
    %286 = vector.broadcast %285 : vector<1x128xf32> to vector<16x128xf32>
    %287 = arith.mulf %280, %286 : vector<16x128xf32>
    %cst_112 = arith.constant dense<0xFF800000> : vector<16xf32>
    %288 = vector.multi_reduction <maximumf>, %274, %cst_112 [1] : vector<16x128xf32> to vector<16xf32>
    %289 = vector.shape_cast %288 : vector<16xf32> to vector<16x1xf32>
    %290 = vector.broadcast %289 : vector<16x1xf32> to vector<16x128xf32>
    %291 = arith.subf %274, %290 : vector<16x128xf32>
    %292 = math.exp %291 : vector<16x128xf32>
    %cst_113 = arith.constant dense<0.000000e+00> : vector<16x128xf32>
    %293 = tpu.matmul %292, %0, %cst_113 {dimension_numbers = #tpu.dot_dimension_numbers<[1], [0], [0], [1], [0, 0, 1, 1], [], []>} : vector<16x128xf32>, vector<128x128xf32>, vector<16x128xf32> -> vector<16x128xf32>
    %294 = tpu.reciprocal %293 {approx = true} : vector<16x128xf32> -> vector<16x128xf32>
    %295 = arith.mulf %292, %294 : vector<16x128xf32>
    %296 = arith.truncf %287 : vector<16x128xf32> to vector<16x128xbf16>
    %297 = arith.truncf %295 : vector<16x128xf32> to vector<16x128xbf16>
    %cst_114 = arith.constant dense<0.000000e+00> : vector<128x128xf32>
    %298 = tpu.matmul %296, %297, %cst_114 {dimension_numbers = #tpu.dot_dimension_numbers<[0], [0], [1], [1], [0, 1, 1, 1], [], []>} : vector<16x128xbf16>, vector<16x128xbf16>, vector<128x128xf32> -> vector<128x128xf32>
    %299 = arith.mulf %298, %0 : vector<128x128xf32>
    %300 = arith.truncf %299 : vector<128x128xf32> to vector<128x128xbf16>
    %cst_115 = arith.constant dense<0.000000e+00> : vector<16x128xf32>
    %301 = tpu.matmul %1, %300, %cst_115 {dimension_numbers = #tpu.dot_dimension_numbers<[1], [0], [0], [1], [0, 0, 1, 1], [], []>} : vector<16x128xbf16>, vector<128x128xbf16>, vector<16x128xf32> -> vector<16x128xf32>
    %302 = arith.truncf %301 : vector<16x128xf32> to vector<16x128xbf16>
    %303 = tpu.concatenate %275, %275, %275, %275, %275, %275, %275, %275 in 0 : vector<16x128xf32>, vector<16x128xf32>, vector<16x128xf32>, vector<16x128xf32>, vector<16x128xf32>, vector<16x128xf32>, vector<16x128xf32>, vector<16x128xf32> -> vector<128x128xf32>
    %304 = arith.mulf %303, %0 : vector<128x128xf32>
    %305 = arith.truncf %304 : vector<128x128xf32> to vector<128x128xbf16>
    %cst_116 = arith.constant dense<0.000000e+00> : vector<16x128xf32>
    %306 = tpu.matmul %302, %305, %cst_116 {dimension_numbers = #tpu.dot_dimension_numbers<[1], [1], [0], [0], [0, 0, 1, 0], [], []>} : vector<16x128xbf16>, vector<128x128xbf16>, vector<16x128xf32> -> vector<16x128xf32>
    %307 = vector.extract_strided_slice %2 {offsets = [0, 16], sizes = [4, 16], strides = [1, 1]} : vector<4x64xf32> to vector<4x16xf32>
    %cst_117 = arith.constant dense<0.000000e+00> : vector<4x128xf32>
    %308 = tpu.matmul %307, %306, %cst_117 {dimension_numbers = #tpu.dot_dimension_numbers<[1], [0], [0], [1], [0, 0, 1, 1], [], []>} : vector<4x16xf32>, vector<16x128xf32>, vector<4x128xf32> -> vector<4x128xf32>
    %309 = arith.addf %265, %308 : vector<4x128xf32>
    %cst_118 = arith.constant dense<0xFF800000> : vector<128xf32>
    %310 = vector.multi_reduction <maximumf>, %306, %cst_118 [0] : vector<16x128xf32> to vector<128xf32>
    %311 = vector.shape_cast %310 : vector<128xf32> to vector<1x128xf32>
    %312 = vector.extract_strided_slice %3 {offsets = [0, 4], sizes = [4, 1], strides = [1, 1]} : vector<4x7xf32> to vector<4x1xf32>
    %313 = vector.broadcast %312 : vector<4x1xf32> to vector<4x128xf32>
    %314 = vector.broadcast %311 : vector<1x128xf32> to vector<4x128xf32>
    %315 = arith.mulf %313, %314 : vector<4x128xf32>
    %316 = arith.addf %272, %315 : vector<4x128xf32>
    %c32_119 = arith.constant 32 : index
    %c0_120 = arith.constant 0 : index
    %317 = vector.load %arg8[%c32_119, %c0_120] : memref<192x128xf32, #tpu.memory_space<vmem>>, vector<16x128xf32>
    %c96_121 = arith.constant 96 : index
    %c0_122 = arith.constant 0 : index
    %318 = vector.load %arg8[%c96_121, %c0_122] : memref<192x128xf32, #tpu.memory_space<vmem>>, vector<16x128xf32>
    %c160_123 = arith.constant 160 : index
    %c0_124 = arith.constant 0 : index
    %319 = vector.load %arg8[%c160_123, %c0_124] : memref<192x128xf32, #tpu.memory_space<vmem>>, vector<16x128xf32>
    %cst_125 = arith.constant dense<0xFF800000> : vector<128xf32>
    %320 = vector.multi_reduction <maximumf>, %317, %cst_125 [0] : vector<16x128xf32> to vector<128xf32>
    %321 = vector.shape_cast %320 : vector<128xf32> to vector<1x128xf32>
    %322 = vector.broadcast %321 : vector<1x128xf32> to vector<16x128xf32>
    %323 = arith.subf %317, %322 : vector<16x128xf32>
    %324 = math.exp %323 : vector<16x128xf32>
    %cst_126 = arith.constant dense<0.000000e+00> : vector<128xf32>
    %325 = vector.multi_reduction <add>, %324, %cst_126 [0] : vector<16x128xf32> to vector<128xf32>
    %326 = vector.shape_cast %325 : vector<128xf32> to vector<1x128xf32>
    %327 = tpu.reciprocal %326 {approx = true} : vector<1x128xf32> -> vector<1x128xf32>
    %cst_127 = arith.constant 2.500000e-01 : f32
    %328 = vector.broadcast %cst_127 : f32 to vector<1x128xf32>
    %329 = arith.mulf %328, %327 : vector<1x128xf32>
    %330 = vector.broadcast %329 : vector<1x128xf32> to vector<16x128xf32>
    %331 = arith.mulf %324, %330 : vector<16x128xf32>
    %cst_128 = arith.constant dense<0xFF800000> : vector<16xf32>
    %332 = vector.multi_reduction <maximumf>, %318, %cst_128 [1] : vector<16x128xf32> to vector<16xf32>
    %333 = vector.shape_cast %332 : vector<16xf32> to vector<16x1xf32>
    %334 = vector.broadcast %333 : vector<16x1xf32> to vector<16x128xf32>
    %335 = arith.subf %318, %334 : vector<16x128xf32>
    %336 = math.exp %335 : vector<16x128xf32>
    %cst_129 = arith.constant dense<0.000000e+00> : vector<16x128xf32>
    %337 = tpu.matmul %336, %0, %cst_129 {dimension_numbers = #tpu.dot_dimension_numbers<[1], [0], [0], [1], [0, 0, 1, 1], [], []>} : vector<16x128xf32>, vector<128x128xf32>, vector<16x128xf32> -> vector<16x128xf32>
    %338 = tpu.reciprocal %337 {approx = true} : vector<16x128xf32> -> vector<16x128xf32>
    %339 = arith.mulf %336, %338 : vector<16x128xf32>
    %340 = arith.truncf %331 : vector<16x128xf32> to vector<16x128xbf16>
    %341 = arith.truncf %339 : vector<16x128xf32> to vector<16x128xbf16>
    %cst_130 = arith.constant dense<0.000000e+00> : vector<128x128xf32>
    %342 = tpu.matmul %340, %341, %cst_130 {dimension_numbers = #tpu.dot_dimension_numbers<[0], [0], [1], [1], [0, 1, 1, 1], [], []>} : vector<16x128xbf16>, vector<16x128xbf16>, vector<128x128xf32> -> vector<128x128xf32>
    %343 = arith.mulf %342, %0 : vector<128x128xf32>
    %344 = arith.truncf %343 : vector<128x128xf32> to vector<128x128xbf16>
    %cst_131 = arith.constant dense<0.000000e+00> : vector<16x128xf32>
    %345 = tpu.matmul %1, %344, %cst_131 {dimension_numbers = #tpu.dot_dimension_numbers<[1], [0], [0], [1], [0, 0, 1, 1], [], []>} : vector<16x128xbf16>, vector<128x128xbf16>, vector<16x128xf32> -> vector<16x128xf32>
    %346 = arith.truncf %345 : vector<16x128xf32> to vector<16x128xbf16>
    %347 = tpu.concatenate %319, %319, %319, %319, %319, %319, %319, %319 in 0 : vector<16x128xf32>, vector<16x128xf32>, vector<16x128xf32>, vector<16x128xf32>, vector<16x128xf32>, vector<16x128xf32>, vector<16x128xf32>, vector<16x128xf32> -> vector<128x128xf32>
    %348 = arith.mulf %347, %0 : vector<128x128xf32>
    %349 = arith.truncf %348 : vector<128x128xf32> to vector<128x128xbf16>
    %cst_132 = arith.constant dense<0.000000e+00> : vector<16x128xf32>
    %350 = tpu.matmul %346, %349, %cst_132 {dimension_numbers = #tpu.dot_dimension_numbers<[1], [1], [0], [0], [0, 0, 1, 0], [], []>} : vector<16x128xbf16>, vector<128x128xbf16>, vector<16x128xf32> -> vector<16x128xf32>
    %351 = vector.extract_strided_slice %2 {offsets = [0, 32], sizes = [4, 16], strides = [1, 1]} : vector<4x64xf32> to vector<4x16xf32>
    %cst_133 = arith.constant dense<0.000000e+00> : vector<4x128xf32>
    %352 = tpu.matmul %351, %350, %cst_133 {dimension_numbers = #tpu.dot_dimension_numbers<[1], [0], [0], [1], [0, 0, 1, 1], [], []>} : vector<4x16xf32>, vector<16x128xf32>, vector<4x128xf32> -> vector<4x128xf32>
    %353 = arith.addf %309, %352 : vector<4x128xf32>
    %cst_134 = arith.constant dense<0xFF800000> : vector<128xf32>
    %354 = vector.multi_reduction <maximumf>, %350, %cst_134 [0] : vector<16x128xf32> to vector<128xf32>
    %355 = vector.shape_cast %354 : vector<128xf32> to vector<1x128xf32>
    %356 = vector.extract_strided_slice %3 {offsets = [0, 5], sizes = [4, 1], strides = [1, 1]} : vector<4x7xf32> to vector<4x1xf32>
    %357 = vector.broadcast %356 : vector<4x1xf32> to vector<4x128xf32>
    %358 = vector.broadcast %355 : vector<1x128xf32> to vector<4x128xf32>
    %359 = arith.mulf %357, %358 : vector<4x128xf32>
    %360 = arith.addf %316, %359 : vector<4x128xf32>
    %c48_135 = arith.constant 48 : index
    %c0_136 = arith.constant 0 : index
    %361 = vector.load %arg8[%c48_135, %c0_136] : memref<192x128xf32, #tpu.memory_space<vmem>>, vector<16x128xf32>
    %c112_137 = arith.constant 112 : index
    %c0_138 = arith.constant 0 : index
    %362 = vector.load %arg8[%c112_137, %c0_138] : memref<192x128xf32, #tpu.memory_space<vmem>>, vector<16x128xf32>
    %c176_139 = arith.constant 176 : index
    %c0_140 = arith.constant 0 : index
    %363 = vector.load %arg8[%c176_139, %c0_140] : memref<192x128xf32, #tpu.memory_space<vmem>>, vector<16x128xf32>
    %cst_141 = arith.constant dense<0xFF800000> : vector<128xf32>
    %364 = vector.multi_reduction <maximumf>, %361, %cst_141 [0] : vector<16x128xf32> to vector<128xf32>
    %365 = vector.shape_cast %364 : vector<128xf32> to vector<1x128xf32>
    %366 = vector.broadcast %365 : vector<1x128xf32> to vector<16x128xf32>
    %367 = arith.subf %361, %366 : vector<16x128xf32>
    %368 = math.exp %367 : vector<16x128xf32>
    %cst_142 = arith.constant dense<0.000000e+00> : vector<128xf32>
    %369 = vector.multi_reduction <add>, %368, %cst_142 [0] : vector<16x128xf32> to vector<128xf32>
    %370 = vector.shape_cast %369 : vector<128xf32> to vector<1x128xf32>
    %371 = tpu.reciprocal %370 {approx = true} : vector<1x128xf32> -> vector<1x128xf32>
    %cst_143 = arith.constant 2.500000e-01 : f32
    %372 = vector.broadcast %cst_143 : f32 to vector<1x128xf32>
    %373 = arith.mulf %372, %371 : vector<1x128xf32>
    %374 = vector.broadcast %373 : vector<1x128xf32> to vector<16x128xf32>
    %375 = arith.mulf %368, %374 : vector<16x128xf32>
    %cst_144 = arith.constant dense<0xFF800000> : vector<16xf32>
    %376 = vector.multi_reduction <maximumf>, %362, %cst_144 [1] : vector<16x128xf32> to vector<16xf32>
    %377 = vector.shape_cast %376 : vector<16xf32> to vector<16x1xf32>
    %378 = vector.broadcast %377 : vector<16x1xf32> to vector<16x128xf32>
    %379 = arith.subf %362, %378 : vector<16x128xf32>
    %380 = math.exp %379 : vector<16x128xf32>
    %cst_145 = arith.constant dense<0.000000e+00> : vector<16x128xf32>
    %381 = tpu.matmul %380, %0, %cst_145 {dimension_numbers = #tpu.dot_dimension_numbers<[1], [0], [0], [1], [0, 0, 1, 1], [], []>} : vector<16x128xf32>, vector<128x128xf32>, vector<16x128xf32> -> vector<16x128xf32>
    %382 = tpu.reciprocal %381 {approx = true} : vector<16x128xf32> -> vector<16x128xf32>
    %383 = arith.mulf %380, %382 : vector<16x128xf32>
    %384 = arith.truncf %375 : vector<16x128xf32> to vector<16x128xbf16>
    %385 = arith.truncf %383 : vector<16x128xf32> to vector<16x128xbf16>
    %cst_146 = arith.constant dense<0.000000e+00> : vector<128x128xf32>
    %386 = tpu.matmul %384, %385, %cst_146 {dimension_numbers = #tpu.dot_dimension_numbers<[0], [0], [1], [1], [0, 1, 1, 1], [], []>} : vector<16x128xbf16>, vector<16x128xbf16>, vector<128x128xf32> -> vector<128x128xf32>
    %387 = arith.mulf %386, %0 : vector<128x128xf32>
    %388 = arith.truncf %387 : vector<128x128xf32> to vector<128x128xbf16>
    %cst_147 = arith.constant dense<0.000000e+00> : vector<16x128xf32>
    %389 = tpu.matmul %1, %388, %cst_147 {dimension_numbers = #tpu.dot_dimension_numbers<[1], [0], [0], [1], [0, 0, 1, 1], [], []>} : vector<16x128xbf16>, vector<128x128xbf16>, vector<16x128xf32> -> vector<16x128xf32>
    %390 = arith.truncf %389 : vector<16x128xf32> to vector<16x128xbf16>
    %391 = tpu.concatenate %363, %363, %363, %363, %363, %363, %363, %363 in 0 : vector<16x128xf32>, vector<16x128xf32>, vector<16x128xf32>, vector<16x128xf32>, vector<16x128xf32>, vector<16x128xf32>, vector<16x128xf32>, vector<16x128xf32> -> vector<128x128xf32>
    %392 = arith.mulf %391, %0 : vector<128x128xf32>
    %393 = arith.truncf %392 : vector<128x128xf32> to vector<128x128xbf16>
    %cst_148 = arith.constant dense<0.000000e+00> : vector<16x128xf32>
    %394 = tpu.matmul %390, %393, %cst_148 {dimension_numbers = #tpu.dot_dimension_numbers<[1], [1], [0], [0], [0, 0, 1, 0], [], []>} : vector<16x128xbf16>, vector<128x128xbf16>, vector<16x128xf32> -> vector<16x128xf32>
    %395 = vector.extract_strided_slice %2 {offsets = [0, 48], sizes = [4, 16], strides = [1, 1]} : vector<4x64xf32> to vector<4x16xf32>
    %cst_149 = arith.constant dense<0.000000e+00> : vector<4x128xf32>
    %396 = tpu.matmul %395, %394, %cst_149 {dimension_numbers = #tpu.dot_dimension_numbers<[1], [0], [0], [1], [0, 0, 1, 1], [], []>} : vector<4x16xf32>, vector<16x128xf32>, vector<4x128xf32> -> vector<4x128xf32>
    %397 = arith.addf %353, %396 : vector<4x128xf32>
    %cst_150 = arith.constant dense<0xFF800000> : vector<128xf32>
    %398 = vector.multi_reduction <maximumf>, %394, %cst_150 [0] : vector<16x128xf32> to vector<128xf32>
    %399 = vector.shape_cast %398 : vector<128xf32> to vector<1x128xf32>
    %400 = vector.extract_strided_slice %3 {offsets = [0, 6], sizes = [4, 1], strides = [1, 1]} : vector<4x7xf32> to vector<4x1xf32>
    %401 = vector.broadcast %400 : vector<4x1xf32> to vector<4x128xf32>
    %402 = vector.broadcast %399 : vector<1x128xf32> to vector<4x128xf32>
    %403 = arith.mulf %401, %402 : vector<4x128xf32>
    %404 = arith.addf %360, %403 : vector<4x128xf32>
    %405 = arith.subf %397, %404 : vector<4x128xf32>
    %406 = vector.broadcast %4 : vector<4x1xf32> to vector<4x128xf32>
    %407 = arith.addf %405, %406 : vector<4x128xf32>
    %cst_151 = arith.constant dense<0.000000e+00> : vector<128xf32>
    %408 = vector.multi_reduction <add>, %407, %cst_151 [0] : vector<4x128xf32> to vector<128xf32>
    %409 = vector.shape_cast %408 : vector<128xf32> to vector<1x128xf32>
    %410 = arith.mulf %407, %407 : vector<4x128xf32>
    %cst_152 = arith.constant dense<0.000000e+00> : vector<128xf32>
    %411 = vector.multi_reduction <add>, %410, %cst_152 [0] : vector<4x128xf32> to vector<128xf32>
    %412 = vector.shape_cast %411 : vector<128xf32> to vector<1x128xf32>
    %413 = tpu.concatenate %409, %412 in 0 : vector<1x128xf32>, vector<1x128xf32> -> vector<2x128xf32>
    %cst_153 = arith.constant dense<0.000000e+00> : vector<2x128xf32>
    %414 = tpu.matmul %413, %0, %cst_153 {dimension_numbers = #tpu.dot_dimension_numbers<[1], [0], [0], [1], [0, 0, 1, 1], [], []>} : vector<2x128xf32>, vector<128x128xf32>, vector<2x128xf32> -> vector<2x128xf32>
    %415 = vector.extract_strided_slice %414 {offsets = [0, 0], sizes = [1, 128], strides = [1, 1]} : vector<2x128xf32> to vector<1x128xf32>
    %cst_154 = arith.constant 1.562500e-02 : f32
    %416 = vector.broadcast %cst_154 : f32 to vector<1x128xf32>
    %417 = arith.mulf %415, %416 : vector<1x128xf32>
    %418 = vector.extract_strided_slice %414 {offsets = [1, 0], sizes = [1, 128], strides = [1, 1]} : vector<2x128xf32> to vector<1x128xf32>
    %cst_155 = arith.constant 1.562500e-02 : f32
    %419 = vector.broadcast %cst_155 : f32 to vector<1x128xf32>
    %420 = arith.mulf %418, %419 : vector<1x128xf32>
    %421 = arith.mulf %417, %417 : vector<1x128xf32>
    %422 = arith.subf %420, %421 : vector<1x128xf32>
    %cst_156 = arith.constant 9.99999974E-6 : f32
    %423 = vector.broadcast %cst_156 : f32 to vector<1x128xf32>
    %424 = arith.addf %422, %423 : vector<1x128xf32>
    %425 = math.rsqrt %424 : vector<1x128xf32>
    %426 = vector.broadcast %417 : vector<1x128xf32> to vector<4x128xf32>
    %427 = arith.subf %407, %426 : vector<4x128xf32>
    %428 = vector.broadcast %425 : vector<1x128xf32> to vector<4x128xf32>
    %429 = arith.mulf %427, %428 : vector<4x128xf32>
    %430 = vector.broadcast %5 : vector<4x1xf32> to vector<4x128xf32>
    %431 = arith.mulf %429, %430 : vector<4x128xf32>
    %432 = vector.broadcast %6 : vector<4x1xf32> to vector<4x128xf32>
    %433 = arith.addf %431, %432 : vector<4x128xf32>
    %c1_157 = arith.constant 1 : index
    %c0_158 = arith.constant 0 : index
    %c0_159 = arith.constant 0 : index
    %434 = vector.load %arg7[%c1_157, %c0_158, %c0_159] : memref<2x4x128xf32, #tpu.memory_space<vmem>>, vector<1x4x128xf32>
    %435 = vector.shape_cast %434 : vector<1x4x128xf32> to vector<4x128xf32>
    %436 = vector.shape_cast %433 : vector<4x128xf32> to vector<1x4x128xf32>
    tpu.vector_store %arg7[%c1_157, %c0_158, %c0_159], %436 {strides = array<i32>} : memref<2x4x128xf32, #tpu.memory_space<vmem>>, vector<1x4x128xf32>,
    return
  }
  func.func @transform_0(%arg0: i32) -> (i32, i32, i32) {
    %c0_i32 = arith.constant 0 : i32
    %c0_i32_0 = arith.constant 0 : i32
    %c0_i32_1 = arith.constant 0 : i32
    return %arg0, %c0_i32, %c0_i32_0 : i32, i32, i32
  }
  func.func @transform_1(%arg0: i32) -> (i32, i32) {
    %c0_i32 = arith.constant 0 : i32
    %c0_i32_0 = arith.constant 0 : i32
    %c0_i32_1 = arith.constant 0 : i32
    return %c0_i32, %c0_i32_0 : i32, i32
  }
  func.func @transform_2(%arg0: i32) -> (i32, i32) {
    %c0_i32 = arith.constant 0 : i32
    %c0_i32_0 = arith.constant 0 : i32
    %c0_i32_1 = arith.constant 0 : i32
    return %c0_i32, %c0_i32_0 : i32, i32
  }
  func.func @transform_3(%arg0: i32) -> (i32, i32) {
    %c0_i32 = arith.constant 0 : i32
    %c0_i32_0 = arith.constant 0 : i32
    %c0_i32_1 = arith.constant 0 : i32
    return %c0_i32, %c0_i32_0 : i32, i32
  }
  func.func @transform_4(%arg0: i32) -> (i32, i32) {
    %c0_i32 = arith.constant 0 : i32
    %c0_i32_0 = arith.constant 0 : i32
    %c0_i32_1 = arith.constant 0 : i32
    return %c0_i32, %c0_i32_0 : i32, i32
  }
  func.func @transform_5(%arg0: i32) -> (i32, i32) {
    %c0_i32 = arith.constant 0 : i32
    %c0_i32_0 = arith.constant 0 : i32
    %c0_i32_1 = arith.constant 0 : i32
    return %c0_i32, %c0_i32_0 : i32, i32
  }
  func.func @transform_6(%arg0: i32) -> (i32, i32, i32) {
    %c0_i32 = arith.constant 0 : i32
    %c0_i32_0 = arith.constant 0 : i32
    %c0_i32_1 = arith.constant 0 : i32
    return %arg0, %c0_i32, %c0_i32_0 : i32, i32, i32
  }
}

</mosaic_0001>

<bundles_post_ra>
// kernel: tpu_custom_call.1
= control target key start
LH: loop header
LB: loop body
LE: loop exit
PB: predicated region body
PF: predicated region fallthrough
CT: control target
= control target key end

     0   :  { %vm143_vm0 = vcmask 1043456   ;;  %vm70_vm1 = vcmask 31744   ;;  %s4497_s0 = inlined_call_operand.vmem [shape: f32[2,4,128], index: 0, kind: input, shape index: {}]   ;;  %s4498_s1 = inlined_call_operand.vmem [shape: f32[192,4], index: 1, kind: input, shape index: {}]   ;;  %s4499_s2 = inlined_call_operand.vmem [shape: f32[4,64], index: 2, kind: input, shape index: {}]   ;;  %s4500_s3 = inlined_call_operand.vmem [shape: f32[4,7], index: 3, kind: input, shape index: {}]   ;;  %s4501_s4 = inlined_call_operand.vmem [shape: f32[128,128], index: 4, kind: input, shape index: {}]   ;;  %s4502_s5 = inlined_call_operand.vmem [shape: bf16[16,128], index: 5, kind: input, shape index: {}]   ;;  %s4503_s6 = inlined_call_operand.hbm [shape: f32[2,4,128], index: 6, kind: output, shape index: {}]  }
   0x1   :  { %v69_v0 = vld [vmem:[%s4497_s0] sm:$0xf] }
   0x2   :  { %v45_v1 = vld [vmem:[%s4498_s1] sm:$0xff]  ;;  %2785 = vmatpush.msk.msra.mxu0 %vm143_vm0, %v69_v0 }
   0x3   :  { %2786 = vmatmul.msk.f32.vlgmr.msra.gmra.mxu0 %vm70_vm1, %v45_v1 }
   0x4   :  { %11 = vsyncpa [#allocation4], 0  ;;  %v46_v2 = vld [vmem:[%s4498_s1 + $0x8] sm:$0xff]  ;;  %v47_v3 = vld [vmem:[%s4498_s1 + $0x10] sm:$0xff]  ;;  %s3114_s9 = smov 112   ;;  %s3115_s18 = smov 96  }
   0x5   :  { %v48_v4 = vld [vmem:[%s4498_s1 + $0x18] sm:$0xff]  ;;  %v49_v5 = vld [vmem:[%s4498_s1 + $0x20] sm:$0xff]  ;;  %v50_v6 = vld [vmem:[%s4498_s1 + $0x28] sm:$0xff]  ;;  %vm345_vm2 = vcmask 130048   ;;  %s3119_s16 = smov 80   ;;  %vm1378_vm3 = vcmask 1040384  }
   0x6   :  { %v51_v7 = vld [vmem:[%s4498_s1 + $0x30] sm:$0xff]  ;;  %v52_v8 = vld [vmem:[%s4498_s1 + $0x38] sm:$0xff]  ;;  %v53_v9 = vld [vmem:[%s4498_s1 + $0x40] sm:$0xff]  ;;  %s2773_s15 = sshll.u32 %s4503_s6, 4  ;;  %s3126_s17 = smov 4   ;;  %s2774_s15 = int_to_ptr.hbm [resolvable:$true] %s2773_s15 }
   0x7   :  { %v54_v10 = vld [vmem:[%s4498_s1 + $0x48] sm:$0xff]  ;;  %v55_v11 = vld [vmem:[%s4498_s1 + $0x50] sm:$0xff]  ;;  %v56_v12 = vld [vmem:[%s4498_s1 + $0x58] sm:$0xff] }
   0x8   :  { %v57_v13 = vld [vmem:[%s4498_s1 + $0x60] sm:$0xff]  ;;  %v58_v14 = vld [vmem:[%s4498_s1 + $0x68] sm:$0xff]  ;;  %v59_v44 = vld [vmem:[%s4498_s1 + $0x70] sm:$0xff] }
   0x9   :  { %v60_v48 = vld [vmem:[%s4498_s1 + $0x78] sm:$0xff] }
   0xb   :  { %2787 = vmatmul.msk.f32.gmra.mxu0 %vm70_vm1, %v46_v2 }
  0x13   :  { %2788 = vmatmul.msk.f32.gmra.mxu0 %vm70_vm1, %v47_v3 }
  0x1b   :  { %2789 = vmatmul.msk.f32.gmra.mxu0 %vm70_vm1, %v48_v4 }
  0x23   :  { %2790 = vmatmul.msk.f32.gmra.mxu0 %vm70_vm1, %v49_v5  ;;  %v3252_v5 = vld [vmem:[%s4499_s2] sm:$0xf] }
  0x2b   :  { %2791 = vmatmul.msk.f32.gmra.mxu0 %vm70_vm1, %v50_v6 }
  0x33   :  { %2792 = vmatmul.msk.f32.gmra.mxu0 %vm70_vm1, %v51_v7 }
  0x3b   :  { %2793 = vmatmul.msk.f32.gmra.mxu0 %vm70_vm1, %v52_v8 }
  0x43   :  { %2794 = vmatmul.msk.f32.gmra.mxu0 %vm70_vm1, %v53_v9 }
  0x4b   :  { %2795 = vmatmul.msk.f32.gmra.mxu0 %vm70_vm1, %v54_v10 }
  0x53   :  { %2796 = vmatmul.msk.f32.gmra.mxu0 %vm70_vm1, %v55_v11  ;;  %v3258_v11 = vld [vmem:[%s4501_s4 + $0x78] sm:$0xff] }
  0x54   :  { %300 = vmatpush.msra.mxu1 %v3258_v11 }
  0x5b   :  { %2797 = vmatmul.msk.f32.gmra.mxu0 %vm70_vm1, %v56_v12 }
  0x63   :  { %2798 = vmatmul.msk.f32.gmra.mxu0 %vm70_vm1, %v57_v13 }
  0x6b   :  { %2799 = vmatmul.msk.f32.gmra.mxu0 %vm70_vm1, %v58_v14 }
  0x73   :  { %2800 = vmatmul.msk.f32.gmra.mxu0 %vm70_vm1, %v59_v44 }
  0x7b   :  { %2801 = vmatmul.msk.f32.gmra.mxu0 %vm70_vm1, %v60_v48 }
  0x80   :  { %v164_v15 = vpop.f32.mrf.mxu0 }
  0x88   :  { %v167_v16 = vpop.f32.mrf.mxu0 }
  0x89   :  { %v266_v17 = vmax.f32 %v164_v15, %v167_v16 }
  0x8b   :  { %v267_v18 = vrot.slane %v266_v17, 4 }
  0x8d   :  { %v268_v19 = vmax.f32 %v266_v17, %v267_v18  ;;  %v3266_v18 = vld [vmem:[%s4501_s4 + $0x70] sm:$0xff] }
  0x8e   :  { %301 = vmatpush.msra.mxu1 %v3266_v18 }
  0x8f   :  { %v269_v20 = vrot.slane %v268_v19, 2 }
  0x90   :  { %v170_v21 = vpop.f32.mrf.mxu0 }
  0x91   :  { %v270_v22 = vmax.f32 %v268_v19, %v269_v20  ;;  %v3271_v19 = vld [vmem:[%s4501_s4 + $0x68] sm:$0xff]  ;;  %v3277_v20 = vld [vmem:[%s4501_s4 + $0x60] sm:$0xff] }
  0x92   :  { %302 = vmatpush.msra.mxu1 %v3271_v19 }
  0x93   :  { %v271_v23 = vrot.slane %v270_v22, 1 }
  0x94   :  { %303 = vmatpush.msra.mxu1 %v3277_v20 }
  0x95   :  { %v272_v24 = vmax.f32 %v270_v22, %v271_v23  ;;  %v3290_v22 = vld [vmem:[%s4501_s4 + $0x50] sm:$0xff]  ;;  %v3296_v23 = vld [vmem:[%s4501_s4 + $0x48] sm:$0xff] }
  0x97   :  { %v273_v25 = vsub.f32 %v164_v15, %v272_v24  ;;  %v274_v26 = vsub.f32 %v167_v16, %v272_v24 }
  0x98   :  { %v173_v27 = vpop.f32.mrf.mxu0 }
  0x99   :  { %v275_v28 = vmul.f32 1.442695, %v273_v25  ;;  %v277_v29 = vmul.f32 1.442695, %v274_v26  ;;  %v522_v34 = vmax.f32 %v170_v21, %v173_v27  ;;  %v3304_v25 = vld [vmem:[%s4501_s4 + $0x40] sm:$0xff]  ;;  %v3311_v26 = vld [vmem:[%s4501_s4 + $0x38] sm:$0xff] }
  0x9b   :  { %2934 = vpow2.f32 %v275_v28  ;;  %v523_v38 = vrot.slane %v522_v34, 4  ;;  %v3324_v28 = vld [vmem:[%s4501_s4 + $0x28] sm:$0xff] }
  0x9c   :  { %2936 = vpow2.f32 %v277_v29  ;;  %v3330_v29 = vld [vmem:[%s4501_s4 + $0x20] sm:$0xff] }
  0x9d   :  { %v524_v41 = vmax.f32 %v522_v34, %v523_v38  ;;  %v3354_v34 = vld [vmem:[%s4501_s4] sm:$0xff] }
  0x9f   :  { %v525_v46 = vrot.slane %v524_v41, 2 }
  0xa0   :  { %v3222_v30 = vpop.f32.mrf.mxu0 }
  0xa1   :  { %v2935_v31 = vpop.eup %2934  ;;  %v526_v47 = vmax.f32 %v524_v41, %v525_v46 }
  0xa2   :  { %v2937_v32 = vpop.eup %2936 }
  0xa3   :  { %v279_v33 = vadd.f32 %v2937_v32, %v2935_v31  ;;  %v527_v52 = vrot.slane %v526_v47, 1 }
  0xa5   :  { %v280_v35 = vrot.slane %v279_v33, 4  ;;  %v528_v56 = vmax.f32 %v526_v47, %v527_v52 }
  0xa7   :  { %v281_v36 = vadd.f32 %v280_v35, %v279_v33  ;;  %v529_v58 = vsub.f32 %v170_v21, %v528_v56  ;;  %v530_v59 = vsub.f32 %v173_v27, %v528_v56  ;;  %v3284_v21 = vld [vmem:[%s4501_s4 + $0x58] sm:$0xff]  ;;  %v3317_v27 = vld [vmem:[%s4501_s4 + $0x30] sm:$0xff]  ;;  %v3348_v33 = vld [vmem:[%s4501_s4 + $0x8] sm:$0xff] }
  0xa8   :  { %v3224_v37 = vpop.f32.mrf.mxu0  ;;  %304 = vmatpush.msra.mxu1 %v3284_v21 }
  0xa9   :  { %v282_v39 = vrot.slane %v281_v36, 2  ;;  %v531_v60 = vmul.f32 1.442695, %v529_v58  ;;  %v533_v61 = vmul.f32 1.442695, %v530_v59 }
  0xaa   :  { %305 = vmatpush.msra.mxu1 %v3290_v22 }
  0xab   :  { %v283_v40 = vadd.f32 %v282_v39, %v281_v36  ;;  %v817_v36 = vmax.f32 %v3222_v30, %v3224_v37 }
  0xac   :  { %306 = vmatpush.msra.mxu1 %v3296_v23 }
  0xad   :  { %v284_v42 = vrot.slane %v283_v40, 1  ;;  %v818_v39 = vrot.slane %v817_v36, 4 }
  0xae   :  { %307 = vmatpush.msra.mxu1 %v3304_v25 }
  0xaf   :  { %v285_v43 = vadd.f32 %v284_v42, %v283_v40  ;;  %v819_v41 = vmax.f32 %v817_v36, %v818_v39 }
  0xb0   :  { %v3229_v45 = vpop.f32.mrf.mxu0  ;;  %308 = vmatpush.msra.mxu1 %v3311_v26 }
  0xb1   :  { %2938 = vrcp.f32 %v285_v43  ;;  %v820_v43 = vrot.slane %v819_v41, 2 }
  0xb2   :  { %2940 = vpow2.f32 %v531_v60  ;;  %309 = vmatpush.msra.mxu1 %v3317_v27 }
  0xb3   :  { %2942 = vpow2.f32 %v533_v61  ;;  %v821_v47 = vmax.f32 %v819_v41, %v820_v43 }
  0xb4   :  { %310 = vmatpush.msra.mxu1 %v3324_v28 }
  0xb5   :  { %v822_v52 = vrot.slane %v821_v47, 1 }
  0xb6   :  { %311 = vmatpush.msra.mxu1 %v3330_v29 }
  0xb7   :  { %v2939_v49 = vpop.eup %2938 }
  0xb8   :  { %v3235_v50 = vpop.f32.mrf.mxu0  ;;  %v287_v51 = vmul.f32 0.25, %v2939_v49  ;;  %v2941_v63 = vpop.eup %2940 }
  0xb9   :  { %v2943_v0 = vpop.eup %2942  ;;  %v1090_v35 = vmax.f32 %v3229_v45, %v3235_v50 }
  0xba   :  { %v288_v53 = vmul.f32 %v2935_v31, %v287_v51  ;;  %v289_v54 = vmul.f32 %v2937_v32, %v287_v51  ;;  %v535_v2 = vadd.f32 %v2943_v0, %v2941_v63  ;;  %v3336_v31 = vld [vmem:[%s4501_s4 + $0x18] sm:$0xff]  ;;  %v3341_v32 = vld [vmem:[%s4501_s4 + $0x10] sm:$0xff] }
  0xbb   :  { %312 = vmatpush.msra.mxu1 %v3336_v31  ;;  %v1091_v38 = vrot.slane %v1090_v35, 4 }
  0xbc   :  { %v327_v55 = vpack.c.bf16 %v289_v54, %v288_v53  ;;  %v536_v3 = vrot.slane %v535_v2, 4 }
  0xbd   :  { %313 = vmatpush.msra.mxu1 %v3341_v32  ;;  %v1092_v40 = vmax.f32 %v1090_v35, %v1091_v38 }
  0xbe   :  { %329 = vxpose.xlu1.c.b16.start.end [1/1] (short) %v327_v55, 128  ;;  %v537_v6 = vadd.f32 %v536_v3, %v535_v2  ;;  %v823_v55 = vmax.f32 %v821_v47, %v822_v52 }
  0xbf   :  { %314 = vmatpush.msra.mxu1 %v3348_v33  ;;  %v1093_v42 = vrot.slane %v1092_v40, 2 }
  0xc0   :  { %v3238_v57 = vpop.f32.mrf.mxu0  ;;  %v538_v7 = vrot.slane %v537_v6, 2 }
  0xc1   :  { %290 = vmax.xlane.f32.xlu0 %v3238_v57  ;;  %315 = vmatpush.msra.mxu1 %v3354_v34  ;;  %v1094_v44 = vmax.f32 %v1092_v40, %v1093_v42 }
  0xc2   :  { %v539_v8 = vadd.f32 %v538_v7, %v537_v6 }
  0xc3   :  { %v1095_v48 = vrot.slane %v1094_v44, 1 }
  0xc4   :  { %v540_v9 = vrot.slane %v539_v8, 1 }
  0xc5   :  { %v1096_v53 = vmax.f32 %v1094_v44, %v1095_v48 }
  0xc6   :  { %v541_v10 = vadd.f32 %v540_v9, %v539_v8 }
  0xc7   :  { %v1097_v56 = vsub.f32 %v3229_v45, %v1096_v53  ;;  %v1098_v59 = vsub.f32 %v3235_v50, %v1096_v53 }
  0xc8   :  { %v3241_v62 = vpop.f32.mrf.mxu0  ;;  %2944 = vrcp.f32 %v541_v10 }
  0xc9   :  { %292 = vmax.xlane.f32.xlu0 %v3241_v62  ;;  %v1101_v2 = vmul.f32 1.442695, %v1098_v59 }
  0xce   :  { %v2945_v12 = vpop.eup %2944 }
  0xcf   :  { %v543_v13 = vmul.f32 0.25, %v2945_v12 }
  0xd0   :  { %v3244_v1 = vpop.f32.mrf.mxu0 }
  0xd1   :  { %v544_v14 = vmul.f32 %v2941_v63, %v543_v13  ;;  %v545_v15 = vmul.f32 %v2943_v0, %v543_v13  ;;  %v824_v63 = vsub.f32 %v3222_v30, %v823_v55  ;;  %v1099_v0 = vmul.f32 1.442695, %v1097_v56 }
  0xd3   :  { %v583_v16 = vpack.c.bf16 %v545_v15, %v544_v14  ;;  %v826_v3 = vmul.f32 1.442695, %v824_v63 }
  0xd8   :  { %v3246_v4 = vpop.f32.mrf.mxu0 }
  0xd9   :  { %548 = vmax.xlane.f32.xlu2 %v3246_v4 }
  0xdd   :  { %752 = vrot.lane.b32.xlu0 %v3252_v5, %s3114_s9 }
  0xe0   :  { %v3261_v17 = vpop.f32.mrf.mxu0 }
  0xe8   :  { %v3298_v24 = vpop.f32.mrf.mxu0 }
  0xf0   :  { %v3368_v45 = vpop.f32.mrf.mxu0 }
  0xf8   :  { %v3371_v10 = vpop.f32.mrf.mxu0 }
 0x102   :  { %585 = vxpose.xlu2.c.b16.start.end [1/1] (short) %v583_v16, 128 }
 0x107   :  { %841 = vmax.xlane.f32.xlu0 %v3261_v17 }
 0x10f   :  { %843 = vmax.xlane.f32.xlu0 %v3298_v24 }
 0x123   :  { %1046 = vrot.lane.b32.xlu0 %v3252_v5, %s3115_s18 }
 0x134   :  { %v291_v46 = vpop.xlane.xlu0 %290 }
 0x135   :  { %v294_v49 = vsub.f32 %v3238_v57, %v291_v46  ;;  %v825_v57 = vsub.f32 %v3224_v37, %v823_v55 }
 0x137   :  { %v296_v51 = vmul.f32 1.442695, %v294_v49  ;;  %v828_v6 = vmul.f32 1.442695, %v825_v57 }
 0x139   :  { %2946 = vpow2.f32 %v296_v51 }
 0x13c   :  { %v293_v54 = vpop.xlane.xlu0 %292 }
 0x13d   :  { %v295_v58 = vsub.f32 %v3241_v62, %v293_v54 }
 0x13f   :  { %v2947_v60 = vpop.eup %2946  ;;  %v298_v61 = vmul.f32 1.442695, %v295_v58 }
 0x140   :  { %316 = vmatmul.f32.vlgmr.msra.gmra.mxu1 %v2947_v60 }
 0x141   :  { %2948 = vpow2.f32 %v298_v61 }
 0x142   :  { %2950 = vpow2.f32 %v1099_v0 }
 0x143   :  { %2952 = vpow2.f32 %v1101_v2 }
 0x144   :  { %2954 = vpow2.f32 %v826_v3 }
 0x145   :  { %2956 = vpow2.f32 %v828_v6 }
 0x147   :  { %v2949_v7 = vpop.eup %2948 }
 0x148   :  { %319 = vmatmul.f32.gmra.mxu1 %v2949_v7  ;;  %v2951_v50 = vpop.eup %2950 }
 0x149   :  { %v2953_v62 = vpop.eup %2952 }
 0x14a   :  { %v2955_v30 = vpop.eup %2954  ;;  %v1103_v8 = vadd.f32 %v2953_v62, %v2951_v50 }
 0x14b   :  { %v2957_v9 = vpop.eup %2956 }
 0x14c   :  { %v830_v37 = vadd.f32 %v2957_v9, %v2955_v30  ;;  %v1104_v12 = vrot.slane %v1103_v8, 4 }
 0x14d   :  { %1114 = vmax.xlane.f32.xlu0 %v3368_v45 }
 0x14e   :  { %v831_v13 = vrot.slane %v830_v37, 4  ;;  %v1105_v14 = vadd.f32 %v1104_v12, %v1103_v8 }
 0x150   :  { %v1106_v15 = vrot.slane %v1105_v14, 2  ;;  %v832_v16 = vadd.f32 %v831_v13, %v830_v37 }
 0x152   :  { %v1107_v35 = vadd.f32 %v1106_v15, %v1105_v14  ;;  %v833_v36 = vrot.slane %v832_v16, 2 }
 0x154   :  { %v1108_v38 = vrot.slane %v1107_v35, 1  ;;  %v834_v39 = vadd.f32 %v833_v36, %v832_v16 }
 0x155   :  { %1116 = vmax.xlane.f32.xlu0 %v3371_v10 }
 0x156   :  { %v1109_v40 = vadd.f32 %v1108_v38, %v1107_v35  ;;  %v835_v41 = vrot.slane %v834_v39, 1  ;;  %v61_v35 = vld [vmem:[%s4498_s1 + $0x80] sm:$0xff]  ;;  %v62_v38 = vld [vmem:[%s4498_s1 + $0x88] sm:$0xff] }
 0x157   :  { %2802 = vmatmul.msk.f32.gmra.mxu0 %vm70_vm1, %v61_v35 }
 0x158   :  { %2958 = vrcp.f32 %v1109_v40  ;;  %v836_v42 = vadd.f32 %v835_v41, %v834_v39 }
 0x15a   :  { %2960 = vrcp.f32 %v836_v42 }
 0x15e   :  { %v2959_v43 = vpop.eup %2958 }
 0x15f   :  { %v1111_v44 = vmul.f32 0.25, %v2959_v43  ;;  %2803 = vmatmul.msk.f32.gmra.mxu0 %vm70_vm1, %v62_v38 }
 0x160   :  { %v2961_v46 = vpop.eup %2960 }
 0x161   :  { %v1112_v47 = vmul.f32 %v2951_v50, %v1111_v44  ;;  %v1113_v48 = vmul.f32 %v2953_v62, %v1111_v44  ;;  %v838_v49 = vmul.f32 0.25, %v2961_v46 }
 0x163   :  { %v1151_v51 = vpack.c.bf16 %v1113_v48, %v1112_v47  ;;  %v839_v52 = vmul.f32 %v2955_v30, %v838_v49  ;;  %v840_v53 = vmul.f32 %v2957_v9, %v838_v49 }
 0x165   :  { %v878_v54 = vpack.c.bf16 %v840_v53, %v839_v52 }
 0x16a   :  { %v337_v57 = vpop.trf.xlu1 }
 0x17a   :  { %v338_v2 = vpop.trf.xlu1 }
 0x17e   :  { %1153 = vxpose.xlu0.c.b16.start.end [1/1] (short) %v1151_v51, 128 }
 0x182   :  { %880 = vxpose.xlu2.c.b16.start.end [1/1] (short) %v878_v54, 128 }
 0x18a   :  { %v339_v3 = vpop.trf.xlu1 }
 0x18e   :  { %546 = vmax.xlane.f32.xlu1 %v3244_v1 }
 0x19a   :  { %v340_v6 = vpop.trf.xlu1 }
 0x1aa   :  { %v341_v50 = vpop.trf.xlu1 }
 0x1bd   :  { %v317_v55 = vpop.f32.mrf.mxu1 }
 0x1be   :  { %2962 = vrcp.f32 %v317_v55 }
 0x1c4   :  { %v2963_v58 = vpop.eup %2962 }
 0x1c5   :  { %v320_v56 = vpop.f32.mrf.mxu1  ;;  %v325_v61 = vmul.f32 %v2963_v58, %v2947_v60  ;;  %v342_v60 = vpop.trf.xlu1 }
 0x1c6   :  { %2964 = vrcp.f32 %v320_v56 }
 0x1cc   :  { %v2965_v59 = vpop.eup %2964 }
 0x1cd   :  { %v326_v63 = vmul.f32 %v2965_v59, %v2949_v7  ;;  %v343_v7 = vpop.trf.xlu1 }
 0x1cf   :  { %v328_v0 = vpack.c.bf16 %v326_v63, %v325_v61 }
 0x1d1   :  { %377 = vmatpush.bf16.msra.mxu2 %v328_v0 }
 0x1d4   :  { %2810 = vmatmul.msk.bf16.vlgmr.msra.gmra.mxu2 %vm345_vm2, %v337_v57 }
 0x1da   :  { %v344_v62 = vpop.trf.xlu1 }
 0x1e4   :  { %2811 = vmatmul.msk.bf16.gmra.mxu2 %vm345_vm2, %v338_v2 }
 0x1f4   :  { %2812 = vmatmul.msk.bf16.gmra.mxu2 %vm345_vm2, %v339_v3 }
 0x204   :  { %2813 = vmatmul.msk.bf16.gmra.mxu2 %vm345_vm2, %v340_v6 }
 0x214   :  { %2814 = vmatmul.msk.bf16.gmra.mxu2 %vm345_vm2, %v341_v50 }
 0x224   :  { %2815 = vmatmul.msk.bf16.gmra.mxu2 %vm345_vm2, %v342_v60 }
 0x234   :  { %2816 = vmatmul.msk.bf16.gmra.mxu2 %vm345_vm2, %v343_v7 }
 0x244   :  { %2817 = vmatmul.msk.bf16.gmra.mxu2 %vm345_vm2, %v344_v62 }
 0x257   :  { %v379_v30 = vpop.f32.mrf.mxu2 }
 0x258   :  { %v419_v62 = vmul.f32 %v379_v30, %v3354_v34  ;;  %v547_v30 = vpop.xlane.xlu1 %546 }
 0x25f   :  { %v381_v8 = vpop.f32.mrf.mxu2 }
 0x260   :  { %v420_v60 = vmul.f32 %v381_v8, %v3348_v33  ;;  %v550_v8 = vsub.f32 %v3244_v1, %v547_v30  ;;  %v64_v1 = vld [vmem:[%s4498_s1 + $0x98] sm:$0xff] }
 0x267   :  { %v384_v9 = vpop.f32.mrf.mxu2 }
 0x268   :  { %v421_v50 = vmul.f32 %v384_v9, %v3341_v32  ;;  %v63_v9 = vld [vmem:[%s4498_s1 + $0x90] sm:$0xff] }
 0x269   :  { %2804 = vmatmul.msk.f32.gmra.mxu0 %vm70_vm1, %v63_v9 }
 0x26f   :  { %v386_v37 = vpop.f32.mrf.mxu2 }
 0x270   :  { %v422_v3 = vmul.f32 %v386_v37, %v3336_v31  ;;  %v552_v37 = vmul.f32 1.442695, %v550_v8 }
 0x271   :  { %2805 = vmatmul.msk.f32.gmra.mxu0 %vm70_vm1, %v64_v1 }
 0x272   :  { %v436_v7 = vpack.c.bf16 %v422_v3, %v421_v50  ;;  %2966 = vpow2.f32 %v552_v37 }
 0x277   :  { %v389_v12 = vpop.f32.mrf.mxu2 }
 0x278   :  { %v423_v2 = vmul.f32 %v389_v12, %v3330_v29  ;;  %v549_v12 = vpop.xlane.xlu2 %548  ;;  %v2967_v35 = vpop.eup %2966 }
 0x27f   :  { %v391_v13 = vpop.f32.mrf.mxu2 }
 0x280   :  { %v424_v0 = vmul.f32 %v391_v13, %v3324_v28  ;;  %v3410_v13 = vld [vmem:[%s4502_s5] sm:$0xff] }
 0x282   :  { %v437_v6 = vpack.c.bf16 %v424_v0, %v423_v2 }
 0x287   :  { %v394_v14 = vpop.f32.mrf.mxu2 }
 0x288   :  { %v425_v63 = vmul.f32 %v394_v14, %v3317_v27  ;;  %v435_v14 = vpack.c.bf16 %v420_v60, %v419_v62  ;;  %v3458_v62 = vld [vmem:[%s4500_s3] sm:$0xf] }
 0x28f   :  { %v396_v15 = vpop.f32.mrf.mxu2 }
 0x290   :  { %v426_v59 = vmul.f32 %v396_v15, %v3311_v26  ;;  %v551_v15 = vsub.f32 %v3246_v4, %v549_v12 }
 0x292   :  { %v438_v57 = vpack.c.bf16 %v426_v59, %v425_v63 }
 0x297   :  { %v399_v16 = vpop.f32.mrf.mxu2 }
 0x298   :  { %v427_v58 = vmul.f32 %v399_v16, %v3304_v25  ;;  %v554_v16 = vmul.f32 1.442695, %v551_v15 }
 0x29a   :  { %2968 = vpow2.f32 %v554_v16  ;;  %v593_v16 = vpop.trf.xlu2 }
 0x29f   :  { %v401_v36 = vpop.f32.mrf.mxu2 }
 0x2a0   :  { %v428_v55 = vmul.f32 %v401_v36, %v3296_v23  ;;  %v212_v36 = vpop.f32.mrf.mxu0  ;;  %v2969_v4 = vpop.eup %2968 }
 0x2a1   :  { %v478_v38 = vmul.f32 %v212_v36, %v3266_v18 }
 0x2a2   :  { %v439_v61 = vpack.c.bf16 %v428_v55, %v427_v58 }
 0x2a7   :  { %v404_v39 = vpop.f32.mrf.mxu2 }
 0x2a8   :  { %v429_v54 = vmul.f32 %v404_v39, %v3290_v22  ;;  %v215_v39 = vpop.f32.mrf.mxu0 }
 0x2a9   :  { %v469_v58 = vmul.f32 %v215_v39, %v3324_v28  ;;  %v467_v63 = vmul.f32 %v215_v39, %v3336_v31  ;;  %v465_v2 = vmul.f32 %v215_v39, %v3348_v33 }
 0x2af   :  { %v406_v40 = vpop.f32.mrf.mxu2 }
 0x2b0   :  { %v430_v52 = vmul.f32 %v406_v40, %v3284_v21  ;;  %v479_v40 = vmul.f32 %v215_v39, %v3258_v11 }
 0x2b2   :  { %v440_v56 = vpack.c.bf16 %v430_v52, %v429_v54  ;;  %v471_v54 = vmul.f32 %v215_v39, %v3311_v26 }
 0x2b7   :  { %v409_v41 = vpop.f32.mrf.mxu2 }
 0x2b8   :  { %v431_v51 = vmul.f32 %v409_v41, %v3277_v20  ;;  %v487_v41 = vpack.c.bf16 %v479_v40, %v478_v38 }
 0x2ba   :  { %488 = vmatpush.bf16.xpose.msrb.mxu1 %v487_v41 }
 0x2bf   :  { %v411_v42 = vpop.f32.mrf.mxu2 }
 0x2c0   :  { %v432_v48 = vmul.f32 %v411_v42, %v3271_v19  ;;  %v476_v42 = vmul.f32 %v212_v36, %v3277_v20 }
 0x2c2   :  { %v441_v53 = vpack.c.bf16 %v432_v48, %v431_v51  ;;  %v473_v51 = vmul.f32 %v215_v39, %v3296_v23 }
 0x2c7   :  { %v414_v43 = vpop.f32.mrf.mxu2 }
 0x2c8   :  { %v433_v46 = vmul.f32 %v414_v43, %v3266_v18  ;;  %v477_v43 = vmul.f32 %v215_v39, %v3271_v19 }
 0x2cf   :  { %v416_v44 = vpop.f32.mrf.mxu2 }
 0x2d0   :  { %v434_v47 = vmul.f32 %v416_v44, %v3258_v11  ;;  %v486_v44 = vpack.c.bf16 %v477_v43, %v476_v42 }
 0x2d2   :  { %v442_v49 = vpack.c.bf16 %v434_v47, %v433_v46  ;;  %489 = vmatpush.bf16.xpose.msrb.mxu1 %v486_v44  ;;  %v474_v46 = vmul.f32 %v212_v36, %v3290_v22  ;;  %v475_v47 = vmul.f32 %v215_v39, %v3284_v21 }
 0x2d4   :  { %449 = vmatpush.bf16.msra.mxu3 %v442_v49  ;;  %v485_v48 = vpack.c.bf16 %v475_v47, %v474_v46  ;;  %v472_v49 = vmul.f32 %v212_v36, %v3304_v25 }
 0x2d6   :  { %v484_v52 = vpack.c.bf16 %v473_v51, %v472_v49 }
 0x2d8   :  { %450 = vmatpush.bf16.msra.mxu3 %v441_v53  ;;  %v470_v53 = vmul.f32 %v212_v36, %v3317_v27 }
 0x2da   :  { %490 = vmatpush.bf16.xpose.msrb.mxu1 %v485_v48  ;;  %v483_v55 = vpack.c.bf16 %v471_v54, %v470_v53 }
 0x2dc   :  { %451 = vmatpush.bf16.msra.mxu3 %v440_v56  ;;  %v468_v56 = vmul.f32 %v212_v36, %v3330_v29 }
 0x2de   :  { %v482_v59 = vpack.c.bf16 %v469_v58, %v468_v56 }
 0x2e0   :  { %452 = vmatpush.bf16.msra.mxu3 %v439_v61  ;;  %v466_v61 = vmul.f32 %v212_v36, %v3341_v32 }
 0x2e2   :  { %491 = vmatpush.bf16.xpose.msrb.mxu1 %v484_v52  ;;  %v481_v0 = vpack.c.bf16 %v467_v63, %v466_v61 }
 0x2e4   :  { %453 = vmatpush.bf16.msra.mxu3 %v438_v57  ;;  %v464_v57 = vmul.f32 %v212_v36, %v3354_v34 }
 0x2e6   :  { %v480_v3 = vpack.c.bf16 %v465_v2, %v464_v57  ;;  %v218_v8 = vpop.f32.mrf.mxu0 }
 0x2e7   :  { %v727_v38 = vmul.f32 %v218_v8, %v3266_v18  ;;  %v725_v41 = vmul.f32 %v218_v8, %v3277_v20  ;;  %v721_v47 = vmul.f32 %v218_v8, %v3304_v25  ;;  %v719_v52 = vmul.f32 %v218_v8, %v3317_v27 }
 0x2e8   :  { %454 = vmatpush.bf16.msra.mxu3 %v437_v6  ;;  %v715_v61 = vmul.f32 %v218_v8, %v3341_v32  ;;  %v713_v57 = vmul.f32 %v218_v8, %v3354_v34 }
 0x2ea   :  { %492 = vmatpush.bf16.xpose.msrb.mxu1 %v483_v55  ;;  %v717_v55 = vmul.f32 %v218_v8, %v3330_v29 }
 0x2ec   :  { %455 = vmatpush.bf16.msra.mxu3 %v436_v7  ;;  %v3116_v7 = vmov 3  }
 0x2ed   :  { %2927 = vset.pattern.permute.xlu0 %v3116_v7 }
 0x2ee   :  { %511 = vperm.xlu0 %2927, %v3458_v62   ;;  %v221_v36 = vpop.f32.mrf.mxu0 }
 0x2ef   :  { %v728_v39 = vmul.f32 %v221_v36, %v3258_v11  ;;  %v726_v42 = vmul.f32 %v221_v36, %v3271_v19  ;;  %v724_v44 = vmul.f32 %v221_v36, %v3284_v21  ;;  %v722_v48 = vmul.f32 %v221_v36, %v3296_v23 }
 0x2f0   :  { %456 = vmatpush.bf16.msra.mxu3 %v435_v14  ;;  %v720_v53 = vmul.f32 %v221_v36, %v3311_v26  ;;  %v718_v56 = vmul.f32 %v221_v36, %v3324_v28  ;;  %v716_v63 = vmul.f32 %v221_v36, %v3336_v31  ;;  %v714_v2 = vmul.f32 %v221_v36, %v3348_v33 }
 0x2f1   :  { %v736_v40 = vpack.c.bf16 %v728_v39, %v727_v38  ;;  %v735_v43 = vpack.c.bf16 %v726_v42, %v725_v41  ;;  %v733_v49 = vpack.c.bf16 %v722_v48, %v721_v47 }
 0x2f2   :  { %493 = vmatpush.bf16.xpose.msrb.mxu1 %v482_v59  ;;  %v732_v54 = vpack.c.bf16 %v720_v53, %v719_v52  ;;  %v731_v58 = vpack.c.bf16 %v718_v56, %v717_v55 }
 0x2f3   :  { %457 = vmatmul.bf16.vlgmr.msra.gmra.mxu3 %v3410_v13  ;;  %737 = vmatpush.bf16.xpose.msrb.mxu2 %v736_v40 }
 0x2f4   :  { %556 = vmatpush.msrb.mxu3 %v3258_v11 }
 0x2f6   :  { %557 = vmatpush.msrb.mxu3 %v3266_v18 }
 0x2f8   :  { %558 = vmatpush.msrb.mxu3 %v3271_v19 }
 0x2fa   :  { %559 = vmatpush.msrb.mxu3 %v3277_v20  ;;  %494 = vmatpush.bf16.xpose.msrb.mxu1 %v481_v0  ;;  %v730_v0 = vpack.c.bf16 %v716_v63, %v715_v61 }
 0x2fb   :  { %738 = vmatpush.bf16.xpose.msrb.mxu2 %v735_v43 }
 0x2fc   :  { %560 = vmatpush.msrb.mxu3 %v3284_v21 }
 0x2fe   :  { %561 = vmatpush.msrb.mxu3 %v3290_v22 }
 0x300   :  { %562 = vmatpush.msrb.mxu3 %v3296_v23 }
 0x302   :  { %563 = vmatpush.msrb.mxu3 %v3304_v25  ;;  %495 = vmatpush.bf16.xpose.msrb.mxu1 %v480_v3  ;;  %v729_v3 = vpack.c.bf16 %v714_v2, %v713_v57 }
 0x304   :  { %564 = vmatpush.msrb.mxu3 %v3311_v26 }
 0x306   :  { %565 = vmatpush.msrb.mxu3 %v3317_v27 }
 0x308   :  { %566 = vmatpush.msrb.mxu3 %v3324_v28 }
 0x30a   :  { %567 = vmatpush.msrb.mxu3 %v3330_v29 }
 0x30c   :  { %568 = vmatpush.msrb.mxu3 %v3336_v31 }
 0x30e   :  { %569 = vmatpush.msrb.mxu3 %v3341_v32 }
 0x310   :  { %570 = vmatpush.msrb.mxu3 %v3348_v33 }
 0x312   :  { %571 = vmatpush.msrb.mxu3 %v3354_v34 }
 0x313   :  { %572 = vmatmul.f32.vlgmr.msrb.gmra.mxu3 %v2967_v35 }
 0x31b   :  { %575 = vmatmul.f32.gmra.mxu3 %v2969_v4 }
 0x376   :  { %v458_v6 = vpop.f32.mrf.mxu3 }
 0x37e   :  { %v460_v50 = vpop.f32.mrf.mxu3 }
 0x37f   :  { %v463_v60 = vpack.c.bf16 %v460_v50, %v458_v6 }
 0x381   :  { %496 = vmatmul.bf16.vlgmr.msrb.gmra.mxu1 %v463_v60 }
 0x396   :  { %v573_v14 = vpop.f32.mrf.mxu3 }
 0x397   :  { %2970 = vrcp.f32 %v573_v14 }
 0x39d   :  { %v2971_v9 = vpop.eup %2970 }
 0x39e   :  { %v576_v30 = vpop.f32.mrf.mxu3  ;;  %v581_v12 = vmul.f32 %v2971_v9, %v2967_v35  ;;  %v594_v35 = vpop.trf.xlu2 }
 0x39f   :  { %2972 = vrcp.f32 %v576_v30 }
 0x3a5   :  { %v2973_v37 = vpop.eup %2972 }
 0x3a6   :  { %v582_v15 = vmul.f32 %v2973_v37, %v2969_v4  ;;  %v723_v4 = vmul.f32 %v218_v8, %v3290_v22  ;;  %v595_v51 = vpop.trf.xlu2 }
 0x3a8   :  { %v584_v1 = vpack.c.bf16 %v582_v15, %v581_v12  ;;  %v734_v46 = vpack.c.bf16 %v724_v44, %v723_v4 }
 0x3aa   :  { %632 = vmatpush.bf16.msra.mxu3 %v584_v1  ;;  %739 = vmatpush.bf16.xpose.msrb.mxu2 %v734_v46 }
 0x3ad   :  { %2822 = vmatmul.msk.bf16.vlgmr.msra.gmra.mxu3 %vm345_vm2, %v593_v16 }
 0x3ae   :  { %v596_v59 = vpop.trf.xlu2 }
 0x3b2   :  { %740 = vmatpush.bf16.xpose.msrb.mxu2 %v733_v49 }
 0x3b6   :  { %v597_v6 = vpop.trf.xlu2 }
 0x3ba   :  { %741 = vmatpush.bf16.xpose.msrb.mxu2 %v732_v54 }
 0x3bd   :  { %2823 = vmatmul.msk.bf16.gmra.mxu3 %vm345_vm2, %v594_v35 }
 0x3be   :  { %v598_v50 = vpop.trf.xlu2 }
 0x3c2   :  { %742 = vmatpush.bf16.xpose.msrb.mxu2 %v731_v58 }
 0x3c6   :  { %v599_v14 = vpop.trf.xlu2 }
 0x3ca   :  { %743 = vmatpush.bf16.xpose.msrb.mxu2 %v730_v0 }
 0x3cd   :  { %2824 = vmatmul.msk.bf16.gmra.mxu3 %vm345_vm2, %v595_v51 }
 0x3ce   :  { %v600_v30 = vpop.trf.xlu2 }
 0x3d2   :  { %744 = vmatpush.bf16.xpose.msrb.mxu2 %v729_v3 }
 0x3dd   :  { %2825 = vmatmul.msk.bf16.gmra.mxu3 %vm345_vm2, %v596_v59 }
 0x3ed   :  { %2826 = vmatmul.msk.bf16.gmra.mxu3 %vm345_vm2, %v597_v6 }
 0x3fd   :  { %2827 = vmatmul.msk.bf16.gmra.mxu3 %vm345_vm2, %v598_v50 }
 0x3fe   :  { %v3483_v60 = vpop.f32.mrf.mxu1 }
 0x406   :  { %v3485_v7 = vpop.f32.mrf.mxu1 }
 0x407   :  { %792 = vmatpush.msra.mxu2 %v3485_v7 }
 0x409   :  { %793 = vmatpush.msra.mxu2 %v3483_v60 }
 0x40d   :  { %2828 = vmatmul.msk.bf16.gmra.mxu3 %vm345_vm2, %v599_v14 }
 0x41d   :  { %2829 = vmatmul.msk.bf16.gmra.mxu3 %vm345_vm2, %v600_v30 }
 0x430   :  { %v634_v8 = vpop.f32.mrf.mxu3 }
 0x431   :  { %v674_v30 = vmul.f32 %v634_v8, %v3354_v34  ;;  %v3516_v8 = vpop.permute.xlu0 %752 }
 0x438   :  { %v636_v9 = vpop.f32.mrf.mxu3 }
 0x439   :  { %v675_v50 = vmul.f32 %v636_v9, %v3348_v33 }
 0x440   :  { %v639_v37 = vpop.f32.mrf.mxu3 }
 0x441   :  { %v676_v6 = vmul.f32 %v639_v37, %v3341_v32 }
 0x448   :  { %v641_v12 = vpop.f32.mrf.mxu3 }
 0x449   :  { %v677_v2 = vmul.f32 %v641_v12, %v3336_v31 }
 0x44b   :  { %v691_v14 = vpack.c.bf16 %v677_v2, %v676_v6 }
 0x450   :  { %v644_v15 = vpop.f32.mrf.mxu3 }
 0x451   :  { %v678_v57 = vmul.f32 %v644_v15, %v3330_v29 }
 0x458   :  { %v646_v1 = vpop.f32.mrf.mxu3 }
 0x459   :  { %v679_v63 = vmul.f32 %v646_v1, %v3324_v28  ;;  %v3117_v1 = vmov 4  }
 0x45a   :  { %2928 = vset.pattern.permute.xlu1 %v3117_v1  ;;  %v68_v1 = vld [vmem:[%s4498_s1 + $0xb8] sm:$0xff] }
 0x45b   :  { %v692_v3 = vpack.c.bf16 %v679_v63, %v678_v57  ;;  %806 = vperm.xlu1 %2928, %v3458_v62   ;;  %v65_v63 = vld [vmem:[%s4498_s1 + $0xa0] sm:$0xff]  ;;  %v66_v57 = vld [vmem:[%s4498_s1 + $0xa8] sm:$0xff] }
 0x45c   :  { %2806 = vmatmul.msk.f32.gmra.mxu0 %vm70_vm1, %v65_v63 }
 0x460   :  { %v649_v16 = vpop.f32.mrf.mxu3 }
 0x461   :  { %v680_v61 = vmul.f32 %v649_v16, %v3317_v27  ;;  %v690_v16 = vpack.c.bf16 %v675_v50, %v674_v30  ;;  %v67_v30 = vld [vmem:[%s4498_s1 + $0xb0] sm:$0xff] }
 0x464   :  { %2807 = vmatmul.msk.f32.gmra.mxu0 %vm70_vm1, %v66_v57 }
 0x468   :  { %v651_v36 = vpop.f32.mrf.mxu3 }
 0x469   :  { %v681_v58 = vmul.f32 %v651_v36, %v3311_v26 }
 0x46b   :  { %v693_v0 = vpack.c.bf16 %v681_v58, %v680_v61 }
 0x46c   :  { %2808 = vmatmul.msk.f32.gmra.mxu0 %vm70_vm1, %v67_v30 }
 0x470   :  { %v654_v38 = vpop.f32.mrf.mxu3 }
 0x471   :  { %v682_v56 = vmul.f32 %v654_v38, %v3304_v25 }
 0x474   :  { %2809 = vmatmul.msk.f32.gmra.mxu0 %vm70_vm1, %v68_v1 }
 0x478   :  { %v656_v39 = vpop.f32.mrf.mxu3 }
 0x479   :  { %v683_v54 = vmul.f32 %v656_v39, %v3296_v23 }
 0x47b   :  { %v694_v59 = vpack.c.bf16 %v683_v54, %v682_v56 }
 0x480   :  { %v659_v40 = vpop.f32.mrf.mxu3 }
 0x481   :  { %v684_v53 = vmul.f32 %v659_v40, %v3290_v22 }
 0x488   :  { %v661_v41 = vpop.f32.mrf.mxu3 }
 0x489   :  { %v685_v51 = vmul.f32 %v661_v41, %v3284_v21 }
 0x48b   :  { %v695_v55 = vpack.c.bf16 %v685_v51, %v684_v53  ;;  %v888_v51 = vpop.trf.xlu2 }
 0x490   :  { %v664_v42 = vpop.f32.mrf.mxu3 }
 0x491   :  { %v686_v49 = vmul.f32 %v664_v42, %v3277_v20 }
 0x498   :  { %v666_v43 = vpop.f32.mrf.mxu3 }
 0x499   :  { %v687_v47 = vmul.f32 %v666_v43, %v3271_v19 }
 0x49b   :  { %v696_v52 = vpack.c.bf16 %v687_v47, %v686_v49 }
 0x4a0   :  { %v669_v35 = vpop.f32.mrf.mxu3 }
 0x4a1   :  { %v688_v44 = vmul.f32 %v669_v35, %v3266_v18 }
 0x4a8   :  { %v671_v4 = vpop.f32.mrf.mxu3 }
 0x4a9   :  { %v689_v46 = vmul.f32 %v671_v4, %v3258_v11 }
 0x4ab   :  { %v697_v48 = vpack.c.bf16 %v689_v46, %v688_v44 }
 0x4ad   :  { %698 = vmatpush.bf16.msra.mxu1 %v697_v48 }
 0x4b1   :  { %699 = vmatpush.bf16.msra.mxu1 %v696_v52  ;;  %v889_v52 = vpop.trf.xlu2 }
 0x4b5   :  { %700 = vmatpush.bf16.msra.mxu1 %v695_v55 }
 0x4b9   :  { %701 = vmatpush.bf16.msra.mxu1 %v694_v59  ;;  %v890_v53 = vpop.trf.xlu2 }
 0x4bd   :  { %702 = vmatpush.bf16.msra.mxu1 %v693_v0 }
 0x4c1   :  { %703 = vmatpush.bf16.msra.mxu1 %v692_v3  ;;  %v891_v54 = vpop.trf.xlu2 }
 0x4c5   :  { %704 = vmatpush.bf16.msra.mxu1 %v691_v14 }
 0x4c9   :  { %705 = vmatpush.bf16.msra.mxu1 %v690_v16  ;;  %v892_v55 = vpop.trf.xlu2 }
 0x4cc   :  { %706 = vmatmul.bf16.vlgmr.msra.gmra.mxu1 %v3410_v13 }
 0x4d1   :  { %v893_v56 = vpop.trf.xlu2 }
 0x4d9   :  { %v894_v58 = vpop.trf.xlu2 }
 0x4e1   :  { %v895_v59 = vpop.trf.xlu2 }
 0x549   :  { %v707_v15 = vpop.f32.mrf.mxu1 }
 0x551   :  { %v709_v12 = vpop.f32.mrf.mxu1 }
 0x552   :  { %v712_v36 = vpack.c.bf16 %v709_v12, %v707_v15 }
 0x554   :  { %745 = vmatmul.bf16.vlgmr.msrb.gmra.mxu2 %v712_v36 }
 0x564   :  { %2831 = vmatmul.msk.f32.vlgmr.msra.gmra.mxu2 %vm345_vm2, %v3252_v5  ;;  %v842_v5 = vpop.xlane.xlu0 %841 }
 0x565   :  { %v845_v38 = vsub.f32 %v3261_v17, %v842_v5 }
 0x567   :  { %v847_v39 = vmul.f32 1.442695, %v845_v38 }
 0x569   :  { %2974 = vpow2.f32 %v847_v39 }
 0x56c   :  { %v844_v40 = vpop.xlane.xlu0 %843 }
 0x56d   :  { %v846_v41 = vsub.f32 %v3298_v24, %v844_v40 }
 0x56f   :  { %v849_v42 = vmul.f32 1.442695, %v846_v41  ;;  %v2975_v17 = vpop.eup %2974 }
 0x571   :  { %2976 = vpow2.f32 %v849_v42 }
 0x577   :  { %v2977_v43 = vpop.eup %2976 }
 0x5d7   :  { %v3511_v9 = vpop.f32.mrf.mxu2 }
 0x5df   :  { %v3513_v37 = vpop.f32.mrf.mxu2 }
 0x5e0   :  { %770 = vmatpush.msrb.mxu1 %v3513_v37 }
 0x5e2   :  { %771 = vmatpush.msrb.mxu1 %v3511_v9 }
 0x5e3   :  { %2830 = vmatmul.msk.f32.vlgmr.msrb.gmra.mxu1 %vm345_vm2, %v3516_v8 }
 0x5e4   :  { %851 = vmatpush.msra.mxu1 %v3258_v11 }
 0x5e6   :  { %852 = vmatpush.msra.mxu1 %v3266_v18 }
 0x5e7   :  { %v3549_v61 = vpop.f32.mrf.mxu2 }
 0x5e8   :  { %853 = vmatpush.msra.mxu1 %v3271_v19 }
 0x5ea   :  { %854 = vmatpush.msra.mxu1 %v3277_v20 }
 0x5ec   :  { %855 = vmatpush.msra.mxu1 %v3284_v21 }
 0x5ee   :  { %856 = vmatpush.msra.mxu1 %v3290_v22 }
 0x5f0   :  { %857 = vmatpush.msra.mxu1 %v3296_v23 }
 0x5f2   :  { %858 = vmatpush.msra.mxu1 %v3304_v25 }
 0x5f4   :  { %859 = vmatpush.msra.mxu1 %v3311_v26 }
 0x5f6   :  { %860 = vmatpush.msra.mxu1 %v3317_v27 }
 0x5f8   :  { %861 = vmatpush.msra.mxu1 %v3324_v28 }
 0x5fa   :  { %862 = vmatpush.msra.mxu1 %v3330_v29 }
 0x5fc   :  { %863 = vmatpush.msra.mxu1 %v3336_v31 }
 0x5fe   :  { %864 = vmatpush.msra.mxu1 %v3341_v32 }
 0x600   :  { %865 = vmatpush.msra.mxu1 %v3348_v33 }
 0x602   :  { %866 = vmatpush.msra.mxu1 %v3354_v34 }
 0x603   :  { %867 = vmatmul.f32.vlgmr.msra.gmra.mxu1 %v2975_v17 }
 0x60b   :  { %870 = vmatmul.f32.gmra.mxu1 %v2977_v43 }
 0x660   :  { %v3539_v35 = vpop.f32.mrf.mxu1 }
 0x680   :  { %v868_v4 = vpop.f32.mrf.mxu1 }
 0x681   :  { %2978 = vrcp.f32 %v868_v4 }
 0x687   :  { %v2979_v24 = vpop.eup %2978 }
 0x688   :  { %v871_v44 = vpop.f32.mrf.mxu1  ;;  %v876_v47 = vmul.f32 %v2979_v24, %v2975_v17  ;;  %v3569_v17 = vpop.f32.mrf.mxu0 }
 0x689   :  { %2980 = vrcp.f32 %v871_v44 }
 0x68f   :  { %v2981_v46 = vpop.eup %2980 }
 0x690   :  { %v877_v48 = vmul.f32 %v2981_v46, %v2977_v43 }
 0x692   :  { %v879_v49 = vpack.c.bf16 %v877_v48, %v876_v47 }
 0x694   :  { %927 = vmatpush.bf16.msrb.mxu2 %v879_v49  ;;  %v1022_v49 = vmul.f32 %v3569_v17, %v3266_v18 }
 0x697   :  { %2832 = vmatmul.msk.bf16.vlgmr.msrb.gmra.mxu2 %vm345_vm2, %v888_v51  ;;  %v3578_v51 = vpop.f32.mrf.mxu0 }
 0x6a7   :  { %2833 = vmatmul.msk.bf16.gmra.mxu2 %vm345_vm2, %v889_v52 }
 0x6b7   :  { %2834 = vmatmul.msk.bf16.gmra.mxu2 %vm345_vm2, %v890_v53  ;;  %v1023_v53 = vmul.f32 %v3578_v51, %v3258_v11 }
 0x6c7   :  { %2835 = vmatmul.msk.bf16.gmra.mxu2 %vm345_vm2, %v891_v54 }
 0x6d7   :  { %2836 = vmatmul.msk.bf16.gmra.mxu2 %vm345_vm2, %v892_v55 }
 0x6e7   :  { %2837 = vmatmul.msk.bf16.gmra.mxu2 %vm345_vm2, %v893_v56  ;;  %v1031_v56 = vpack.c.bf16 %v1023_v53, %v1022_v49  ;;  %v3649_v49 = vld [vmem:[%s4501_s4 + $0x68] sm:$0xff] }
 0x6e9   :  { %1032 = vmatpush.bf16.xpose.msrb.mxu3 %v1031_v56 }
 0x6f7   :  { %2838 = vmatmul.msk.bf16.gmra.mxu2 %vm345_vm2, %v894_v58 }
 0x707   :  { %2839 = vmatmul.msk.bf16.gmra.mxu2 %vm345_vm2, %v895_v59  ;;  %v1020_v59 = vmul.f32 %v3569_v17, %v3277_v20 }
 0x71a   :  { %v3555_v0 = vpop.f32.mrf.mxu2 }
 0x722   :  { %v931_v2 = vpop.f32.mrf.mxu2 }
 0x72a   :  { %v934_v3 = vpop.f32.mrf.mxu2 }
 0x732   :  { %v936_v6 = vpop.f32.mrf.mxu2 }
 0x73a   :  { %v939_v50 = vpop.f32.mrf.mxu2 }
 0x742   :  { %v941_v14 = vpop.f32.mrf.mxu2 }
 0x743   :  { %v974_v1 = vmul.f32 %v941_v14, %v3324_v28  ;;  %v970_v14 = vmul.f32 %v931_v2, %v3348_v33  ;;  %v1014_v33 = vmul.f32 %v3569_v17, %v3317_v27 }
 0x74a   :  { %v944_v16 = vpop.f32.mrf.mxu2 }
 0x74b   :  { %v975_v30 = vmul.f32 %v944_v16, %v3317_v27  ;;  %v971_v16 = vmul.f32 %v934_v3, %v3341_v32  ;;  %v230_v3 = vpop.f32.mrf.mxu0  ;;  %v1011_v27 = vmul.f32 %v3578_v51, %v3336_v31 }
 0x752   :  { %v946_v15 = vpop.f32.mrf.mxu2 }
 0x753   :  { %v976_v63 = vmul.f32 %v946_v15, %v3311_v26  ;;  %v972_v15 = vmul.f32 %v936_v6, %v3336_v31  ;;  %v1008_v31 = vmul.f32 %v3569_v17, %v3354_v34 }
 0x75a   :  { %v949_v12 = vpop.f32.mrf.mxu2 }
 0x75b   :  { %v977_v58 = vmul.f32 %v949_v12, %v3304_v25  ;;  %v973_v12 = vmul.f32 %v939_v50, %v3330_v29  ;;  %v969_v50 = vmul.f32 %v3555_v0, %v3354_v34  ;;  %v1015_v0 = vmul.f32 %v3578_v51, %v3311_v26  ;;  %v3622_v26 = vld [vmem:[%s4501_s4 + $0x70] sm:$0xff] }
 0x75d   :  { %v985_v6 = vpack.c.bf16 %v970_v14, %v969_v50  ;;  %v1027_v2 = vpack.c.bf16 %v1015_v0, %v1014_v33  ;;  %v3118_v0 = vmov 5  }
 0x75e   :  { %2929 = vset.pattern.permute.xlu1 %v3118_v0 }
 0x75f   :  { %1079 = vperm.xlu1 %2929, %v3458_v62  }
 0x762   :  { %v951_v36 = vpop.f32.mrf.mxu2 }
 0x763   :  { %v978_v54 = vmul.f32 %v951_v36, %v3296_v23  ;;  %v988_v36 = vpack.c.bf16 %v976_v63, %v975_v30  ;;  %v3679_v30 = vld [vmem:[%s4501_s4 + $0x30] sm:$0xff] }
 0x765   :  { %v989_v57 = vpack.c.bf16 %v978_v54, %v977_v58  ;;  %v3661_v54 = vld [vmem:[%s4501_s4 + $0x58] sm:$0xff]  ;;  %v3667_v58 = vld [vmem:[%s4501_s4 + $0x40] sm:$0xff] }
 0x76a   :  { %v954_v5 = vpop.f32.mrf.mxu2 }
 0x76b   :  { %v979_v52 = vmul.f32 %v954_v5, %v3290_v22  ;;  %v987_v5 = vpack.c.bf16 %v974_v1, %v973_v12  ;;  %v3685_v1 = vld [vmem:[%s4501_s4 + $0x38] sm:$0xff] }
 0x772   :  { %v956_v38 = vpop.f32.mrf.mxu2 }
 0x773   :  { %v980_v47 = vmul.f32 %v956_v38, %v3284_v21 }
 0x775   :  { %v990_v55 = vpack.c.bf16 %v980_v47, %v979_v52  ;;  %v3643_v47 = vld [vmem:[%s4501_s4 + $0x60] sm:$0xff] }
 0x77a   :  { %v959_v39 = vpop.f32.mrf.mxu2 }
 0x77b   :  { %v981_v46 = vmul.f32 %v959_v39, %v3277_v20  ;;  %v1018_v20 = vmul.f32 %v3569_v17, %v3290_v22  ;;  %v986_v39 = vpack.c.bf16 %v972_v15, %v971_v16  ;;  %v1016_v22 = vmul.f32 %v3569_v17, %v3304_v25  ;;  %v3697_v15 = vld [vmem:[%s4501_s4 + $0x28] sm:$0xff] }
 0x77c   :  { %v1012_v25 = vmul.f32 %v3569_v17, %v3330_v29  ;;  %v1295_v29 = vmul.f32 %v3622_v26, %v230_v3 }
 0x782   :  { %v961_v40 = vpop.f32.mrf.mxu2 }
 0x783   :  { %v982_v44 = vmul.f32 %v961_v40, %v3271_v19 }
 0x785   :  { %v991_v48 = vpack.c.bf16 %v982_v44, %v981_v46 }
 0x78a   :  { %v964_v41 = vpop.f32.mrf.mxu2 }
 0x78b   :  { %v983_v43 = vmul.f32 %v964_v41, %v3266_v18  ;;  %v1021_v18 = vmul.f32 %v3578_v51, %v3271_v19  ;;  %v1019_v19 = vmul.f32 %v3578_v51, %v3284_v21  ;;  %v1017_v21 = vmul.f32 %v3578_v51, %v3296_v23 }
 0x78c   :  { %v1013_v23 = vmul.f32 %v3578_v51, %v3324_v28  ;;  %v3628_v28 = vld [vmem:[%s4501_s4 + $0x78] sm:$0xff] }
 0x78d   :  { %v1029_v38 = vpack.c.bf16 %v1019_v19, %v1018_v20  ;;  %v1028_v40 = vpack.c.bf16 %v1017_v21, %v1016_v22  ;;  %v3691_v20 = vld [vmem:[%s4501_s4 + $0x20] sm:$0xff] }
 0x78e   :  { %v1026_v41 = vpack.c.bf16 %v1013_v23, %v1012_v25  ;;  %v1285_v19 = vmul.f32 %v3691_v20, %v230_v3  ;;  %v3715_v21 = vld [vmem:[%s4501_s4] sm:$0xff] }
 0x792   :  { %v966_v42 = vpop.f32.mrf.mxu2 }
 0x793   :  { %v984_v4 = vmul.f32 %v966_v42, %v3258_v11  ;;  %v1030_v11 = vpack.c.bf16 %v1021_v18, %v1020_v59  ;;  %v1010_v42 = vmul.f32 %v3569_v17, %v3341_v32  ;;  %v1289_v59 = vmul.f32 %v3667_v58, %v230_v3  ;;  %v3673_v18 = vld [vmem:[%s4501_s4 + $0x48] sm:$0xff] }
 0x795   :  { %v992_v24 = vpack.c.bf16 %v984_v4, %v983_v43  ;;  %1033 = vmatpush.bf16.xpose.msrb.mxu3 %v1030_v11  ;;  %v233_v43 = vpop.f32.mrf.mxu0  ;;  %v1025_v4 = vpack.c.bf16 %v1011_v27, %v1010_v42  ;;  %v1287_v11 = vmul.f32 %v3679_v30, %v230_v3  ;;  %v3725_v27 = vpop.permute.xlu0 %1046 }
 0x796   :  { %v1296_v44 = vmul.f32 %v3628_v28, %v233_v43  ;;  %v1294_v34 = vmul.f32 %v3649_v49, %v233_v43  ;;  %v1290_v63 = vmul.f32 %v3673_v18, %v233_v43 }
 0x797   :  { %993 = vmatpush.bf16.msrb.mxu0 %v992_v24  ;;  %v3636_v24 = vld [vmem:[%s4501_s4 + $0x8] sm:$0xff] }
 0x798   :  { %v1304_v32 = vpack.c.bf16 %v1296_v44, %v1295_v29  ;;  %v1009_v46 = vmul.f32 %v3636_v24, %v3578_v51  ;;  %v3655_v51 = vld [vmem:[%s4501_s4 + $0x50] sm:$0xff] }
 0x799   :  { %v1291_v53 = vmul.f32 %v3655_v51, %v230_v3 }
 0x79a   :  { %1305 = vmatpush.bf16.xpose.msra.mxu2 %v1304_v32  ;;  %v1024_v17 = vpack.c.bf16 %v1009_v46, %v1008_v31 }
 0x79b   :  { %994 = vmatpush.bf16.msrb.mxu0 %v991_v48  ;;  %v1293_v48 = vmul.f32 %v3643_v47, %v230_v3 }
 0x79d   :  { %1034 = vmatpush.bf16.xpose.msrb.mxu3 %v1029_v38  ;;  %v1303_v52 = vpack.c.bf16 %v1294_v34, %v1293_v48  ;;  %v3703_v38 = vld [vmem:[%s4501_s4 + $0x10] sm:$0xff] }
 0x79e   :  { %v1283_v14 = vmul.f32 %v3703_v38, %v230_v3 }
 0x79f   :  { %995 = vmatpush.bf16.msrb.mxu0 %v990_v55  ;;  %v1292_v55 = vmul.f32 %v3661_v54, %v233_v43 }
 0x7a1   :  { %v1302_v56 = vpack.c.bf16 %v1292_v55, %v1291_v53 }
 0x7a2   :  { %1306 = vmatpush.bf16.xpose.msra.mxu2 %v1303_v52 }
 0x7a3   :  { %996 = vmatpush.bf16.msrb.mxu0 %v989_v57  ;;  %v1301_v57 = vpack.c.bf16 %v1290_v63, %v1289_v59 }
 0x7a5   :  { %1035 = vmatpush.bf16.xpose.msrb.mxu3 %v1028_v40  ;;  %v1282_v40 = vmul.f32 %v3636_v24, %v233_v43 }
 0x7a7   :  { %997 = vmatpush.bf16.msrb.mxu0 %v988_v36  ;;  %v1288_v36 = vmul.f32 %v3685_v1, %v233_v43 }
 0x7a9   :  { %v1300_v12 = vpack.c.bf16 %v1288_v36, %v1287_v11 }
 0x7aa   :  { %1307 = vmatpush.bf16.xpose.msra.mxu2 %v1302_v56 }
 0x7ab   :  { %998 = vmatpush.bf16.msrb.mxu0 %v987_v5  ;;  %v1286_v5 = vmul.f32 %v3697_v15, %v233_v43 }
 0x7ad   :  { %1036 = vmatpush.bf16.xpose.msrb.mxu3 %v1027_v2  ;;  %v1299_v16 = vpack.c.bf16 %v1286_v5, %v1285_v19 }
 0x7af   :  { %999 = vmatpush.bf16.msrb.mxu0 %v986_v39  ;;  %v3709_v39 = vld [vmem:[%s4501_s4 + $0x18] sm:$0xff] }
 0x7b0   :  { %v1284_v50 = vmul.f32 %v3709_v39, %v233_v43 }
 0x7b2   :  { %1308 = vmatpush.bf16.xpose.msra.mxu2 %v1301_v57  ;;  %v1298_v22 = vpack.c.bf16 %v1284_v50, %v1283_v14 }
 0x7b3   :  { %1000 = vmatpush.bf16.msrb.mxu0 %v985_v6  ;;  %v1281_v6 = vmul.f32 %v3715_v21, %v230_v3  ;;  %v1115_v3 = vpop.xlane.xlu0 %1114 }
 0x7b4   :  { %v1118_v43 = vsub.f32 %v3368_v45, %v1115_v3 }
 0x7b5   :  { %1037 = vmatpush.bf16.xpose.msrb.mxu3 %v1026_v41  ;;  %v1297_v33 = vpack.c.bf16 %v1282_v40, %v1281_v6 }
 0x7b6   :  { %1001 = vmatmul.bf16.vlgmr.msrb.gmra.mxu0 %v3410_v13 }
 0x7ba   :  { %1309 = vmatpush.bf16.xpose.msra.mxu2 %v1300_v12 }
 0x7bb   :  { %v1117_v29 = vpop.xlane.xlu0 %1116 }
 0x7bc   :  { %v1119_v44 = vsub.f32 %v3371_v10, %v1117_v29 }
 0x7bd   :  { %1038 = vmatpush.bf16.xpose.msrb.mxu3 %v1025_v4  ;;  %v1120_v4 = vmul.f32 1.442695, %v1118_v43 }
 0x7be   :  { %v1122_v32 = vmul.f32 1.442695, %v1119_v44 }
 0x7bf   :  { %2982 = vpow2.f32 %v1120_v4 }
 0x7c0   :  { %2984 = vpow2.f32 %v1122_v32 }
 0x7c2   :  { %1310 = vmatpush.bf16.xpose.msra.mxu2 %v1299_v16 }
 0x7c3   :  { %v1161_v56 = vpop.trf.xlu0 }
 0x7c5   :  { %1039 = vmatpush.bf16.xpose.msrb.mxu3 %v1024_v17  ;;  %v2983_v45 = vpop.eup %2982 }
 0x7c6   :  { %v2985_v31 = vpop.eup %2984 }
 0x7ca   :  { %1311 = vmatpush.bf16.xpose.msra.mxu2 %v1298_v22 }
 0x7cb   :  { %v1162_v59 = vpop.trf.xlu0 }
 0x7d2   :  { %1312 = vmatpush.bf16.xpose.msra.mxu2 %v1297_v33 }
 0x7d3   :  { %v1163_v63 = vpop.trf.xlu0 }
 0x7db   :  { %v1164_v57 = vpop.trf.xlu0 }
 0x7e3   :  { %v1165_v11 = vpop.trf.xlu0 }
 0x7eb   :  { %v1166_v36 = vpop.trf.xlu0 }
 0x7f3   :  { %v1167_v12 = vpop.trf.xlu0 }
 0x7fb   :  { %v1168_v19 = vpop.trf.xlu0 }
 0x833   :  { %v1002_v2 = vpop.f32.mrf.mxu0 }
 0x83b   :  { %v1004_v25 = vpop.f32.mrf.mxu0 }
 0x83c   :  { %v1007_v23 = vpack.c.bf16 %v1004_v25, %v1002_v2 }
 0x83e   :  { %1040 = vmatmul.bf16.vlgmr.msrb.gmra.mxu3 %v1007_v23 }
 0x8c1   :  { %v3720_v41 = vpop.f32.mrf.mxu3 }
 0x8c9   :  { %v3722_v42 = vpop.f32.mrf.mxu3 }
 0x8ca   :  { %1064 = vmatpush.msrb.mxu1 %v3722_v42 }
 0x8cc   :  { %1065 = vmatpush.msrb.mxu1 %v3720_v41 }
 0x8cd   :  { %2840 = vmatmul.msk.f32.vlgmr.msrb.gmra.mxu1 %vm345_vm2, %v3725_v27 }
 0x8ce   :  { %1124 = vmatpush.msra.mxu1 %v3628_v28 }
 0x8d0   :  { %1125 = vmatpush.msra.mxu1 %v3622_v26 }
 0x8d2   :  { %1126 = vmatpush.msra.mxu1 %v3649_v49 }
 0x8d4   :  { %1127 = vmatpush.msra.mxu1 %v3643_v47 }
 0x8d6   :  { %1128 = vmatpush.msra.mxu1 %v3661_v54 }
 0x8d8   :  { %1129 = vmatpush.msra.mxu1 %v3655_v51 }
 0x8da   :  { %1130 = vmatpush.msra.mxu1 %v3673_v18 }
 0x8dc   :  { %1131 = vmatpush.msra.mxu1 %v3667_v58 }
 0x8de   :  { %1132 = vmatpush.msra.mxu1 %v3685_v1 }
 0x8e0   :  { %1133 = vmatpush.msra.mxu1 %v3679_v30 }
 0x8e2   :  { %1134 = vmatpush.msra.mxu1 %v3697_v15 }
 0x8e4   :  { %1135 = vmatpush.msra.mxu1 %v3691_v20 }
 0x8e6   :  { %1136 = vmatpush.msra.mxu1 %v3709_v39 }
 0x8e8   :  { %1137 = vmatpush.msra.mxu1 %v3703_v38 }
 0x8ea   :  { %1138 = vmatpush.msra.mxu1 %v3636_v24 }
 0x8ec   :  { %1139 = vmatpush.msra.mxu1 %v3715_v21 }
 0x8ed   :  { %1140 = vmatmul.f32.vlgmr.msra.gmra.mxu1 %v2983_v45 }
 0x8f5   :  { %1143 = vmatmul.f32.gmra.mxu1 %v2985_v31 }
 0x94a   :  { %v3748_v46 = vpop.f32.mrf.mxu1 }
 0x96a   :  { %v1141_v48 = vpop.f32.mrf.mxu1 }
 0x96b   :  { %2986 = vrcp.f32 %v1141_v48 }
 0x971   :  { %v2987_v10 = vpop.eup %2986 }
 0x972   :  { %v1144_v34 = vpop.f32.mrf.mxu1  ;;  %v1149_v52 = vmul.f32 %v2987_v10, %v2983_v45 }
 0x973   :  { %2988 = vrcp.f32 %v1144_v34 }
 0x979   :  { %v2989_v17 = vpop.eup %2988 }
 0x97a   :  { %v1150_v53 = vmul.f32 %v2989_v17, %v2985_v31 }
 0x97c   :  { %v1152_v55 = vpack.c.bf16 %v1150_v53, %v1149_v52 }
 0x97e   :  { %1200 = vmatpush.bf16.msra.mxu0 %v1152_v55 }
 0x981   :  { %2841 = vmatmul.msk.bf16.vlgmr.msra.gmra.mxu0 %vm345_vm2, %v1161_v56 }
 0x991   :  { %2842 = vmatmul.msk.bf16.gmra.mxu0 %vm345_vm2, %v1162_v59 }
 0x9a1   :  { %2843 = vmatmul.msk.bf16.gmra.mxu0 %vm345_vm2, %v1163_v63 }
 0x9b1   :  { %2844 = vmatmul.msk.bf16.gmra.mxu0 %vm345_vm2, %v1164_v57 }
 0x9c1   :  { %2845 = vmatmul.msk.bf16.gmra.mxu0 %vm345_vm2, %v1165_v11 }
 0x9d1   :  { %2846 = vmatmul.msk.bf16.gmra.mxu0 %vm345_vm2, %v1166_v36 }
 0x9e1   :  { %2847 = vmatmul.msk.bf16.gmra.mxu0 %vm345_vm2, %v1167_v12 }
 0x9f1   :  { %2848 = vmatmul.msk.bf16.gmra.mxu0 %vm345_vm2, %v1168_v19 }
 0x9fe   :  { %v1202_v5 = vpop.f32.mrf.mxu0 }
 0xa06   :  { %v1204_v16 = vpop.f32.mrf.mxu0 }
 0xa0e   :  { %v1207_v14 = vpop.f32.mrf.mxu0 }
 0xa16   :  { %v1209_v50 = vpop.f32.mrf.mxu0 }
 0xa17   :  { %v1245_v12 = vmul.f32 %v3709_v39, %v1209_v50  ;;  %v1436_v50 = vld [vmem:[%s4498_s1 + $0x20] sm:$0xff] }
 0xa1e   :  { %v1212_v22 = vpop.f32.mrf.mxu0 }
 0xa1f   :  { %v1246_v36 = vmul.f32 %v3691_v20, %v1212_v22  ;;  %v1437_v22 = vld [vmem:[%s4498_s1 + $0x28] sm:$0xff] }
 0xa26   :  { %v1214_v6 = vpop.f32.mrf.mxu0 }
 0xa27   :  { %v1247_v57 = vmul.f32 %v3697_v15, %v1214_v6  ;;  %v2850_v6 = vld [vmem:[%s4497_s0 + $0x4] sm:$0xf] }
 0xa29   :  { %v1260_v19 = vpack.c.bf16 %v1247_v57, %v1246_v36 }
 0xa2e   :  { %v1217_v40 = vpop.f32.mrf.mxu0 }
 0xa2f   :  { %v1248_v63 = vmul.f32 %v3679_v30, %v1217_v40 }
 0xa36   :  { %v1219_v33 = vpop.f32.mrf.mxu0 }
 0xa37   :  { %v1249_v56 = vmul.f32 %v3685_v1, %v1219_v33  ;;  %v1242_v33 = vmul.f32 %v3715_v21, %v1202_v5  ;;  %v1432_v5 = vld [vmem:[%s4498_s1] sm:$0xff] }
 0xa39   :  { %v1261_v11 = vpack.c.bf16 %v1249_v56, %v1248_v63 }
 0xa3e   :  { %v1222_v0 = vpop.f32.mrf.mxu0 }
 0xa3f   :  { %v1250_v55 = vmul.f32 %v3667_v58, %v1222_v0  ;;  %v1243_v0 = vmul.f32 %v3636_v24, %v1204_v16  ;;  %v1434_v16 = vld [vmem:[%s4498_s1 + $0x10] sm:$0xff] }
 0xa41   :  { %v1258_v40 = vpack.c.bf16 %v1243_v0, %v1242_v33 }
 0xa46   :  { %v1224_v2 = vpop.f32.mrf.mxu0 }
 0xa47   :  { %v1251_v52 = vmul.f32 %v3673_v18, %v1224_v2  ;;  %v1244_v2 = vmul.f32 %v3703_v38, %v1207_v14  ;;  %v1435_v14 = vld [vmem:[%s4498_s1 + $0x18] sm:$0xff] }
 0xa49   :  { %v1262_v59 = vpack.c.bf16 %v1251_v52, %v1250_v55 }
 0xa4e   :  { %v1227_v25 = vpop.f32.mrf.mxu0 }
 0xa4f   :  { %v1252_v17 = vmul.f32 %v3655_v51, %v1227_v25  ;;  %v1259_v25 = vpack.c.bf16 %v1245_v12, %v1244_v2 }
 0xa56   :  { %v1229_v23 = vpop.f32.mrf.mxu0 }
 0xa57   :  { %v1253_v34 = vmul.f32 %v3661_v54, %v1229_v23  ;;  %v1438_v23 = vld [vmem:[%s4498_s1 + $0x30] sm:$0xff] }
 0xa59   :  { %v1263_v53 = vpack.c.bf16 %v1253_v34, %v1252_v17 }
 0xa5e   :  { %v1232_v3 = vpop.f32.mrf.mxu0 }
 0xa5f   :  { %v1254_v48 = vmul.f32 %v3643_v47, %v1232_v3  ;;  %v3066_v3 = vld [vmem:[%s4499_s2] sm:$0xf] }
 0xa60   :  { %1319 = vrot.lane.b32.xlu2 %v3066_v3, %s3119_s16  ;;  %s3125_s16 = smov 64  }
 0xa66   :  { %v1234_v43 = vpop.f32.mrf.mxu0 }
 0xa67   :  { %v1255_v45 = vmul.f32 %v3649_v49, %v1234_v43  ;;  %v1439_v43 = vld [vmem:[%s4498_s1 + $0x38] sm:$0xff] }
 0xa69   :  { %v1264_v10 = vpack.c.bf16 %v1255_v45, %v1254_v48  ;;  %v1444_v45 = vld [vmem:[%s4498_s1 + $0x60] sm:$0xff]  ;;  %v3120_v48 = vmov 6  }
 0xa6a   :  { %2930 = vset.pattern.permute.xlu1 %v3120_v48 }
 0xa6b   :  { %1352 = vperm.xlu1 %2930, %v3458_v62  }
 0xa6e   :  { %v1237_v4 = vpop.f32.mrf.mxu0 }
 0xa6f   :  { %v1256_v44 = vmul.f32 %v3622_v26, %v1237_v4  ;;  %v1440_v4 = vld [vmem:[%s4498_s1 + $0x40] sm:$0xff] }
 0xa76   :  { %v1239_v29 = vpop.f32.mrf.mxu0 }
 0xa77   :  { %v1257_v32 = vmul.f32 %v3628_v28, %v1239_v29  ;;  %v1441_v29 = vld [vmem:[%s4498_s1 + $0x48] sm:$0xff] }
 0xa79   :  { %v1265_v31 = vpack.c.bf16 %v1257_v32, %v1256_v44  ;;  %v1442_v44 = vld [vmem:[%s4498_s1 + $0x50] sm:$0xff]  ;;  %v1443_v32 = vld [vmem:[%s4498_s1 + $0x58] sm:$0xff] }
 0xa7b   :  { %1266 = vmatpush.bf16.msra.mxu3 %v1265_v31  ;;  %v1445_v31 = vld [vmem:[%s4498_s1 + $0x68] sm:$0xff] }
 0xa7f   :  { %1267 = vmatpush.bf16.msra.mxu3 %v1264_v10  ;;  %v3121_v10 = vmov 0  }
 0xa80   :  { %2931 = vset.pattern.permute.xlu1 %v3121_v10 }
 0xa81   :  { %1359 = vperm.xlu1 %2931, %v3458_v62  }
 0xa83   :  { %1268 = vmatpush.bf16.msra.mxu3 %v1263_v53 }
 0xa87   :  { %1269 = vmatpush.bf16.msra.mxu3 %v1262_v59 }
 0xa8b   :  { %1270 = vmatpush.bf16.msra.mxu3 %v1261_v11 }
 0xa8f   :  { %1271 = vmatpush.bf16.msra.mxu3 %v1260_v19 }
 0xa93   :  { %1272 = vmatpush.bf16.msra.mxu3 %v1259_v25 }
 0xa97   :  { %1273 = vmatpush.bf16.msra.mxu3 %v1258_v40 }
 0xa9a   :  { %1274 = vmatmul.bf16.vlgmr.msra.gmra.mxu3 %v3410_v13  ;;  %v1433_v13 = vld [vmem:[%s4498_s1 + $0x8] sm:$0xff] }
 0xa9b   :  { %2851 = vmatpush.msk.msrb.mxu3 %vm143_vm0, %v2850_v6 }
 0xa9d   :  { %2214 = vmatpush.msra.mxu3 %v3628_v28 }
 0xa9f   :  { %2215 = vmatpush.msra.mxu3 %v3622_v26 }
 0xaa1   :  { %2216 = vmatpush.msra.mxu3 %v3649_v49 }
 0xaa3   :  { %2217 = vmatpush.msra.mxu3 %v3643_v47 }
 0xaa5   :  { %2218 = vmatpush.msra.mxu3 %v3661_v54 }
 0xaa7   :  { %2219 = vmatpush.msra.mxu3 %v3655_v51 }
 0xaa9   :  { %2220 = vmatpush.msra.mxu3 %v3673_v18 }
 0xaaa   :  { %2852 = vmatmul.msk.f32.vlgmr.msrb.gmra.mxu3 %vm70_vm1, %v1432_v5 }
 0xaab   :  { %2221 = vmatpush.msra.mxu3 %v3667_v58 }
 0xaad   :  { %2222 = vmatpush.msra.mxu3 %v3685_v1 }
 0xaaf   :  { %2223 = vmatpush.msra.mxu3 %v3679_v30 }
 0xab1   :  { %2224 = vmatpush.msra.mxu3 %v3697_v15 }
 0xab2   :  { %2853 = vmatmul.msk.f32.gmra.mxu3 %vm70_vm1, %v1433_v13 }
 0xab3   :  { %2225 = vmatpush.msra.mxu3 %v3691_v20 }
 0xab5   :  { %2226 = vmatpush.msra.mxu3 %v3709_v39 }
 0xab7   :  { %2227 = vmatpush.msra.mxu3 %v3703_v38 }
 0xab9   :  { %2228 = vmatpush.msra.mxu3 %v3636_v24 }
 0xaba   :  { %2854 = vmatmul.msk.f32.gmra.mxu3 %vm70_vm1, %v1434_v16 }
 0xabb   :  { %2229 = vmatpush.msra.mxu3 %v3715_v21 }
 0xac2   :  { %2855 = vmatmul.msk.f32.gmra.mxu3 %vm70_vm1, %v1435_v14 }
 0xaca   :  { %2856 = vmatmul.msk.f32.gmra.mxu3 %vm70_vm1, %v1436_v50 }
 0xad2   :  { %2857 = vmatmul.msk.f32.gmra.mxu3 %vm70_vm1, %v1437_v22 }
 0xada   :  { %2858 = vmatmul.msk.f32.gmra.mxu3 %vm70_vm1, %v1438_v23 }
 0xae2   :  { %2859 = vmatmul.msk.f32.gmra.mxu3 %vm70_vm1, %v1439_v43 }
 0xaea   :  { %2860 = vmatmul.msk.f32.gmra.mxu3 %vm70_vm1, %v1440_v4 }
 0xaf2   :  { %2861 = vmatmul.msk.f32.gmra.mxu3 %vm70_vm1, %v1441_v29 }
 0xafa   :  { %2862 = vmatmul.msk.f32.gmra.mxu3 %vm70_vm1, %v1442_v44 }
 0xb02   :  { %2863 = vmatmul.msk.f32.gmra.mxu3 %vm70_vm1, %v1443_v32 }
 0xb0a   :  { %2864 = vmatmul.msk.f32.gmra.mxu3 %vm70_vm1, %v1444_v45 }
 0xb12   :  { %2865 = vmatmul.msk.f32.gmra.mxu3 %vm70_vm1, %v1445_v31 }
 0xb1d   :  { %v1275_v34 = vpop.f32.mrf.mxu3 }
 0xb25   :  { %v1277_v17 = vpop.f32.mrf.mxu3 }
 0xb26   :  { %v1280_v52 = vpack.c.bf16 %v1277_v17, %v1275_v34 }
 0xb28   :  { %1313 = vmatmul.bf16.vlgmr.msra.gmra.mxu2 %v1280_v52 }
 0xb2d   :  { %v1550_v53 = vpop.f32.mrf.mxu3 }
 0xb35   :  { %v1553_v55 = vpop.f32.mrf.mxu3 }
 0xb36   :  { %v1652_v2 = vmax.f32 %v1550_v53, %v1553_v55 }
 0xb38   :  { %v1653_v33 = vrot.slane %v1652_v2, 4 }
 0xb3a   :  { %v1654_v6 = vmax.f32 %v1652_v2, %v1653_v33 }
 0xb3c   :  { %v1655_v16 = vrot.slane %v1654_v6, 2 }
 0xb3d   :  { %v1556_v56 = vpop.f32.mrf.mxu3 }
 0xb3e   :  { %v1656_v23 = vmax.f32 %v1654_v6, %v1655_v16 }
 0xb40   :  { %v1657_v4 = vrot.slane %v1656_v23, 1 }
 0xb42   :  { %v1658_v45 = vmax.f32 %v1656_v23, %v1657_v4 }
 0xb44   :  { %v1659_v10 = vsub.f32 %v1550_v53, %v1658_v45  ;;  %v1660_v17 = vsub.f32 %v1553_v55, %v1658_v45 }
 0xb45   :  { %v1559_v59 = vpop.f32.mrf.mxu3 }
 0xb46   :  { %v1896_v63 = vmax.f32 %v1556_v56, %v1559_v59 }
 0xb48   :  { %v1897_v57 = vrot.slane %v1896_v63, 4 }
 0xb4a   :  { %v1898_v11 = vmax.f32 %v1896_v63, %v1897_v57  ;;  %v1663_v63 = vmul.f32 1.442695, %v1660_v17 }
 0xb4c   :  { %v1899_v36 = vrot.slane %v1898_v11, 2 }
 0xb4d   :  { %v1562_v12 = vpop.f32.mrf.mxu3 }
 0xb4e   :  { %v1900_v19 = vmax.f32 %v1898_v11, %v1899_v36 }
 0xb50   :  { %v1901_v0 = vrot.slane %v1900_v19, 1 }
 0xb52   :  { %v1902_v40 = vmax.f32 %v1900_v19, %v1901_v0 }
 0xb54   :  { %v1903_v62 = vsub.f32 %v1556_v56, %v1902_v40  ;;  %v1904_v5 = vsub.f32 %v1559_v59, %v1902_v40  ;;  %v1661_v59 = vmul.f32 1.442695, %v1659_v10 }
 0xb55   :  { %v1565_v25 = vpop.f32.mrf.mxu3 }
 0xb56   :  { %v1905_v14 = vmul.f32 1.442695, %v1903_v62  ;;  %v2180_v50 = vmax.f32 %v1562_v12, %v1565_v25  ;;  %v1907_v22 = vmul.f32 1.442695, %v1904_v5 }
 0xb58   :  { %2990 = vpow2.f32 %v1905_v14  ;;  %v2181_v3 = vrot.slane %v2180_v50, 4 }
 0xb59   :  { %2992 = vpow2.f32 %v1907_v22 }
 0xb5a   :  { %v2182_v29 = vmax.f32 %v2180_v50, %v2181_v3  ;;  %2994 = vpow2.f32 %v1661_v59 }
 0xb5b   :  { %2996 = vpow2.f32 %v1663_v63 }
 0xb5c   :  { %v2183_v31 = vrot.slane %v2182_v29, 2 }
 0xb5d   :  { %v3856_v13 = vpop.f32.mrf.mxu3 }
 0xb5e   :  { %v2991_v44 = vpop.eup %2990  ;;  %v2184_v52 = vmax.f32 %v2182_v29, %v2183_v31 }
 0xb5f   :  { %v2993_v32 = vpop.eup %2992 }
 0xb60   :  { %v1909_v34 = vadd.f32 %v2993_v32, %v2991_v44  ;;  %v2185_v57 = vrot.slane %v2184_v52, 1  ;;  %v2995_v33 = vpop.eup %2994 }
 0xb61   :  { %v2997_v53 = vpop.eup %2996 }
 0xb62   :  { %v1910_v56 = vrot.slane %v1909_v34, 4  ;;  %v2186_v19 = vmax.f32 %v2184_v52, %v2185_v57  ;;  %v1665_v5 = vadd.f32 %v2997_v53, %v2995_v33 }
 0xb64   :  { %v1911_v36 = vadd.f32 %v1910_v56, %v1909_v34  ;;  %v2187_v0 = vsub.f32 %v1562_v12, %v2186_v19  ;;  %v2188_v40 = vsub.f32 %v1565_v25, %v2186_v19  ;;  %v1666_v22 = vrot.slane %v1665_v5, 4 }
 0xb65   :  { %v3858_v43 = vpop.f32.mrf.mxu3 }
 0xb66   :  { %v1912_v2 = vrot.slane %v1911_v36, 2  ;;  %v2189_v62 = vmul.f32 1.442695, %v2187_v0  ;;  %v2191_v16 = vmul.f32 1.442695, %v2188_v40  ;;  %v1667_v12 = vadd.f32 %v1666_v22, %v1665_v5 }
 0xb67   :  { %v798_v40 = vmax.f32 %v3511_v9, %v3513_v37 }
 0xb68   :  { %v1913_v55 = vadd.f32 %v1912_v2, %v1911_v36  ;;  %2998 = vpow2.f32 %v2189_v62  ;;  %v1668_v29 = vrot.slane %v1667_v12, 2 }
 0xb69   :  { %3000 = vpow2.f32 %v2191_v16  ;;  %v799_v5 = vrot.slane %v798_v40, 4 }
 0xb6a   :  { %v1914_v14 = vrot.slane %v1913_v55, 1  ;;  %v1669_v52 = vadd.f32 %v1668_v29, %v1667_v12 }
 0xb6b   :  { %v800_v12 = vmax.f32 %v798_v40, %v799_v5 }
 0xb6c   :  { %v1915_v50 = vadd.f32 %v1914_v14, %v1913_v55  ;;  %v1670_v63 = vrot.slane %v1669_v52, 1 }
 0xb6d   :  { %v3860_v48 = vpop.f32.mrf.mxu3  ;;  %v801_v37 = vrot.slane %v800_v12, 2 }
 0xb6e   :  { %1676 = vmax.xlane.f32.xlu1 %v3860_v48  ;;  %3002 = vrcp.f32 %v1915_v50  ;;  %v2999_v3 = vpop.eup %2998  ;;  %v1671_v19 = vadd.f32 %v1670_v63, %v1669_v52 }
 0xb6f   :  { %v3001_v25 = vpop.eup %3000 }
 0xb70   :  { %v2193_v34 = vadd.f32 %v3001_v25, %v2999_v3  ;;  %3004 = vrcp.f32 %v1671_v19 }
 0xb72   :  { %v2194_v59 = vrot.slane %v2193_v34, 4 }
 0xb74   :  { %v3003_v4 = vpop.eup %3002  ;;  %v2195_v36 = vadd.f32 %v2194_v59, %v2193_v34 }
 0xb75   :  { %v3863_v11 = vpop.f32.mrf.mxu3  ;;  %v1917_v31 = vmul.f32 0.25, %v3003_v4 }
 0xb76   :  { %1678 = vmax.xlane.f32.xlu1 %v3863_v11  ;;  %v2196_v2 = vrot.slane %v2195_v36, 2  ;;  %v3005_v62 = vpop.eup %3004 }
 0xb77   :  { %v1918_v10 = vmul.f32 %v2991_v44, %v1917_v31  ;;  %v1919_v17 = vmul.f32 %v2993_v32, %v1917_v31  ;;  %v502_v44 = vmax.f32 %v3483_v60, %v3485_v7  ;;  %v1071_v32 = vmax.f32 %v3720_v41, %v3722_v42 }
 0xb78   :  { %v2197_v0 = vadd.f32 %v2196_v2, %v2195_v36  ;;  %v1673_v50 = vmul.f32 0.25, %v3005_v62  ;;  %v802_v42 = vmax.f32 %v800_v12, %v801_v37 }
 0xb79   :  { %v1957_v56 = vpack.c.bf16 %v1919_v17, %v1918_v10  ;;  %v503_v16 = vrot.slane %v502_v44, 4  ;;  %v1072_v14 = vrot.slane %v1071_v32, 4  ;;  %v3883_v17 = vpop.permute.xlu1 %806 }
 0xb7a   :  { %v2198_v55 = vrot.slane %v2197_v0, 1  ;;  %v1674_v31 = vmul.f32 %v2995_v33, %v1673_v50  ;;  %v1675_v34 = vmul.f32 %v2997_v53, %v1673_v50  ;;  %v803_v36 = vrot.slane %v802_v42, 1  ;;  %v3885_v33 = vpop.permute.xlu2 %1319  ;;  %v3893_v50 = vpop.permute.xlu0 %511 }
 0xb7b   :  { %1959 = vxpose.xlu0.c.b16.start.end [1/1] (short) %v1957_v56, 128  ;;  %v504_v4 = vmax.f32 %v502_v44, %v503_v16  ;;  %v1073_v29 = vmax.f32 %v1071_v32, %v1072_v14  ;;  %4507 = vst [vmem:[#allocation6_spill] sm:$0xff] %v3885_v33 }
 0xb7c   :  { %v2199_v22 = vadd.f32 %v2198_v55, %v2197_v0  ;;  %v1713_v7 = vpack.c.bf16 %v1675_v34, %v1674_v31  ;;  %v804_v55 = vmax.f32 %v802_v42, %v803_v36 }
 0xb7d   :  { %v3866_v6 = vpop.f32.mrf.mxu3  ;;  %v505_v10 = vrot.slane %v504_v4, 2  ;;  %v1074_v60 = vrot.slane %v1073_v29, 2 }
 0xb7e   :  { %3006 = vrcp.f32 %v2199_v22  ;;  %v809_v12 = vmul.f32 %v3883_v17, %v804_v55 }
 0xb7f   :  { %v506_v52 = vmax.f32 %v504_v4, %v505_v10  ;;  %v1075_v56 = vmax.f32 %v1073_v29, %v1074_v60 }
 0xb81   :  { %v507_v53 = vrot.slane %v506_v52, 1  ;;  %v1076_v2 = vrot.slane %v1075_v56, 1  ;;  %v3887_v40 = vpop.permute.xlu1 %1079 }
 0xb83   :  { %v508_v5 = vmax.f32 %v506_v52, %v507_v53  ;;  %v1077_v16 = vmax.f32 %v1075_v56, %v1076_v2 }
 0xb84   :  { %v3007_v41 = vpop.eup %3006 }
 0xb85   :  { %v3868_v23 = vpop.f32.mrf.mxu3  ;;  %v2201_v63 = vmul.f32 0.25, %v3007_v41 }
 0xb86   :  { %1922 = vmax.xlane.f32.xlu2 %v3868_v23 }
 0xb87   :  { %v2202_v44 = vmul.f32 %v2999_v3, %v2201_v63  ;;  %v2203_v32 = vmul.f32 %v3001_v25, %v2201_v63  ;;  %v514_v3 = vmul.f32 %v3893_v50, %v508_v5  ;;  %v1082_v25 = vmul.f32 %v3887_v40, %v1077_v16 }
 0xb89   :  { %v2241_v22 = vpack.c.bf16 %v2203_v32, %v2202_v44  ;;  %v3900_v31 = vpop.permute.xlu1 %1352  ;;  %v810_v34 = vadd.f32 %v809_v12, %v514_v3 }
 0xb8a   :  { %4508 = vst [vmem:[#allocation7_spill] sm:$0xff] %v3900_v31 }
 0xb8b   :  { %v1083_v37 = vadd.f32 %v1082_v25, %v810_v34 }
 0xb8d   :  { %v3871_v45 = vpop.f32.mrf.mxu3 }
 0xb8e   :  { %2204 = vmax.xlane.f32.xlu2 %v3871_v45 }
 0xb95   :  { %v3874_v57 = vpop.f32.mrf.mxu3 }
 0xb96   :  { %2206 = vmax.xlane.f32.xlu2 %v3874_v57 }
 0xbab   :  { %v1314_v9 = vpop.f32.mrf.mxu2 }
 0xbb0   :  { %1715 = vxpose.xlu1.c.b16.start.end [1/1] (short) %v1713_v7, 128 }
 0xbb3   :  { %v1316_v59 = vpop.f32.mrf.mxu2 }
 0xbb4   :  { %v1344_v19 = vmax.f32 %v1314_v9, %v1316_v59  ;;  %1337 = vmatpush.msrb.mxu1 %v1316_v59 }
 0xbb6   :  { %v1345_v0 = vrot.slane %v1344_v19, 4  ;;  %1338 = vmatpush.msrb.mxu1 %v1314_v9 }
 0xbb7   :  { %2849 = vmatmul.msk.f32.vlgmr.msrb.gmra.mxu1 %vm345_vm2, %v3885_v33 }
 0xbb8   :  { %v1346_v62 = vmax.f32 %v1344_v19, %v1345_v0  ;;  %1380 = vmatpush.msra.mxu1 %v3628_v28 }
 0xbba   :  { %v1347_v14 = vrot.slane %v1346_v62, 2  ;;  %1381 = vmatpush.msra.mxu1 %v3622_v26 }
 0xbbc   :  { %v1348_v4 = vmax.f32 %v1346_v62, %v1347_v14  ;;  %1382 = vmatpush.msra.mxu1 %v3649_v49 }
 0xbbe   :  { %v1349_v29 = vrot.slane %v1348_v4, 1  ;;  %1383 = vmatpush.msra.mxu1 %v3643_v47 }
 0xbbf   :  { %2243 = vxpose.xlu2.c.b16.start.end [1/1] (short) %v2241_v22, 128 }
 0xbc0   :  { %v1350_v9 = vmax.f32 %v1348_v4, %v1349_v29  ;;  %1384 = vmatpush.msra.mxu1 %v3661_v54 }
 0xbc2   :  { %v1355_v10 = vmul.f32 %v3900_v31, %v1350_v9  ;;  %1385 = vmatpush.msra.mxu1 %v3655_v51 }
 0xbc4   :  { %v1356_v60 = vadd.f32 %v1355_v10, %v1083_v37  ;;  %1386 = vmatpush.msra.mxu1 %v3673_v18 }
 0xbc6   :  { %1387 = vmatpush.msra.mxu1 %v3667_v58 }
 0xbc8   :  { %1388 = vmatpush.msra.mxu1 %v3685_v1 }
 0xbca   :  { %1389 = vmatpush.msra.mxu1 %v3679_v30 }
 0xbcc   :  { %1390 = vmatpush.msra.mxu1 %v3697_v15 }
 0xbce   :  { %1391 = vmatpush.msra.mxu1 %v3691_v20 }
 0xbd0   :  { %1392 = vmatpush.msra.mxu1 %v3709_v39 }
 0xbd2   :  { %1393 = vmatpush.msra.mxu1 %v3703_v38 }
 0xbd4   :  { %1394 = vmatpush.msra.mxu1 %v3636_v24 }
 0xbd6   :  { %1395 = vmatpush.msra.mxu1 %v3715_v21 }
 0xbd8   :  { %1686 = vmatpush.msrb.mxu1 %v3628_v28 }
 0xbda   :  { %1687 = vmatpush.msrb.mxu1 %v3622_v26  ;;  %v796_v26 = vadd.f32 %v3549_v61, %v3539_v35 }
 0xbdc   :  { %1688 = vmatpush.msrb.mxu1 %v3649_v49  ;;  %v1070_v28 = vadd.f32 %v3748_v46, %v796_v26 }
 0xbde   :  { %1689 = vmatpush.msrb.mxu1 %v3643_v47 }
 0xbe0   :  { %1690 = vmatpush.msrb.mxu1 %v3661_v54 }
 0xbe2   :  { %1691 = vmatpush.msrb.mxu1 %v3655_v51  ;;  %v3934_v51 = vpop.permute.xlu1 %1359 }
 0xbe3   :  { %4509 = vst [vmem:[#allocation8_spill] sm:$0xff] %v3934_v51 }
 0xbe4   :  { %1692 = vmatpush.msrb.mxu1 %v3673_v18 }
 0xbe6   :  { %1693 = vmatpush.msrb.mxu1 %v3667_v58 }
 0xbe8   :  { %1694 = vmatpush.msrb.mxu1 %v3685_v1 }
 0xbea   :  { %1695 = vmatpush.msrb.mxu1 %v3679_v30 }
 0xbec   :  { %1696 = vmatpush.msrb.mxu1 %v3697_v15  ;;  %v1677_v15 = vpop.xlane.xlu1 %1676 }
 0xbed   :  { %v1680_v52 = vsub.f32 %v3860_v48, %v1677_v15  ;;  %v2445_v48 = vmax.f32 %v3856_v13, %v3858_v43 }
 0xbee   :  { %1697 = vmatpush.msrb.mxu1 %v3691_v20 }
 0xbef   :  { %v1682_v36 = vmul.f32 1.442695, %v1680_v52  ;;  %v2446_v5 = vrot.slane %v2445_v48, 4 }
 0xbf0   :  { %1698 = vmatpush.msrb.mxu1 %v3709_v39 }
 0xbf1   :  { %3008 = vpow2.f32 %v1682_v36  ;;  %v2447_v16 = vmax.f32 %v2445_v48, %v2446_v5  ;;  %v1450_v48 = vld [vmem:[%s4498_s1 + $0x90] sm:$0xff]  ;;  %v3123_v5 = vmov 2  }
 0xbf2   :  { %1699 = vmatpush.msrb.mxu1 %v3703_v38  ;;  %2933 = vset.pattern.permute.xlu0 %v3123_v5 }
 0xbf3   :  { %v2448_v14 = vrot.slane %v2447_v16, 2 }
 0xbf4   :  { %1700 = vmatpush.msrb.mxu1 %v3636_v24  ;;  %v1679_v2 = vpop.xlane.xlu1 %1678 }
 0xbf5   :  { %v1681_v44 = vsub.f32 %v3863_v11, %v1679_v2  ;;  %v2449_v22 = vmax.f32 %v2447_v16, %v2448_v14  ;;  %v3067_v16 = vld [vmem:[%s4500_s3] sm:$0xf] }
 0xbf6   :  { %1701 = vmatpush.msrb.mxu1 %v3715_v21 }
 0xbf7   :  { %v1684_v32 = vmul.f32 1.442695, %v1681_v44  ;;  %v3009_v55 = vpop.eup %3008  ;;  %v2450_v12 = vrot.slane %v2449_v22, 1  ;;  %v1448_v44 = vld [vmem:[%s4498_s1 + $0x80] sm:$0xff] }
 0xbf9   :  { %3010 = vpow2.f32 %v1684_v32  ;;  %v2451_v4 = vmax.f32 %v2449_v22, %v2450_v12  ;;  %v1451_v22 = vld [vmem:[%s4498_s1 + $0x98] sm:$0xff] }
 0xbfb   :  { %v2452_v3 = vsub.f32 %v3856_v13, %v2451_v4  ;;  %v2453_v25 = vsub.f32 %v3858_v43, %v2451_v4 }
 0xbfd   :  { %v2454_v11 = vmul.f32 1.442695, %v2452_v3  ;;  %v2456_v29 = vmul.f32 1.442695, %v2453_v25  ;;  %v1452_v25 = vld [vmem:[%s4498_s1 + $0xa0] sm:$0xff] }
 0xbff   :  { %v3011_v62 = vpop.eup %3010  ;;  %3012 = vpow2.f32 %v2454_v11  ;;  %v4115_v11 = vld [vmem:[%s4501_s4 + $0x78] sm:$0xff] }
 0xc00   :  { %3014 = vpow2.f32 %v2456_v29 }
 0xc05   :  { %v3013_v34 = vpop.eup %3012 }
 0xc06   :  { %v3015_v9 = vpop.eup %3014 }
 0xc07   :  { %v2458_v37 = vadd.f32 %v3015_v9, %v3013_v34 }
 0xc09   :  { %v2459_v10 = vrot.slane %v2458_v37, 4 }
 0xc34   :  { %v1340_v47 = vpop.f32.mrf.mxu1 }
 0xc35   :  { %v1343_v49 = vadd.f32 %v1340_v47, %v1070_v28 }
 0xc37   :  { %v1357_v54 = vsub.f32 %v1343_v49, %v1356_v60  ;;  %v2460_v60 = vadd.f32 %v2459_v10, %v2458_v37  ;;  %v1454_v10 = vld [vmem:[%s4498_s1 + $0xb0] sm:$0xff] }
 0xc39   :  { %v3937_v58 = vadd.f32 %v3934_v51, %v1357_v54  ;;  %v2461_v26 = vrot.slane %v2460_v60, 2 }
 0xc3b   :  { %v1363_v18 = vsel %vm143_vm0, %v3937_v58, 0.0  ;;  %v1370_v30 = vmul.f32 %v3937_v58, %v3937_v58  ;;  %v2462_v28 = vadd.f32 %v2461_v26, %v2460_v60  ;;  %v4121_v60 = vld [vmem:[%s4501_s4 + $0x68] sm:$0xff] }
 0xc3c   :  { %v1364_v1 = vrot.slane %v1363_v18, 4 }
 0xc3d   :  { %v1371_v20 = vsel %vm143_vm0, %v1370_v30, 0.0  ;;  %v2463_v47 = vrot.slane %v2462_v28, 1 }
 0xc3e   :  { %v1365_v35 = vadd.f32 %v1364_v1, %v1363_v18  ;;  %v1372_v61 = vrot.slane %v1371_v20, 4  ;;  %v1446_v1 = vld [vmem:[%s4498_s1 + $0x70] sm:$0xff] }
 0xc3f   :  { %v2464_v49 = vadd.f32 %v2463_v47, %v2462_v28  ;;  %2866 = vmatmul.msk.f32.gmra.mxu3 %vm70_vm1, %v1446_v1 }
 0xc40   :  { %v1366_v46 = vrot.slane %v1365_v35, 2  ;;  %v1373_v7 = vadd.f32 %v1372_v61, %v1371_v20 }
 0xc41   :  { %3016 = vrcp.f32 %v2464_v49 }
 0xc42   :  { %v1367_v41 = vadd.f32 %v1366_v46, %v1365_v35  ;;  %v1374_v42 = vrot.slane %v1373_v7, 2 }
 0xc44   :  { %v1368_v56 = vrot.slane %v1367_v41, 1  ;;  %v1375_v59 = vadd.f32 %v1374_v42, %v1373_v7 }
 0xc46   :  { %v1376_v63 = vrot.slane %v1375_v59, 1  ;;  %v1369_v19 = vadd.f32 %v1368_v56, %v1367_v41 }
 0xc47   :  { %v3017_v54 = vpop.eup %3016 }
 0xc48   :  { %v1377_v53 = vadd.f32 %v1376_v63, %v1375_v59  ;;  %v2466_v13 = vmul.f32 0.25, %v3017_v54 }
 0xc4a   :  { %v1379_v0 = vsel %vm1378_vm3, %v1369_v19, %v1377_v53  ;;  %v2467_v18 = vmul.f32 %v3013_v34, %v2466_v13  ;;  %v2468_v43 = vmul.f32 %v3015_v9, %v2466_v13  ;;  %v1447_v53 = vld [vmem:[%s4498_s1 + $0x78] sm:$0xff]  ;;  %v1453_v34 = vld [vmem:[%s4498_s1 + $0xa8] sm:$0xff] }
 0xc4b   :  { %1396 = vmatmul.f32.vlgmr.msra.gmra.mxu1 %v1379_v0  ;;  %2867 = vmatmul.msk.f32.gmra.mxu3 %vm70_vm1, %v1447_v53 }
 0xc4c   :  { %v2506_v30 = vpack.c.bf16 %v2468_v43, %v2467_v18  ;;  %v4033_v43 = vld [vmem:[%s4501_s4 + $0x20] sm:$0xff] }
 0xc53   :  { %1702 = vmatmul.f32.vlgmr.msrb.gmra.mxu1 %v3009_v55  ;;  %2868 = vmatmul.msk.f32.gmra.mxu3 %vm70_vm1, %v1448_v44 }
 0xc5b   :  { %1705 = vmatmul.f32.gmra.mxu1 %v3011_v62 }
 0xc5c   :  { %v1723_v52 = vpop.trf.xlu1 }
 0xc6c   :  { %v1724_v56 = vpop.trf.xlu1 }
 0xc7c   :  { %v1725_v59 = vpop.trf.xlu1 }
 0xc80   :  { %1920 = vmax.xlane.f32.xlu1 %v3866_v6 }
 0xc8c   :  { %v1726_v63 = vpop.trf.xlu1 }
 0xc9c   :  { %v1727_v36 = vpop.trf.xlu1 }
 0xcac   :  { %v1728_v19 = vpop.trf.xlu1 }
 0xcba   :  { %2508 = vxpose.xlu1.c.b16.start.end [1/1] (short) %v2506_v30, 128  ;;  %v4041_v30 = vld [vmem:[%s4501_s4 + $0x28] sm:$0xff] }
 0xcbc   :  { %v1729_v2 = vpop.trf.xlu1 }
 0xcc2   :  { %v3969_v0 = vpop.f32.mrf.mxu3 }
 0xcc3   :  { %2469 = vmax.xlane.f32.xlu0 %v3969_v0 }
 0xcc8   :  { %v3955_v20 = vpop.f32.mrf.mxu1 }
 0xcc9   :  { %v1400_v5 = vmul.f32 0.015625, %v3955_v20 }
 0xccc   :  { %v1730_v32 = vpop.trf.xlu1 }
 0xcd0   :  { %v1703_v35 = vpop.f32.mrf.mxu1 }
 0xcd1   :  { %3018 = vrcp.f32 %v1703_v35 }
 0xcd7   :  { %v3019_v15 = vpop.eup %3018  ;;  %1427 = vperm.xlu0 %2933, %v3067_v16  }
 0xcd8   :  { %v1706_v61 = vpop.f32.mrf.mxu1  ;;  %v1711_v7 = vmul.f32 %v3019_v15, %v3009_v55  ;;  %v1449_v55 = vld [vmem:[%s4498_s1 + $0x88] sm:$0xff] }
 0xcd9   :  { %3020 = vrcp.f32 %v1706_v61  ;;  %2869 = vmatmul.msk.f32.gmra.mxu3 %vm70_vm1, %v1449_v55 }
 0xcdf   :  { %v3021_v46 = vpop.eup %3020 }
 0xce0   :  { %v1712_v41 = vmul.f32 %v3021_v46, %v3011_v62  ;;  %v3122_v62 = vmov 1   ;;  %v4051_v46 = vpop.trf.xlu0 }
 0xce1   :  { %2870 = vmatmul.msk.f32.gmra.mxu3 %vm70_vm1, %v1450_v48 }
 0xce2   :  { %v1714_v42 = vpack.c.bf16 %v1712_v41, %v1711_v7 }
 0xce4   :  { %1762 = vmatpush.bf16.msrb.mxu2 %v1714_v42  ;;  %v4059_v42 = vld [vmem:[%s4501_s4 + $0x30] sm:$0xff] }
 0xce7   :  { %2876 = vmatmul.msk.bf16.vlgmr.msrb.gmra.mxu2 %vm345_vm2, %v1723_v52 }
 0xce9   :  { %2871 = vmatmul.msk.f32.gmra.mxu3 %vm70_vm1, %v1451_v22 }
 0xcf1   :  { %2872 = vmatmul.msk.f32.gmra.mxu3 %vm70_vm1, %v1452_v25 }
 0xcf3   :  { %v4054_v7 = vpop.xlane.xlu1 %1920 }
 0xcf7   :  { %2877 = vmatmul.msk.bf16.gmra.mxu2 %vm345_vm2, %v1724_v56  ;;  %v4067_v56 = vld [vmem:[%s4501_s4 + $0x38] sm:$0xff] }
 0xcf9   :  { %2873 = vmatmul.msk.f32.gmra.mxu3 %vm70_vm1, %v1453_v34 }
 0xd01   :  { %2874 = vmatmul.msk.f32.gmra.mxu3 %vm70_vm1, %v1454_v10 }
 0xd07   :  { %2878 = vmatmul.msk.bf16.gmra.mxu2 %vm345_vm2, %v1725_v59 }
 0xd0d   :  { %2932 = vset.pattern.permute.xlu1 %v3122_v62 }
 0xd17   :  { %2879 = vmatmul.msk.bf16.gmra.mxu2 %vm345_vm2, %v1726_v63 }
 0xd27   :  { %2880 = vmatmul.msk.bf16.gmra.mxu2 %vm345_vm2, %v1727_v36 }
 0xd37   :  { %2881 = vmatmul.msk.bf16.gmra.mxu2 %vm345_vm2, %v1728_v19  ;;  %v4076_v19 = vpop.trf.xlu0 }
 0xd3f   :  { %v4080_v44 = vpop.trf.xlu0 }
 0xd47   :  { %2882 = vmatmul.msk.bf16.gmra.mxu2 %vm345_vm2, %v1729_v2  ;;  %v4084_v48 = vpop.trf.xlu0 }
 0xd4f   :  { %v4092_v25 = vpop.trf.xlu0 }
 0xd57   :  { %2883 = vmatmul.msk.bf16.gmra.mxu2 %vm345_vm2, %v1730_v32 }
 0xd66   :  { %v4074_v36 = vpop.trf.xlu1 }
 0xd6a   :  { %v1764_v14 = vpop.f32.mrf.mxu2 }
 0xd6b   :  { %v3993_v4 = vmul.f32 %v3715_v21, %v1764_v14  ;;  %v4008_v21 = vpop.xlane.xlu2 %1922  ;;  %v1401_v14 = vmul.f32 %v1400_v5, %v1400_v5 }
 0xd72   :  { %v1766_v12 = vpop.f32.mrf.mxu2 }
 0xd73   :  { %v3996_v3 = vmul.f32 %v3636_v24, %v1766_v12  ;;  %v2205_v26 = vpop.xlane.xlu2 %2204 }
 0xd74   :  { %v2208_v28 = vsub.f32 %v3871_v45, %v2205_v26 }
 0xd76   :  { %v2210_v49 = vmul.f32 1.442695, %v2208_v28  ;;  %v4078_v2 = vpop.trf.xlu1  ;;  %v4096_v28 = vpop.trf.xlu0 }
 0xd78   :  { %3022 = vpow2.f32 %v2210_v49 }
 0xd7a   :  { %v1769_v29 = vpop.f32.mrf.mxu2 }
 0xd7b   :  { %v4011_v9 = vmul.f32 %v3703_v38, %v1769_v29  ;;  %v1455_v38 = vld [vmem:[%s4498_s1 + $0xb8] sm:$0xff]  ;;  %v1403_v29 = vrot.slane %v1401_v14, 7 }
 0xd7c   :  { %2875 = vmatmul.msk.f32.gmra.mxu3 %vm70_vm1, %v1455_v38 }
 0xd7d   :  { %v1405_v34 = vsub.f32 %v1400_v5, %v1403_v29  ;;  %v4109_v29 = vld [vmem:[%s4501_s4 + $0x70] sm:$0xff] }
 0xd7e   :  { %v4028_v18 = vpop.eup %3022  ;;  %v4100_v38 = vpop.trf.xlu0 }
 0xd7f   :  { %v1406_v10 = vadd.f32 1e-05, %v1405_v34 }
 0xd81   :  { %vm1413_vm5 = vweird.f32 %v1406_v10 }
 0xd82   :  { %v1771_v24 = vpop.f32.mrf.mxu2 }
 0xd83   :  { %v4014_v37 = vmul.f32 %v3709_v39, %v1771_v24  ;;  %v2207_v39 = vpop.xlane.xlu2 %2206 }
 0xd84   :  { %1422 = vperm.xlu1 %2932, %v3067_v16   ;;  %v2209_v54 = vsub.f32 %v3874_v57, %v2207_v39  ;;  %2230 = vmatmul.f32.vlgmr.msra.gmra.mxu3 %v4028_v18  ;;  %v4087_v16 = vpop.f32.mrf.mxu3 }
 0xd85   :  { %2471 = vmax.xlane.f32.xlu2 %v4087_v16 }
 0xd86   :  { %v2212_v57 = vmul.f32 1.442695, %v2209_v54  ;;  %v4082_v55 = vpop.trf.xlu1 }
 0xd88   :  { %3024 = vpow2.f32 %v2212_v57 }
 0xd89   :  { %3026 = vrsqrt.f32 %v1406_v10 }
 0xd8a   :  { %v1774_v47 = vpop.f32.mrf.mxu2 }
 0xd8b   :  { %v4036_v45 = vmul.f32 %v4033_v43, %v1774_v47 }
 0xd8e   :  { %v4049_v15 = vpop.eup %3024 }
 0xd8f   :  { %2233 = vmatmul.f32.gmra.mxu3 %v4049_v15  ;;  %v3027_v47 = vpop.eup %3026 }
 0xd90   :  { %v1408_v39 = vmul.f32 %v3027_v47, %v1406_v10  ;;  %vm1414_vm4 = vweird.f32 %v3027_v47 }
 0xd91   :  { %vm1415_vm6 = vmor %vm1413_vm5, %vm1414_vm4 }
 0xd92   :  { %v1776_v13 = vpop.f32.mrf.mxu2 }
 0xd93   :  { %v4044_v1 = vmul.f32 %v4041_v30, %v1776_v13  ;;  %v1409_v13 = vmul.f32 %v3027_v47, %v1408_v39 }
 0xd95   :  { %v1410_v14 = vmul.f32 0.5, %v1409_v13 }
 0xd96   :  { %v4090_v12 = vpop.trf.xlu1 }
 0xd97   :  { %v1411_v63 = vsub.f32 1.5, %v1410_v14 }
 0xd9a   :  { %v1779_v61 = vpop.f32.mrf.mxu2 }
 0xd9b   :  { %v4062_v52 = vmul.f32 %v4059_v42, %v1779_v61 }
 0xda2   :  { %v1781_v41 = vpop.f32.mrf.mxu2 }
 0xda3   :  { %v4070_v59 = vmul.f32 %v4067_v56, %v1781_v41  ;;  %v4104_v41 = vpop.trf.xlu0 }
 0xda6   :  { %v4094_v26 = vpop.trf.xlu1 }
 0xda7   :  { %4510 = vst [vmem:[#allocation9_spill] sm:$0xff] %v4094_v26 }
 0xdaa   :  { %v1784_v53 = vpop.f32.mrf.mxu2 }
 0xdb2   :  { %v1786_v32 = vpop.f32.mrf.mxu2 }
 0xdb6   :  { %v4098_v49 = vpop.trf.xlu1 }
 0xdb7   :  { %4511 = vst [vmem:[#allocation10_spill] sm:$0xff] %v4098_v49 }
 0xdba   :  { %v1789_v62 = vpop.f32.mrf.mxu2 }
 0xdc2   :  { %v1791_v22 = vpop.f32.mrf.mxu2 }
 0xdc6   :  { %v4102_v57 = vpop.trf.xlu1 }
 0xdc7   :  { %4512 = vst [vmem:[#allocation11_spill] sm:$0xff] %v4102_v57  ;;  %v1412_v57 = vmul.f32 %v3027_v47, %v1411_v63 }
 0xdca   :  { %v1794_v24 = vpop.f32.mrf.mxu2 }
 0xdd2   :  { %v1796_v20 = vpop.f32.mrf.mxu2 }
 0xdd3   :  { %v1817_v13 = vmul.f32 %v4121_v60, %v1796_v20  ;;  %v4139_v20 = vld [vmem:[%s4501_s4 + $0x50] sm:$0xff] }
 0xdd4   :  { %v1814_v14 = vmul.f32 %v4139_v20, %v1789_v62 }
 0xdda   :  { %v1799_v54 = vpop.f32.mrf.mxu2 }
 0xddb   :  { %v1818_v34 = vmul.f32 %v4109_v29, %v1799_v54  ;;  %v4127_v54 = vld [vmem:[%s4501_s4 + $0x60] sm:$0xff] }
 0xddc   :  { %v1816_v51 = vmul.f32 %v4127_v54, %v1794_v24  ;;  %v4142_v24 = vpop.trf.xlu1 }
 0xddd   :  { %4513 = vst [vmem:[#allocation12_spill] sm:$0xff] %v4142_v24 }
 0xdde   :  { %v1826_v33 = vpack.c.bf16 %v1817_v13, %v1816_v51 }
 0xde2   :  { %v1801_v61 = vpop.f32.mrf.mxu2 }
 0xde3   :  { %v1819_v39 = vmul.f32 %v4115_v11, %v1801_v61  ;;  %v4133_v61 = vld [vmem:[%s4501_s4 + $0x58] sm:$0xff] }
 0xde4   :  { %v1815_v31 = vmul.f32 %v4133_v61, %v1791_v22  ;;  %v4149_v22 = vld [vmem:[%s4501_s4 + $0x48] sm:$0xff] }
 0xde5   :  { %v1827_v35 = vpack.c.bf16 %v1819_v39, %v1818_v34  ;;  %v1813_v51 = vmul.f32 %v4149_v22, %v1786_v32  ;;  %v1416_v34 = vsel %vm1415_vm6, %v3027_v47, %v1412_v57  ;;  %v1417_v39 = vperm.slane %v1400_v5, 0 }
 0xde6   :  { %v1825_v63 = vpack.c.bf16 %v1815_v31, %v1814_v14  ;;  %v1419_v13 = vperm.slane %v1416_v34, 1  ;;  %v4514_v5 = vpack.c.bf16 %v4070_v59, %v4062_v52  ;;  %v4515_v57 = vpack.c.bf16 %v4044_v1, %v4036_v45  ;;  %v4186_v45 = vld [vmem:[%s4502_s5] sm:$0xff] }
 0xde7   :  { %1828 = vmatpush.bf16.msra.mxu1 %v1827_v35  ;;  %v4144_v35 = vpop.xlane.xlu0 %2469  ;;  %v1418_v24 = vsub.f32 %v3937_v58, %v1417_v39  ;;  %v4516_v58 = vpack.c.bf16 %v4014_v37, %v4011_v9 }
 0xde9   :  { %v1420_v49 = vmul.f32 %v1419_v13, %v1418_v24  ;;  %v4222_v13 = vld [vmem:[%s4501_s4 + $0x10] sm:$0xff] }
 0xdeb   :  { %1829 = vmatpush.bf16.msra.mxu1 %v1826_v33  ;;  %v4155_v33 = vld [vmem:[%s4501_s4 + $0x40] sm:$0xff] }
 0xdec   :  { %v1812_v62 = vmul.f32 %v4155_v33, %v1784_v53  ;;  %v4168_v53 = vpop.f32.mrf.mxu3 }
 0xded   :  { %v1857_v59 = vmul.f32 %v4109_v29, %v4168_v53  ;;  %v1853_v1 = vmul.f32 %v4139_v20, %v4168_v53  ;;  %v1851_v39 = vmul.f32 %v4155_v33, %v4168_v53 }
 0xdee   :  { %v1824_v10 = vpack.c.bf16 %v1813_v51, %v1812_v62  ;;  %v1924_v51 = vsub.f32 %v3866_v6, %v4054_v7  ;;  %v1925_v6 = vsub.f32 %v3868_v23, %v4008_v21  ;;  %v4216_v7 = vld [vmem:[%s4501_s4 + $0x18] sm:$0xff]  ;;  %v4228_v23 = vld [vmem:[%s4501_s4 + $0x8] sm:$0xff]  ;;  %v1849_v21 = vmul.f32 %v4059_v42, %v4168_v53 }
 0xdef   :  { %1830 = vmatpush.bf16.msra.mxu1 %v1825_v63  ;;  %v4161_v31 = vpop.permute.xlu0 %1427 }
 0xdf0   :  { %v1926_v34 = vmul.f32 1.442695, %v1924_v51 }
 0xdf2   :  { %3028 = vpow2.f32 %v1926_v34 }
 0xdf3   :  { %1831 = vmatpush.bf16.msra.mxu1 %v1824_v10 }
 0xdf4   :  { %v1601_v52 = vpop.f32.mrf.mxu3 }
 0xdf5   :  { %v1858_v14 = vmul.f32 %v4115_v11, %v1601_v52  ;;  %v1854_v24 = vmul.f32 %v4133_v61, %v1601_v52  ;;  %v1852_v62 = vmul.f32 %v4149_v22, %v1601_v52 }
 0xdf6   :  { %v4159_v26 = vpop.permute.xlu1 %1422 }
 0xdf7   :  { %v1425_v32 = vmul.f32 %v4159_v26, %v1420_v49  ;;  %1832 = vmatpush.bf16.msra.mxu1 %v4514_v5  ;;  %v4517_v49 = vpack.c.bf16 %v3996_v3, %v3993_v4  ;;  %v1866_v9 = vpack.c.bf16 %v1858_v14, %v1857_v59  ;;  %v1855_v4 = vmul.f32 %v4127_v54, %v4168_v53 }
 0xdf8   :  { %v1856_v3 = vmul.f32 %v4121_v60, %v1601_v52  ;;  %v1864_v63 = vpack.c.bf16 %v1854_v24, %v1853_v1  ;;  %v1863_v10 = vpack.c.bf16 %v1852_v62, %v1851_v39  ;;  %v1850_v5 = vmul.f32 %v4067_v56, %v1601_v52 }
 0xdf9   :  { %v1430_v47 = vadd.f32 %v4161_v31, %v1425_v32  ;;  %1867 = vmatpush.bf16.xpose.msrb.mxu0 %v1866_v9  ;;  %v1928_v32 = vmul.f32 1.442695, %v1925_v6  ;;  %v1848_v59 = vmul.f32 %v4041_v30, %v1601_v52  ;;  %v1844_v24 = vmul.f32 %v4228_v23, %v1601_v52 }
 0xdfa   :  { %v1865_v37 = vpack.c.bf16 %v1856_v3, %v1855_v4  ;;  %v1845_v4 = vmul.f32 %v4222_v13, %v4168_v53  ;;  %v1846_v3 = vmul.f32 %v4216_v7, %v1601_v52 }
 0xdfb   :  { %1431 = vst [vmem:[#allocation3] sm:$0xf] %v1430_v47  ;;  %1833 = vmatpush.bf16.msra.mxu1 %v4515_v57  ;;  %v3029_v47 = vpop.eup %3028  ;;  %v4237_v57 = vld [vmem:[%s4501_s4] sm:$0xff]  ;;  %3030 = vpow2.f32 %v1928_v32 }
 0xdfc   :  { %v1843_v1 = vmul.f32 %v4237_v57, %v4168_v53 }
 0xdfe   :  { %v1859_v51 = vpack.c.bf16 %v1844_v24, %v1843_v1 }
 0xdff   :  { %1834 = vmatpush.bf16.msra.mxu1 %v4516_v58  ;;  %v1862_v58 = vpack.c.bf16 %v1850_v5, %v1849_v21 }
 0xe01   :  { %1868 = vmatpush.bf16.xpose.msrb.mxu0 %v1865_v37  ;;  %v3031_v14 = vpop.eup %3030  ;;  %v1860_v37 = vpack.c.bf16 %v1846_v3, %v1845_v4 }
 0xe03   :  { %1835 = vmatpush.bf16.msra.mxu1 %v4517_v49  ;;  %v1847_v49 = vmul.f32 %v4033_v43, %v4168_v53 }
 0xe05   :  { %v1861_v9 = vpack.c.bf16 %v1848_v59, %v1847_v49 }
 0xe06   :  { %1836 = vmatmul.bf16.vlgmr.msra.gmra.mxu1 %v4186_v45 }
 0xe07   :  { %1930 = vmatpush.msrb.mxu1 %v4115_v11 }
 0xe09   :  { %1931 = vmatpush.msrb.mxu1 %v4109_v29  ;;  %1869 = vmatpush.bf16.xpose.msrb.mxu0 %v1864_v63 }
 0xe0b   :  { %1932 = vmatpush.msrb.mxu1 %v4121_v60 }
 0xe0d   :  { %1933 = vmatpush.msrb.mxu1 %v4127_v54 }
 0xe0f   :  { %1934 = vmatpush.msrb.mxu1 %v4133_v61 }
 0xe11   :  { %1935 = vmatpush.msrb.mxu1 %v4139_v20  ;;  %1870 = vmatpush.bf16.xpose.msrb.mxu0 %v1863_v10 }
 0xe13   :  { %1936 = vmatpush.msrb.mxu1 %v4149_v22 }
 0xe15   :  { %1937 = vmatpush.msrb.mxu1 %v4155_v33 }
 0xe17   :  { %1938 = vmatpush.msrb.mxu1 %v4067_v56 }
 0xe19   :  { %1939 = vmatpush.msrb.mxu1 %v4059_v42  ;;  %1871 = vmatpush.bf16.xpose.msrb.mxu0 %v1862_v58 }
 0xe1b   :  { %1940 = vmatpush.msrb.mxu1 %v4041_v30 }
 0xe1d   :  { %1941 = vmatpush.msrb.mxu1 %v4033_v43 }
 0xe1f   :  { %1942 = vmatpush.msrb.mxu1 %v4216_v7 }
 0xe21   :  { %1943 = vmatpush.msrb.mxu1 %v4222_v13  ;;  %1872 = vmatpush.bf16.xpose.msrb.mxu0 %v1861_v9 }
 0xe23   :  { %1944 = vmatpush.msrb.mxu1 %v4228_v23 }
 0xe25   :  { %1945 = vmatpush.msrb.mxu1 %v4237_v57 }
 0xe26   :  { %1946 = vmatmul.f32.vlgmr.msrb.gmra.mxu1 %v3029_v47 }
 0xe29   :  { %1873 = vmatpush.bf16.xpose.msrb.mxu0 %v1860_v37 }
 0xe2e   :  { %1949 = vmatmul.f32.gmra.mxu1 %v3031_v14 }
 0xe31   :  { %1874 = vmatpush.bf16.xpose.msrb.mxu0 %v1859_v51 }
 0xe83   :  { %v1837_v63 = vpop.f32.mrf.mxu1 }
 0xe8b   :  { %v1839_v34 = vpop.f32.mrf.mxu1 }
 0xe8c   :  { %v1842_v39 = vpack.c.bf16 %v1839_v34, %v1837_v63 }
 0xe8e   :  { %1875 = vmatmul.bf16.vlgmr.msrb.gmra.mxu0 %v1842_v39 }
 0xea3   :  { %v1947_v62 = vpop.f32.mrf.mxu1 }
 0xea4   :  { %3032 = vrcp.f32 %v1947_v62 }
 0xeaa   :  { %v3033_v10 = vpop.eup %3032 }
 0xeab   :  { %v1950_v6 = vpop.f32.mrf.mxu1  ;;  %v1955_v21 = vmul.f32 %v3033_v10, %v3029_v47  ;;  %v1604_v10 = vpop.f32.mrf.mxu3 }
 0xeac   :  { %3034 = vrcp.f32 %v1950_v6 }
 0xeb2   :  { %v3035_v32 = vpop.eup %3034 }
 0xeb3   :  { %v1956_v5 = vmul.f32 %v3035_v32, %v3031_v14 }
 0xeb5   :  { %v1958_v58 = vpack.c.bf16 %v1956_v5, %v1955_v21 }
 0xeb7   :  { %2006 = vmatpush.bf16.msra.mxu0 %v1958_v58  ;;  %v1607_v58 = vpop.f32.mrf.mxu3 }
 0xeba   :  { %2884 = vmatmul.msk.bf16.vlgmr.msra.gmra.mxu0 %vm345_vm2, %v4051_v46 }
 0xeca   :  { %2885 = vmatmul.msk.bf16.gmra.mxu0 %vm345_vm2, %v4076_v19 }
 0xeda   :  { %2886 = vmatmul.msk.bf16.gmra.mxu0 %vm345_vm2, %v4080_v44 }
 0xeea   :  { %2887 = vmatmul.msk.bf16.gmra.mxu0 %vm345_vm2, %v4084_v48 }
 0xefa   :  { %2888 = vmatmul.msk.bf16.gmra.mxu0 %vm345_vm2, %v4092_v25 }
 0xf0a   :  { %2889 = vmatmul.msk.bf16.gmra.mxu0 %vm345_vm2, %v4096_v28 }
 0xf0b   :  { %v4263_v53 = vpop.f32.mrf.mxu0 }
 0xf13   :  { %v4267_v46 = vpop.f32.mrf.mxu0 }
 0xf1a   :  { %2890 = vmatmul.msk.bf16.gmra.mxu0 %vm345_vm2, %v4100_v38 }
 0xf2a   :  { %2891 = vmatmul.msk.bf16.gmra.mxu0 %vm345_vm2, %v4104_v41 }
 0xf37   :  { %v2008_v19 = vpop.f32.mrf.mxu0 }
 0xf3f   :  { %v2010_v44 = vpop.f32.mrf.mxu0 }
 0xf47   :  { %v2013_v52 = vpop.f32.mrf.mxu0 }
 0xf48   :  { %v2050_v47 = vmul.f32 %v4222_v13, %v2013_v52 }
 0xf4f   :  { %v2015_v48 = vpop.f32.mrf.mxu0 }
 0xf50   :  { %v2051_v25 = vmul.f32 %v4216_v7, %v2015_v48 }
 0xf52   :  { %v2065_v49 = vpack.c.bf16 %v2051_v25, %v2050_v47  ;;  %v2101_v47 = vmul.f32 %v4109_v29, %v1604_v10  ;;  %v2102_v25 = vmul.f32 %v4115_v11, %v1607_v58 }
 0xf57   :  { %v2018_v28 = vpop.f32.mrf.mxu0 }
 0xf58   :  { %v2052_v38 = vmul.f32 %v4033_v43, %v2018_v28 }
 0xf5f   :  { %v2020_v59 = vpop.f32.mrf.mxu0 }
 0xf60   :  { %v2053_v14 = vmul.f32 %v4041_v30, %v2020_v59  ;;  %v2110_v59 = vpack.c.bf16 %v2102_v25, %v2101_v47  ;;  %v2093_v25 = vmul.f32 %v4059_v42, %v1604_v10 }
 0xf62   :  { %v2066_v9 = vpack.c.bf16 %v2053_v14, %v2052_v38  ;;  %2111 = vmatpush.bf16.xpose.msra.mxu2 %v2110_v59  ;;  %v2091_v59 = vmul.f32 %v4033_v43, %v1604_v10 }
 0xf67   :  { %v2023_v4 = vpop.f32.mrf.mxu0 }
 0xf68   :  { %v2054_v3 = vmul.f32 %v4059_v42, %v2023_v4  ;;  %v2099_v4 = vmul.f32 %v4127_v54, %v1604_v10 }
 0xf6f   :  { %v2025_v41 = vpop.f32.mrf.mxu0 }
 0xf70   :  { %v2055_v37 = vmul.f32 %v4067_v56, %v2025_v41  ;;  %v2100_v41 = vmul.f32 %v4121_v60, %v1607_v58 }
 0xf72   :  { %v2067_v1 = vpack.c.bf16 %v2055_v37, %v2054_v3 }
 0xf77   :  { %v2028_v24 = vpop.f32.mrf.mxu0 }
 0xf7f   :  { %v2030_v51 = vpop.f32.mrf.mxu0 }
 0xf80   :  { %v2057_v37 = vmul.f32 %v4149_v22, %v2030_v51  ;;  %v2049_v51 = vmul.f32 %v4228_v23, %v2010_v44 }
 0xf87   :  { %v2033_v63 = vpop.f32.mrf.mxu0 }
 0xf88   :  { %v2058_v3 = vmul.f32 %v4139_v20, %v2033_v63  ;;  %v2095_v63 = vmul.f32 %v4155_v33, %v1604_v10 }
 0xf8f   :  { %v2035_v34 = vpop.f32.mrf.mxu0 }
 0xf90   :  { %v2059_v38 = vmul.f32 %v4133_v61, %v2035_v34  ;;  %v2097_v34 = vmul.f32 %v4139_v20, %v1604_v10 }
 0xf97   :  { %v2038_v39 = vpop.f32.mrf.mxu0 }
 0xf98   :  { %v2060_v28 = vmul.f32 %v4127_v54, %v2038_v39 }
 0xf9f   :  { %v2040_v62 = vpop.f32.mrf.mxu0 }
 0xfa0   :  { %v2061_v52 = vmul.f32 %v4121_v60, %v2040_v62  ;;  %v2069_v62 = vpack.c.bf16 %v2059_v38, %v2058_v3 }
 0xfa2   :  { %v2070_v14 = vpack.c.bf16 %v2061_v52, %v2060_v28  ;;  %v2096_v52 = vmul.f32 %v4149_v22, %v1607_v58  ;;  %v2094_v28 = vmul.f32 %v4067_v56, %v1607_v58 }
 0xfa7   :  { %v2043_v6 = vpop.f32.mrf.mxu0 }
 0xfa8   :  { %v2062_v21 = vmul.f32 %v4109_v29, %v2043_v6  ;;  %v2109_v6 = vpack.c.bf16 %v2100_v41, %v2099_v4  ;;  %v2088_v4 = vmul.f32 %v4228_v23, %v1607_v58 }
 0xfaa   :  { %2112 = vmatpush.bf16.xpose.msra.mxu2 %v2109_v6  ;;  %v1610_v6 = vpop.f32.mrf.mxu3 }
 0xfaf   :  { %v2045_v32 = vpop.f32.mrf.mxu0 }
 0xfb0   :  { %v2063_v5 = vmul.f32 %v4115_v11, %v2045_v32  ;;  %v2056_v32 = vmul.f32 %v4155_v33, %v2028_v24  ;;  %v2048_v24 = vmul.f32 %v4237_v57, %v2008_v19  ;;  %v2089_v19 = vmul.f32 %v4222_v13, %v1604_v10 }
 0xfb2   :  { %v2071_v48 = vpack.c.bf16 %v2063_v5, %v2062_v21  ;;  %v2068_v39 = vpack.c.bf16 %v2057_v37, %v2056_v32  ;;  %v2098_v21 = vmul.f32 %v4133_v61, %v1607_v58  ;;  %v2064_v47 = vpack.c.bf16 %v2049_v51, %v2048_v24  ;;  %v1613_v32 = vpop.f32.mrf.mxu3 }
 0xfb3   :  { %v2380_v24 = vmul.f32 %v4149_v22, %v1613_v32 }
 0xfb4   :  { %2072 = vmatpush.bf16.msra.mxu1 %v2071_v48  ;;  %v2108_v5 = vpack.c.bf16 %v2098_v21, %v2097_v34  ;;  %v2107_v48 = vpack.c.bf16 %v2096_v52, %v2095_v63  ;;  %v2386_v34 = vmul.f32 %v4115_v11, %v1613_v32  ;;  %v2382_v52 = vmul.f32 %v4133_v61, %v1613_v32 }
 0xfb6   :  { %2113 = vmatpush.bf16.xpose.msra.mxu2 %v2108_v5  ;;  %v2383_v5 = vmul.f32 %v4127_v54, %v1610_v6 }
 0xfb8   :  { %2073 = vmatpush.bf16.msra.mxu1 %v2070_v14  ;;  %v2087_v14 = vmul.f32 %v4237_v57, %v1604_v10  ;;  %v2384_v10 = vmul.f32 %v4121_v60, %v1613_v32 }
 0xfba   :  { %v2103_v41 = vpack.c.bf16 %v2088_v4, %v2087_v14  ;;  %v2393_v63 = vpack.c.bf16 %v2384_v10, %v2383_v5  ;;  %v2371_v14 = vmul.f32 %v4237_v57, %v1610_v6  ;;  %v2372_v4 = vmul.f32 %v4228_v23, %v1613_v32 }
 0xfbc   :  { %2074 = vmatpush.bf16.msra.mxu1 %v2069_v62 }
 0xfbe   :  { %2114 = vmatpush.bf16.xpose.msra.mxu2 %v2107_v48  ;;  %v2379_v48 = vmul.f32 %v4155_v33, %v1610_v6 }
 0xfc0   :  { %2075 = vmatpush.bf16.msra.mxu1 %v2068_v39  ;;  %v2385_v39 = vmul.f32 %v4109_v29, %v1610_v6 }
 0xfc2   :  { %v2394_v21 = vpack.c.bf16 %v2386_v34, %v2385_v39 }
 0xfc4   :  { %2076 = vmatpush.bf16.msra.mxu1 %v2067_v1  ;;  %v2106_v1 = vpack.c.bf16 %v2094_v28, %v2093_v25  ;;  %2395 = vmatpush.bf16.xpose.msrb.mxu0 %v2394_v21  ;;  %v2377_v25 = vmul.f32 %v4059_v42, %v1610_v6  ;;  %v2378_v28 = vmul.f32 %v4067_v56, %v1613_v32 }
 0xfc6   :  { %2115 = vmatpush.bf16.xpose.msra.mxu2 %v2106_v1  ;;  %v2390_v1 = vpack.c.bf16 %v2378_v28, %v2377_v25 }
 0xfc8   :  { %2077 = vmatpush.bf16.msra.mxu1 %v2066_v9  ;;  %v2092_v9 = vmul.f32 %v4041_v30, %v1607_v58 }
 0xfca   :  { %v2105_v44 = vpack.c.bf16 %v2092_v9, %v2091_v59  ;;  %v2375_v59 = vmul.f32 %v4033_v43, %v1610_v6  ;;  %v2376_v9 = vmul.f32 %v4041_v30, %v1613_v32 }
 0xfcc   :  { %2078 = vmatpush.bf16.msra.mxu1 %v2065_v49  ;;  %v2090_v49 = vmul.f32 %v4216_v7, %v1607_v58  ;;  %2396 = vmatpush.bf16.xpose.msrb.mxu0 %v2393_v63  ;;  %v2381_v58 = vmul.f32 %v4139_v20, %v1610_v6 }
 0xfce   :  { %2116 = vmatpush.bf16.xpose.msra.mxu2 %v2105_v44  ;;  %v2104_v38 = vpack.c.bf16 %v2090_v49, %v2089_v19  ;;  %v2392_v51 = vpack.c.bf16 %v2382_v52, %v2381_v58  ;;  %v2389_v44 = vpack.c.bf16 %v2376_v9, %v2375_v59  ;;  %v2373_v19 = vmul.f32 %v4222_v13, %v1610_v6  ;;  %v3085_v58 = vld [vmem:[%s4499_s2] sm:$0xf] }
 0xfcf   :  { %v2374_v49 = vmul.f32 %v4216_v7, %v1613_v32 }
 0xfd0   :  { %2079 = vmatpush.bf16.msra.mxu1 %v2064_v47  ;;  %v2391_v47 = vpack.c.bf16 %v2380_v24, %v2379_v48 }
 0xfd3   :  { %2080 = vmatmul.bf16.vlgmr.msra.gmra.mxu1 %v4186_v45 }
 0xfd4   :  { %2397 = vmatpush.bf16.xpose.msrb.mxu0 %v2392_v51 }
 0xfd6   :  { %2117 = vmatpush.bf16.xpose.msra.mxu2 %v2104_v38  ;;  %v2388_v38 = vpack.c.bf16 %v2374_v49, %v2373_v19 }
 0xfdc   :  { %2398 = vmatpush.bf16.xpose.msrb.mxu0 %v2391_v47 }
 0xfde   :  { %2118 = vmatpush.bf16.xpose.msra.mxu2 %v2103_v41  ;;  %v2387_v41 = vpack.c.bf16 %v2372_v4, %v2371_v14 }
 0xfe4   :  { %2399 = vmatpush.bf16.xpose.msrb.mxu0 %v2390_v1 }
 0xfec   :  { %2400 = vmatpush.bf16.xpose.msrb.mxu0 %v2389_v44 }
 0xff4   :  { %2401 = vmatpush.bf16.xpose.msrb.mxu0 %v2388_v38 }
 0xffc   :  { %2402 = vmatpush.bf16.xpose.msrb.mxu0 %v2387_v41 }
0x1050   :  { %v2081_v3 = vpop.f32.mrf.mxu1 }
0x1058   :  { %v2083_v37 = vpop.f32.mrf.mxu1 }
0x1059   :  { %v2086_v62 = vpack.c.bf16 %v2083_v37, %v2081_v3  ;;  %v4318_v3 = vpop.f32.mrf.mxu3 }
0x105b   :  { %2119 = vmatmul.bf16.vlgmr.msra.gmra.mxu2 %v2086_v62 }
0x1061   :  { %v4320_v37 = vpop.f32.mrf.mxu3 }
0x1069   :  { %v2231_v62 = vpop.f32.mrf.mxu3 }
0x106a   :  { %3036 = vrcp.f32 %v2231_v62 }
0x1070   :  { %v3037_v21 = vpop.eup %3036 }
0x1071   :  { %v2234_v39 = vpop.f32.mrf.mxu3  ;;  %v2239_v6 = vmul.f32 %v3037_v21, %v4028_v18  ;;  %v2251_v18 = vpop.trf.xlu2 }
0x1072   :  { %3038 = vrcp.f32 %v2234_v39 }
0x1078   :  { %v3039_v5 = vpop.eup %3038 }
0x1079   :  { %v2240_v32 = vmul.f32 %v3039_v5, %v4049_v15 }
0x107b   :  { %v2242_v63 = vpack.c.bf16 %v2240_v32, %v2239_v6 }
0x10de   :  { %v4322_v34 = vpop.f32.mrf.mxu2 }
0x10e6   :  { %v4324_v10 = vpop.f32.mrf.mxu2 }
0x10e7   :  { %2139 = vmatpush.msrb.mxu1 %v4324_v10 }
0x10e9   :  { %2140 = vmatpush.msrb.mxu1 %v4322_v34 }
0x10ea   :  { %2892 = vmatmul.msk.f32.vlgmr.msrb.gmra.mxu1 %vm345_vm2, %v3516_v8  ;;  %v2252_v8 = vpop.trf.xlu2 }
0x10eb   :  { %2159 = vmatpush.msra.mxu1 %v4267_v46 }
0x10ed   :  { %2160 = vmatpush.msra.mxu1 %v4263_v53 }
0x10ef   :  { %2290 = vmatpush.bf16.msrb.mxu1 %v2242_v63 }
0x10f2   :  { %2893 = vmatmul.msk.f32.vlgmr.msra.gmra.mxu1 %vm345_vm2, %v3085_v58  ;;  %v2253_v15 = vpop.trf.xlu2 }
0x10f3   :  { %2722 = vmatpush.msra.mxu1 %v4115_v11 }
0x10f5   :  { %2723 = vmatpush.msra.mxu1 %v4109_v29 }
0x10f7   :  { %2724 = vmatpush.msra.mxu1 %v4121_v60 }
0x10f9   :  { %2725 = vmatpush.msra.mxu1 %v4127_v54 }
0x10fa   :  { %2894 = vmatmul.msk.bf16.vlgmr.msrb.gmra.mxu1 %vm345_vm2, %v2251_v18  ;;  %v2254_v52 = vpop.trf.xlu2 }
0x10fb   :  { %2726 = vmatpush.msra.mxu1 %v4133_v61 }
0x10fd   :  { %2727 = vmatpush.msra.mxu1 %v4139_v20 }
0x10ff   :  { %2728 = vmatpush.msra.mxu1 %v4149_v22 }
0x1101   :  { %2729 = vmatpush.msra.mxu1 %v4155_v33 }
0x1102   :  { %v2255_v51 = vpop.trf.xlu2 }
0x1103   :  { %2730 = vmatpush.msra.mxu1 %v4067_v56 }
0x1105   :  { %2731 = vmatpush.msra.mxu1 %v4059_v42 }
0x1107   :  { %2732 = vmatpush.msra.mxu1 %v4041_v30 }
0x1109   :  { %2733 = vmatpush.msra.mxu1 %v4033_v43 }
0x110a   :  { %2895 = vmatmul.msk.bf16.gmra.mxu1 %vm345_vm2, %v2252_v8  ;;  %v2256_v48 = vpop.trf.xlu2 }
0x110b   :  { %2734 = vmatpush.msra.mxu1 %v4216_v7 }
0x110d   :  { %2735 = vmatpush.msra.mxu1 %v4222_v13 }
0x110f   :  { %2736 = vmatpush.msra.mxu1 %v4228_v23 }
0x1111   :  { %2737 = vmatpush.msra.mxu1 %v4237_v57 }
0x1112   :  { %v2257_v24 = vpop.trf.xlu2 }
0x111a   :  { %2896 = vmatmul.msk.bf16.gmra.mxu1 %vm345_vm2, %v2253_v15  ;;  %v2258_v25 = vpop.trf.xlu2 }
0x112a   :  { %2897 = vmatmul.msk.bf16.gmra.mxu1 %vm345_vm2, %v2254_v52 }
0x113a   :  { %2898 = vmatmul.msk.bf16.gmra.mxu1 %vm345_vm2, %v2255_v51 }
0x114a   :  { %2899 = vmatmul.msk.bf16.gmra.mxu1 %vm345_vm2, %v2256_v48 }
0x115a   :  { %2900 = vmatmul.msk.bf16.gmra.mxu1 %vm345_vm2, %v2257_v24 }
0x1167   :  { %v2142_v47 = vpop.f32.mrf.mxu1 }
0x116a   :  { %2901 = vmatmul.msk.bf16.gmra.mxu1 %vm345_vm2, %v2258_v25 }
0x116f   :  { %v2162_v28 = vpop.f32.mrf.mxu1 }
0x1170   :  { %v4362_v1 = vadd.f32 %v2162_v28, %v2142_v47 }
0x1177   :  { %v2292_v59 = vpop.f32.mrf.mxu1 }
0x1178   :  { %v2332_v44 = vmul.f32 %v4237_v57, %v2292_v59 }
0x117f   :  { %v2294_v9 = vpop.f32.mrf.mxu1 }
0x1180   :  { %v2333_v19 = vmul.f32 %v4228_v23, %v2294_v9 }
0x1182   :  { %v2348_v49 = vpack.c.bf16 %v2333_v19, %v2332_v44 }
0x1187   :  { %v2297_v38 = vpop.f32.mrf.mxu1 }
0x1188   :  { %v2334_v4 = vmul.f32 %v4222_v13, %v2297_v38 }
0x118f   :  { %v2299_v14 = vpop.f32.mrf.mxu1 }
0x1190   :  { %v2335_v41 = vmul.f32 %v4216_v7, %v2299_v14 }
0x1192   :  { %v2349_v62 = vpack.c.bf16 %v2335_v41, %v2334_v4 }
0x1197   :  { %v2302_v39 = vpop.f32.mrf.mxu1 }
0x1198   :  { %v2336_v5 = vmul.f32 %v4033_v43, %v2302_v39 }
0x119f   :  { %v2304_v21 = vpop.f32.mrf.mxu1 }
0x11a0   :  { %v2337_v6 = vmul.f32 %v4041_v30, %v2304_v21 }
0x11a2   :  { %v2350_v32 = vpack.c.bf16 %v2337_v6, %v2336_v5 }
0x11a7   :  { %v2307_v63 = vpop.f32.mrf.mxu1 }
0x11a8   :  { %v2338_v18 = vmul.f32 %v4059_v42, %v2307_v63 }
0x11af   :  { %v2309_v58 = vpop.f32.mrf.mxu1 }
0x11b0   :  { %v2339_v8 = vmul.f32 %v4067_v56, %v2309_v58 }
0x11b2   :  { %v2351_v15 = vpack.c.bf16 %v2339_v8, %v2338_v18 }
0x11b7   :  { %v2312_v52 = vpop.f32.mrf.mxu1 }
0x11b8   :  { %v2340_v6 = vmul.f32 %v4155_v33, %v2312_v52  ;;  %v2649_v52 = vmul.f32 %v4121_v60, %v4320_v37 }
0x11bf   :  { %v2314_v51 = vpop.f32.mrf.mxu1 }
0x11c0   :  { %v2341_v21 = vmul.f32 %v4149_v22, %v2314_v51 }
0x11c2   :  { %v2352_v63 = vpack.c.bf16 %v2341_v21, %v2340_v6  ;;  %v2639_v21 = vmul.f32 %v4216_v7, %v4320_v37  ;;  %v2636_v6 = vmul.f32 %v4237_v57, %v4318_v3 }
0x11c7   :  { %v2317_v48 = vpop.f32.mrf.mxu1 }
0x11c8   :  { %v2342_v39 = vmul.f32 %v4139_v20, %v2317_v48 }
0x11cf   :  { %v2319_v24 = vpop.f32.mrf.mxu1 }
0x11d0   :  { %v2343_v4 = vmul.f32 %v4133_v61, %v2319_v24  ;;  %v2646_v24 = vmul.f32 %v4139_v20, %v4318_v3 }
0x11d2   :  { %v2353_v5 = vpack.c.bf16 %v2343_v4, %v2342_v39  ;;  %v2641_v4 = vmul.f32 %v4041_v30, %v4320_v37  ;;  %v2638_v39 = vmul.f32 %v4222_v13, %v4318_v3 }
0x11d7   :  { %v2322_v47 = vpop.f32.mrf.mxu1 }
0x11d8   :  { %v2344_v14 = vmul.f32 %v4127_v54, %v2322_v47  ;;  %v2647_v47 = vmul.f32 %v4133_v61, %v4320_v37 }
0x11df   :  { %v2324_v25 = vpop.f32.mrf.mxu1 }
0x11e0   :  { %v2345_v19 = vmul.f32 %v4121_v60, %v2324_v25  ;;  %v2657_v25 = vpack.c.bf16 %v2647_v47, %v2646_v24 }
0x11e2   :  { %v2354_v41 = vpack.c.bf16 %v2345_v19, %v2344_v14  ;;  %v2643_v19 = vmul.f32 %v4067_v56, %v4320_v37  ;;  %v2640_v14 = vmul.f32 %v4033_v43, %v4318_v3 }
0x11e7   :  { %v2327_v28 = vpop.f32.mrf.mxu1 }
0x11e8   :  { %v2346_v9 = vmul.f32 %v4109_v29, %v2327_v28  ;;  %v2644_v28 = vmul.f32 %v4155_v33, %v4318_v3 }
0x11ef   :  { %v2329_v59 = vpop.f32.mrf.mxu1 }
0x11f0   :  { %v2347_v44 = vmul.f32 %v4115_v11, %v2329_v59  ;;  %v2645_v59 = vmul.f32 %v4149_v22, %v4320_v37 }
0x11f2   :  { %v2355_v38 = vpack.c.bf16 %v2347_v44, %v2346_v9  ;;  %v2656_v9 = vpack.c.bf16 %v2645_v59, %v2644_v28  ;;  %v2642_v44 = vmul.f32 %v4059_v42, %v4318_v3 }
0x11f4   :  { %2356 = vmatpush.bf16.msrb.mxu2 %v2355_v38  ;;  %v2655_v38 = vpack.c.bf16 %v2643_v19, %v2642_v44 }
0x11f8   :  { %2357 = vmatpush.bf16.msrb.mxu2 %v2354_v41  ;;  %v2654_v41 = vpack.c.bf16 %v2641_v4, %v2640_v14 }
0x11fc   :  { %2358 = vmatpush.bf16.msrb.mxu2 %v2353_v5  ;;  %v2653_v5 = vpack.c.bf16 %v2639_v21, %v2638_v39 }
0x1200   :  { %2359 = vmatpush.bf16.msrb.mxu2 %v2352_v63  ;;  %v2637_v63 = vmul.f32 %v4228_v23, %v4320_v37 }
0x1204   :  { %2360 = vmatpush.bf16.msrb.mxu2 %v2351_v15 }
0x1208   :  { %2361 = vmatpush.bf16.msrb.mxu2 %v2350_v32  ;;  %v2472_v32 = vpop.xlane.xlu2 %2471 }
0x1209   :  { %v2474_v58 = vsub.f32 %v4087_v16, %v2472_v32  ;;  %v2648_v16 = vmul.f32 %v4127_v54, %v4318_v3 }
0x120b   :  { %v2477_v18 = vmul.f32 1.442695, %v2474_v58  ;;  %v2658_v48 = vpack.c.bf16 %v2649_v52, %v2648_v16 }
0x120c   :  { %2362 = vmatpush.bf16.msrb.mxu2 %v2349_v62 }
0x1210   :  { %2363 = vmatpush.bf16.msrb.mxu2 %v2348_v49  ;;  %v2473_v49 = vsub.f32 %v3969_v0, %v4144_v35  ;;  %v2650_v0 = vmul.f32 %v4109_v29, %v4318_v3  ;;  %v2651_v35 = vmul.f32 %v4115_v11, %v4320_v37  ;;  %v2165_v3 = vmax.f32 %v4322_v34, %v4324_v10 }
0x1211   :  { %v1881_v37 = vmax.f32 %v4263_v53, %v4267_v46 }
0x1212   :  { %v2475_v62 = vmul.f32 1.442695, %v2473_v49  ;;  %v2659_v15 = vpack.c.bf16 %v2651_v35, %v2650_v0  ;;  %v2166_v52 = vrot.slane %v2165_v3, 4 }
0x1213   :  { %2364 = vmatmul.bf16.vlgmr.msrb.gmra.mxu2 %v4186_v45 }
0x1214   :  { %2479 = vmatpush.msra.mxu2 %v4115_v11  ;;  %3040 = vpow2.f32 %v2475_v62  ;;  %v2167_v24 = vmax.f32 %v2165_v3, %v2166_v52 }
0x1215   :  { %3042 = vpow2.f32 %v2477_v18 }
0x1216   :  { %2480 = vmatpush.msra.mxu2 %v4109_v29 }
0x1218   :  { %2481 = vmatpush.msra.mxu2 %v4121_v60 }
0x121a   :  { %2482 = vmatpush.msra.mxu2 %v4127_v54  ;;  %v3041_v8 = vpop.eup %3040 }
0x121b   :  { %v3043_v51 = vpop.eup %3042 }
0x121c   :  { %2483 = vmatpush.msra.mxu2 %v4133_v61 }
0x121e   :  { %2484 = vmatpush.msra.mxu2 %v4139_v20 }
0x1220   :  { %2485 = vmatpush.msra.mxu2 %v4149_v22 }
0x1222   :  { %2486 = vmatpush.msra.mxu2 %v4155_v33 }
0x1224   :  { %2487 = vmatpush.msra.mxu2 %v4067_v56 }
0x1226   :  { %2488 = vmatpush.msra.mxu2 %v4059_v42 }
0x1228   :  { %2489 = vmatpush.msra.mxu2 %v4041_v30 }
0x122a   :  { %2490 = vmatpush.msra.mxu2 %v4033_v43  ;;  %v2652_v43 = vpack.c.bf16 %v2637_v63, %v2636_v6  ;;  %v4518_v6 = vld [vmem:[#allocation9_spill] sm:$0xff]  ;;  %v4519_v63 = vld [vmem:[#allocation10_spill] sm:$0xff] }
0x122c   :  { %2491 = vmatpush.msra.mxu2 %v4216_v7 }
0x122e   :  { %2492 = vmatpush.msra.mxu2 %v4222_v13 }
0x1230   :  { %2493 = vmatpush.msra.mxu2 %v4228_v23 }
0x1232   :  { %2494 = vmatpush.msra.mxu2 %v4237_v57 }
0x1233   :  { %2495 = vmatmul.f32.vlgmr.msra.gmra.mxu2 %v3041_v8 }
0x1234   :  { %2660 = vmatpush.bf16.xpose.msrb.mxu2 %v2659_v15 }
0x123b   :  { %2498 = vmatmul.f32.gmra.mxu2 %v3043_v51 }
0x123c   :  { %2661 = vmatpush.bf16.xpose.msrb.mxu2 %v2658_v48  ;;  %v1882_v48 = vrot.slane %v1881_v37, 4 }
0x1244   :  { %2662 = vmatpush.bf16.xpose.msrb.mxu2 %v2657_v25 }
0x124c   :  { %2663 = vmatpush.bf16.xpose.msrb.mxu2 %v2656_v9 }
0x1254   :  { %2664 = vmatpush.bf16.xpose.msrb.mxu2 %v2655_v38 }
0x125c   :  { %2665 = vmatpush.bf16.xpose.msrb.mxu2 %v2654_v41 }
0x1264   :  { %2666 = vmatpush.bf16.xpose.msrb.mxu2 %v2653_v5 }
0x126c   :  { %2667 = vmatpush.bf16.xpose.msrb.mxu2 %v2652_v43 }
0x1296   :  { %v2365_v49 = vpop.f32.mrf.mxu2 }
0x129e   :  { %v2367_v30 = vpop.f32.mrf.mxu2 }
0x129f   :  { %v2370_v62 = vpack.c.bf16 %v2367_v30, %v2365_v49 }
0x12a1   :  { %2403 = vmatmul.bf16.vlgmr.msrb.gmra.mxu0 %v2370_v62  ;;  %v3087_v62 = vld [vmem:[%s4501_s4 + $0x28] sm:$0xff] }
0x12b6   :  { %v2496_v32 = vpop.f32.mrf.mxu2 }
0x12b7   :  { %3044 = vrcp.f32 %v2496_v32 }
0x12bd   :  { %v3045_v0 = vpop.eup %3044 }
0x12be   :  { %v2499_v58 = vpop.f32.mrf.mxu2  ;;  %v2504_v18 = vmul.f32 %v3045_v0, %v3041_v8  ;;  %v1883_v8 = vmax.f32 %v1881_v37, %v1882_v48 }
0x12bf   :  { %3046 = vrcp.f32 %v2499_v58 }
0x12c0   :  { %v1884_v25 = vrot.slane %v1883_v8, 2 }
0x12c2   :  { %v1885_v9 = vmax.f32 %v1883_v8, %v1884_v25 }
0x12c4   :  { %v1886_v34 = vrot.slane %v1885_v9, 1 }
0x12c5   :  { %v3047_v35 = vpop.eup %3046 }
0x12c6   :  { %v2505_v15 = vmul.f32 %v3047_v35, %v3043_v51  ;;  %v2168_v51 = vrot.slane %v2167_v24, 2  ;;  %v1887_v19 = vmax.f32 %v1885_v9, %v1886_v34 }
0x12c8   :  { %v2507_v16 = vpack.c.bf16 %v2505_v15, %v2504_v18  ;;  %v2169_v28 = vmax.f32 %v2167_v24, %v2168_v51  ;;  %v1888_v39 = vmul.f32 %v1887_v19, %v3893_v50 }
0x12ca   :  { %2555 = vmatpush.bf16.msra.mxu0 %v2507_v16  ;;  %v2170_v44 = vrot.slane %v2169_v28, 1 }
0x12cc   :  { %v2171_v46 = vmax.f32 %v2169_v28, %v2170_v44 }
0x12cd   :  { %2903 = vmatmul.msk.bf16.vlgmr.msra.gmra.mxu0 %vm345_vm2, %v4074_v36 }
0x12ce   :  { %v2172_v14 = vmul.f32 %v2171_v46, %v3883_v17  ;;  %v4520_v17 = vld [vmem:[#allocation11_spill] sm:$0xff] }
0x12d0   :  { %v2173_v21 = vadd.f32 %v2172_v14, %v1888_v39  ;;  %v4522_v39 = vld [vmem:[#allocation6_spill] sm:$0xff] }
0x12dd   :  { %2904 = vmatmul.msk.bf16.gmra.mxu0 %vm345_vm2, %v4078_v2 }
0x131e   :  { %v2404_v47 = vpop.f32.mrf.mxu0 }
0x1326   :  { %v2406_v59 = vpop.f32.mrf.mxu0 }
0x1327   :  { %v2430_v36 = vmax.f32 %v2404_v47, %v2406_v59  ;;  %2423 = vmatpush.msrb.mxu3 %v2406_v59 }
0x1329   :  { %v2431_v2 = vrot.slane %v2430_v36, 4  ;;  %2424 = vmatpush.msrb.mxu3 %v2404_v47 }
0x132a   :  { %2902 = vmatmul.msk.f32.vlgmr.msrb.gmra.mxu3 %vm345_vm2, %v3725_v27 }
0x132b   :  { %v2432_v53 = vmax.f32 %v2430_v36, %v2431_v2  ;;  %2913 = vmatpush.bf16.msra.mxu3 %v2507_v16 }
0x132d   :  { %v2433_v10 = vrot.slane %v2432_v53, 2 }
0x132f   :  { %v2434_v38 = vmax.f32 %v2432_v53, %v2433_v10 }
0x1331   :  { %v2435_v4 = vrot.slane %v2434_v38, 1 }
0x1332   :  { %2905 = vmatmul.msk.bf16.vlgmr.msra.gmra.mxu3 %vm345_vm2, %v4082_v55  ;;  %v4521_v55 = vld [vmem:[#allocation12_spill] sm:$0xff] }
0x1333   :  { %v2436_v41 = vmax.f32 %v2434_v38, %v2435_v4 }
0x1335   :  { %v2437_v5 = vmul.f32 %v2436_v41, %v3887_v40 }
0x1337   :  { %v4447_v27 = vadd.f32 %v2437_v5, %v2173_v21 }
0x1342   :  { %2906 = vmatmul.msk.bf16.gmra.mxu3 %vm345_vm2, %v4090_v12  ;;  %v3086_v12 = vld [vmem:[%s4501_s4 + $0x20] sm:$0xff]  ;;  %s3124_s4 = smov [#allocation3]  }
0x1343   :  { %s2771_s12 = sshll.u32 %s3124_s4, 4  ;;  %s2772_s12 = int_to_ptr.vmem [resolvable:$true] %s2771_s12 }
0x134a   :  { %v2557_v47 = vpop.f32.mrf.mxu0 }
0x1352   :  { %2907 = vmatmul.msk.bf16.gmra.mxu3 %vm345_vm2, %v4518_v6  ;;  %v2559_v51 = vpop.f32.mrf.mxu0 }
0x135a   :  { %v2562_v34 = vpop.f32.mrf.mxu0 }
0x1362   :  { %2908 = vmatmul.msk.bf16.gmra.mxu3 %vm345_vm2, %v4519_v63  ;;  %v4523_v63 = vld [vmem:[#allocation7_spill] sm:$0xff] }
0x1372   :  { %2909 = vmatmul.msk.bf16.gmra.mxu3 %vm345_vm2, %v4520_v17 }
0x1382   :  { %2910 = vmatmul.msk.bf16.gmra.mxu3 %vm345_vm2, %v4521_v55 }
0x13ad   :  { %v2426_v50 = vpop.f32.mrf.mxu3 }
0x13ae   :  { %v4460_v40 = vadd.f32 %v2426_v50, %v4362_v1 }
0x13b5   :  { %v2567_v43 = vpop.f32.mrf.mxu3 }
0x13b6   :  { %v2601_v30 = vmul.f32 %v3086_v12, %v2567_v43 }
0x13bd   :  { %v2569_v49 = vpop.f32.mrf.mxu3 }
0x13be   :  { %v2602_v32 = vmul.f32 %v3087_v62, %v2569_v49  ;;  %v4524_v49 = vld [vmem:[#allocation8_spill] sm:$0xff] }
0x13c0   :  { %v2615_v58 = vpack.c.bf16 %v2602_v32, %v2601_v30 }
0x13c5   :  { %v2572_v0 = vpop.f32.mrf.mxu3 }
0x13c6   :  { %v2603_v18 = vmul.f32 %v4059_v42, %v2572_v0 }
0x13cd   :  { %v2574_v35 = vpop.f32.mrf.mxu3 }
0x13ce   :  { %v2604_v1 = vmul.f32 %v4067_v56, %v2574_v35 }
0x13d0   :  { %v2616_v15 = vpack.c.bf16 %v2604_v1, %v2603_v18 }
0x13d5   :  { %v2577_v16 = vpop.f32.mrf.mxu3 }
0x13dd   :  { %v2579_v3 = vpop.f32.mrf.mxu3 }
0x13de   :  { %v2606_v53 = vmul.f32 %v4149_v22, %v2579_v3 }
0x13e5   :  { %v2582_v37 = vpop.f32.mrf.mxu3 }
0x13e6   :  { %v2607_v2 = vmul.f32 %v4139_v20, %v2582_v37  ;;  %v2598_v20 = vmul.f32 %v4228_v23, %v2559_v51 }
0x13ed   :  { %v2584_v52 = vpop.f32.mrf.mxu3 }
0x13ee   :  { %v2608_v36 = vmul.f32 %v4133_v61, %v2584_v52  ;;  %v2597_v61 = vmul.f32 %v4237_v57, %v2557_v47 }
0x13f0   :  { %v2618_v46 = vpack.c.bf16 %v2608_v36, %v2607_v2  ;;  %v2613_v22 = vpack.c.bf16 %v2598_v20, %v2597_v61 }
0x13f5   :  { %v2587_v48 = vpop.f32.mrf.mxu3 }
0x13f6   :  { %v2609_v56 = vmul.f32 %v4127_v54, %v2587_v48  ;;  %v2599_v54 = vmul.f32 %v4222_v13, %v2562_v34 }
0x13fd   :  { %v2589_v24 = vpop.f32.mrf.mxu3 }
0x13fe   :  { %v2610_v9 = vmul.f32 %v4121_v60, %v2589_v24  ;;  %v2564_v60 = vpop.f32.mrf.mxu0 }
0x13ff   :  { %v2600_v10 = vmul.f32 %v4216_v7, %v2564_v60 }
0x1400   :  { %v2619_v44 = vpack.c.bf16 %v2610_v9, %v2609_v56 }
0x1401   :  { %v2614_v19 = vpack.c.bf16 %v2600_v10, %v2599_v54 }
0x1405   :  { %v2592_v8 = vpop.f32.mrf.mxu3 }
0x1406   :  { %v2611_v28 = vmul.f32 %v4109_v29, %v2592_v8  ;;  %v2605_v29 = vmul.f32 %v4155_v33, %v2577_v16 }
0x140d   :  { %v2594_v25 = vpop.f32.mrf.mxu3 }
0x140e   :  { %v2612_v59 = vmul.f32 %v4115_v11, %v2594_v25  ;;  %v2617_v11 = vpack.c.bf16 %v2606_v53, %v2605_v29 }
0x1410   :  { %v2620_v42 = vpack.c.bf16 %v2612_v59, %v2611_v28 }
0x1412   :  { %2621 = vmatpush.bf16.msrb.mxu0 %v2620_v42 }
0x1416   :  { %2622 = vmatpush.bf16.msrb.mxu0 %v2619_v44 }
0x141a   :  { %2623 = vmatpush.bf16.msrb.mxu0 %v2618_v46 }
0x141e   :  { %2624 = vmatpush.bf16.msrb.mxu0 %v2617_v11 }
0x1422   :  { %2625 = vmatpush.bf16.msrb.mxu0 %v2616_v15 }
0x1426   :  { %2626 = vmatpush.bf16.msrb.mxu0 %v2615_v58 }
0x142a   :  { %2627 = vmatpush.bf16.msrb.mxu0 %v2614_v19 }
0x142e   :  { %2628 = vmatpush.bf16.msrb.mxu0 %v2613_v22 }
0x1431   :  { %2629 = vmatmul.bf16.vlgmr.msrb.gmra.mxu0 %v4186_v45 }
0x14ae   :  { %v2630_v33 = vpop.f32.mrf.mxu0 }
0x14b6   :  { %v2632_v38 = vpop.f32.mrf.mxu0 }
0x14b7   :  { %v2635_v14 = vpack.c.bf16 %v2632_v38, %v2630_v33 }
0x14b9   :  { %2668 = vmatmul.bf16.vlgmr.msrb.gmra.mxu2 %v2635_v14 }
0x153c   :  { %v2669_v4 = vpop.f32.mrf.mxu2 }
0x1544   :  { %v2671_v41 = vpop.f32.mrf.mxu2 }
0x1545   :  { %v2695_v13 = vmax.f32 %v2669_v4, %v2671_v41  ;;  %2688 = vmatpush.msra.mxu0 %v2671_v41 }
0x1547   :  { %v2696_v7 = vrot.slane %v2695_v13, 4  ;;  %2689 = vmatpush.msra.mxu0 %v2669_v4 }
0x1548   :  { %2911 = vmatmul.msk.f32.vlgmr.msra.gmra.mxu0 %vm345_vm2, %v4522_v39 }
0x1549   :  { %v2697_v23 = vmax.f32 %v2695_v13, %v2696_v7 }
0x154b   :  { %v2698_v57 = vrot.slane %v2697_v23, 2 }
0x154d   :  { %v2699_v21 = vmax.f32 %v2697_v23, %v2698_v57 }
0x154f   :  { %v2700_v5 = vrot.slane %v2699_v21, 1 }
0x1551   :  { %v2701_v6 = vmax.f32 %v2699_v21, %v2700_v5 }
0x1553   :  { %v2702_v45 = vmul.f32 %v2701_v6, %v4523_v63 }
0x1555   :  { %v2703_v17 = vadd.f32 %v2702_v45, %v4447_v27 }
0x15c5   :  { %v2691_v55 = vpop.f32.mrf.mxu0 }
0x15c6   :  { %v2694_v50 = vadd.f32 %v2691_v55, %v4460_v40 }
0x15c8   :  { %v2704_v43 = vsub.f32 %v2694_v50, %v2703_v17 }
0x15ca   :  { %v2705_v12 = vadd.f32 %v2704_v43, %v4524_v49 }
0x15cc   :  { %v2706_v30 = vsel %vm143_vm0, %v2705_v12, 0.0  ;;  %v2713_v62 = vmul.f32 %v2705_v12, %v2705_v12 }
0x15cd   :  { %v2707_v32 = vrot.slane %v2706_v30, 4 }
0x15ce   :  { %v2714_v58 = vsel %vm143_vm0, %v2713_v62, 0.0 }
0x15cf   :  { %v2708_v0 = vadd.f32 %v2707_v32, %v2706_v30  ;;  %v2715_v35 = vrot.slane %v2714_v58, 4 }
0x15d1   :  { %v2709_v18 = vrot.slane %v2708_v0, 2  ;;  %v2716_v1 = vadd.f32 %v2715_v35, %v2714_v58 }
0x15d3   :  { %v2710_v15 = vadd.f32 %v2709_v18, %v2708_v0  ;;  %v2717_v16 = vrot.slane %v2716_v1, 2 }
0x15d5   :  { %v2711_v3 = vrot.slane %v2710_v15, 1  ;;  %v2718_v27 = vadd.f32 %v2717_v16, %v2716_v1 }
0x15d7   :  { %v2719_v37 = vrot.slane %v2718_v27, 1  ;;  %v2712_v52 = vadd.f32 %v2711_v3, %v2710_v15 }
0x15d9   :  { %v2720_v40 = vadd.f32 %v2719_v37, %v2718_v27 }
0x15db   :  { %v2721_v48 = vsel %vm1378_vm3, %v2712_v52, %v2720_v40 }
0x15dc   :  { %2738 = vmatmul.f32.vlgmr.msra.gmra.mxu1 %v2721_v48 }
0x1659   :  { %v2739_v24 = vpop.f32.mrf.mxu1 }
0x165a   :  { %v2742_v47 = vmul.f32 0.015625, %v2739_v24 }
0x165c   :  { %v2743_v8 = vmul.f32 %v2742_v47, %v2742_v47  ;;  %v2759_v44 = vperm.slane %v2742_v47, 0 }
0x165e   :  { %v2745_v51 = vrot.slane %v2743_v8, 7  ;;  %v2760_v53 = vsub.f32 %v2705_v12, %v2759_v44 }
0x1660   :  { %v2747_v25 = vsub.f32 %v2742_v47, %v2745_v51 }
0x1662   :  { %v2748_v28 = vadd.f32 1e-05, %v2747_v25 }
0x1664   :  { %3048 = vrsqrt.f32 %v2748_v28  ;;  %vm2755_vm8 = vweird.f32 %v2748_v28 }
0x166a   :  { %v3049_v59 = vpop.eup %3048 }
0x166b   :  { %v2750_v9 = vmul.f32 %v3049_v59, %v2748_v28  ;;  %vm2756_vm7 = vweird.f32 %v3049_v59 }
0x166c   :  { %vm2757_vm9 = vmor %vm2755_vm8, %vm2756_vm7 }
0x166d   :  { %v2751_v42 = vmul.f32 %v3049_v59, %v2750_v9 }
0x166f   :  { %v2752_v56 = vmul.f32 0.5, %v2751_v42 }
0x1671   :  { %v2753_v36 = vsub.f32 1.5, %v2752_v56 }
0x1673   :  { %v2754_v2 = vmul.f32 %v3049_v59, %v2753_v36 }
0x1675   :  { %v2758_v34 = vsel %vm2757_vm9, %v3049_v59, %v2754_v2 }
0x1676   :  { %v2761_v46 = vperm.slane %v2758_v34, 1 }
0x1678   :  { %v2762_v29 = vmul.f32 %v2761_v46, %v2760_v53 }
0x167a   :  { %v2763_v11 = vmul.f32 %v2762_v29, %v4159_v26 }
0x167c   :  { %v2764_v60 = vadd.f32 %v2763_v11, %v4161_v31 }
0x167e   :  { %2766 = vst [vmem:[#allocation3 + $0x4] sm:$0xf] %v2764_v60 }
0x167f   :  { %2779 = dma.vmem_to_hbm [thread:$0]  %s2772_s12, 128, %s2774_s15, [#allocation4], %s3125_s16, %s3125_s16, %s3126_s17  }
0x1680   :  { %3112 = dma.done.wait [#allocation4], 128  }
0x1681   :  { %3113 = vsyncadd [#allocation4], 4294967168 }
0x1682   :  { %2784 = vsyncpa [#allocation4], 1 }

</bundles_post_ra>
